<compile_context>
chip_gen: v6e
topology: v6e:2x2x1
jax: 0.10.0
libtpu: 0.0.40
codegen_flags: <defaults>
</compile_context>

<pallas_src>
import math
import functools

import numpy as np
import jax
import jax.numpy as jnp
from jax.experimental import pallas as pl
from jax.experimental.pallas import tpu as pltpu

# ----------------------------- configuration --------------------------------
IMG_SIZE = 16
PATCH = 4
IN_CHANS = 3
EMBED_DIM = 32
DEPTH = 2
NUM_HEADS = 4
DEC_EMBED_DIM = 32
DEC_DEPTH = 1
DEC_NUM_HEADS = 4
MLP_RATIO = 4.0
MASK_RATIO = 0.75
LN_EPS = 1e-5          # nn.LayerNorm default
PAD = 128              # lane-dense width for the pred / target / loss slab


# --------------------------- in-kernel helpers -------------------------------
def _layernorm(x, g, b):
    mu = jnp.mean(x, axis=-1, keepdims=True)
    var = jnp.mean((x - mu) ** 2, axis=-1, keepdims=True)
    return (x - mu) * jax.lax.rsqrt(var + LN_EPS) * g + b


def _gelu(x):
    # TODO(synk): tanh-approximate GELU (EUP slot); deviates ~1e-3 from torch
    # nn.GELU()'s exact-erf form.
    c = math.sqrt(2.0 / math.pi)
    return 0.5 * x * (1.0 + jnp.tanh(c * (x + 0.044715 * x * x * x)))


def _block(x, wq_ref, wk_ref, wv_ref, wp_ref, w1_ref, w2_ref, vec_ref, di,
           num_heads):
    """One pre-LN transformer block on a (seq, dim) activation.

    Weights are depth-stacked; q/k/v/proj are full-width bf16 matrices with
    head-major columns, so per-head slicing stays inside one vreg.  All the
    (1, dim) vectors for this block live in vec_ref[di] (rows:
    ln1_g, ln1_b, bq, bk, bv, b_proj, ln2_g, ln2_b, b_fc1, b_fc2).
    """
    dim = x.shape[-1]
    dh = dim // num_heads
    scale = dh ** -0.5
    vecs = vec_ref[di]                       # (10, hidden) f32, loaded once

    def vrow(r):
        return vecs[r:r + 1, :dim]

    # ----- attention branch -----
    h = _layernorm(x, vrow(0), vrow(1))
    hb = h.astype(jnp.bfloat16)
    q = jnp.dot(hb, wq_ref[di], preferred_element_type=jnp.float32) + vrow(2)
    k = jnp.dot(hb, wk_ref[di], preferred_element_type=jnp.float32) + vrow(3)
    v = jnp.dot(hb, wv_ref[di], preferred_element_type=jnp.float32) + vrow(4)

    parts = []
    for hh in range(num_heads):
        lo = hh * dh
        qh = q[:, lo:lo + dh]
        kh = k[:, lo:lo + dh]
        vh = v[:, lo:lo + dh]
        s = jax.lax.dot_general(qh, kh, (((1,), (1,)), ((), ())),
                                preferred_element_type=jnp.float32) * scale
        s = s - jnp.max(s, axis=-1, keepdims=True)      # kept for safety
        e = jnp.exp(s)
        p = e * pl.reciprocal(jnp.sum(e, axis=-1, keepdims=True), approx=True)
        parts.append(jnp.dot(p, vh, preferred_element_type=jnp.float32))
    ctx = jnp.concatenate(parts, axis=-1)               # (seq, dim), head-major
    attn = jnp.dot(ctx.astype(jnp.bfloat16), wp_ref[di],
                   preferred_element_type=jnp.float32) + vrow(5)
    x = x + attn

    # ----- MLP branch -----
    h2 = _layernorm(x, vrow(6), vrow(7))
    h2 = jnp.dot(h2.astype(jnp.bfloat16), w1_ref[di],
                 preferred_element_type=jnp.float32) + vecs[8:9, :]
    h2 = _gelu(h2)
    h2 = jnp.dot(h2.astype(jnp.bfloat16), w2_ref[di],
                 preferred_element_type=jnp.float32) + vrow(9)
    return x + h2


# ------------------------------ fused kernel ---------------------------------
def mae_forward_kernel(xk_ref, pos_ref, R_ref, decadd_ref, tgt_ref, maskf_ref,
                       patch_w_ref,
                       e_wq, e_wk, e_wv, e_wp, e_w1, e_w2, e_vec,
                       hv_ref, dembed_w_ref,
                       d_wq, d_wk, d_wv, d_wp, d_w1, d_w2, d_vec,
                       pred_w_ref,
                       out_ref,
                       *, nh_enc, nh_dec, dim, dec_dim, p_dim, loss_scale):
    f32 = jnp.float32
    hv = hv_ref[...]                                   # (6, 128) f32

    # ---- patch embed (+pos): cls row is a zero patch row + adjusted pos row,
    #      so no prepend-concat is needed.  patch bias is folded into pos.
    x = jnp.dot(xk_ref[...], patch_w_ref[...],
                preferred_element_type=f32) + pos_ref[...]        # (n_keep+1, D)

    # ---- encoder blocks (short fixed depth -> static unroll)
    for di in range(e_wq.shape[0]):
        x = _block(x, e_wq, e_wk, e_wv, e_wp, e_w1, e_w2, e_vec, di, nh_enc)

    # ---- encoder final LN fused with decoder_embed
    x = _layernorm(x, hv[0:1, :dim], hv[1:2, :dim])
    x = jnp.dot(x.astype(jnp.bfloat16), dembed_w_ref[...],
                preferred_element_type=f32) + hv[2:3, :dec_dim]    # (n_keep+1, Dd)

    # ---- token un-shuffle: one small selection matmul + precomputed additive
    #      term (decoder pos-embed + mask-token rows).  No concats/broadcasts.
    x = jnp.dot(R_ref[...], x, preferred_element_type=f32) + decadd_ref[...]

    # ---- decoder blocks
    for di in range(d_wq.shape[0]):
        x = _block(x, d_wq, d_wk, d_wv, d_wp, d_w1, d_w2, d_vec, di, nh_dec)

    # ---- decoder final LN fused with (lane-padded) decoder_pred
    x = _layernorm(x, hv[3:4, :dec_dim], hv[4:5, :dec_dim])
    pred = jnp.dot(x.astype(jnp.bfloat16), pred_w_ref[...],
                   preferred_element_type=f32) + hv[5:6, :]        # (L+1, 128)

    # ---- masked MSE numerator (padded lanes of pred/target are exactly 0,
    #      cls row has mask 0, so summing the whole slab is exact)
    diff = pred - tgt_ref[...]
    num = jnp.sum(jnp.sum(diff * diff * maskf_ref[...], axis=1, keepdims=True),
                  axis=0, keepdims=True)                           # (1, 1)

    # ---- fold the per-sample loss into a spare lane of the (dropped) cls row
    rows = jax.lax.broadcasted_iota(jnp.int32, pred.shape, 0)
    cols = jax.lax.broadcasted_iota(jnp.int32, pred.shape, 1)
    out_ref[...] = jnp.where((rows == 0) & (cols == p_dim),
                             num * loss_scale, pred)


# ------------------------ sin-cos positional embedding ------------------------
def get_1d_sincos_pos_embed_from_grid(embed_dim, pos):
    omega = np.arange(embed_dim // 2, dtype=np.float32)
    omega /= embed_dim / 2.0
    omega = 1.0 / 10000 ** omega
    pos = pos.reshape(-1)
    out = np.einsum("m,d->md", pos, omega)
    return np.concatenate([np.sin(out), np.cos(out)], axis=1)


def get_2d_sincos_pos_embed(embed_dim, grid_size, cls_token=False):
    grid_h = np.arange(grid_size, dtype=np.float32)
    grid_w = np.arange(grid_size, dtype=np.float32)
    grid = np.meshgrid(grid_w, grid_h)
    grid = np.stack(grid, axis=0).reshape([2, 1, grid_size, grid_size])
    emb_h = get_1d_sincos_pos_embed_from_grid(embed_dim // 2, grid[0])
    emb_w = get_1d_sincos_pos_embed_from_grid(embed_dim // 2, grid[1])
    pos = np.concatenate([emb_h, emb_w], axis=1)
    if cls_token:
        pos = np.concatenate([np.zeros([1, embed_dim], dtype=np.float32), pos], axis=0)
    return pos.astype(np.float32)


# ------------------------------ parameter init --------------------------------
def xavier_uniform(key, shape, fan_in, fan_out):
    limit = math.sqrt(6.0 / (fan_in + fan_out))
    return jax.random.uniform(key, shape, jnp.float32, -limit, limit)


def init_block(key, dim, hidden):
    ks = jax.random.split(key, 4)
    return dict(
        ln1_g=jnp.ones((1, dim), jnp.float32), ln1_b=jnp.zeros((1, dim), jnp.float32),
        w_qkv=xavier_uniform(ks[0], (dim, 3 * dim), dim, 3 * dim),
        b_qkv=jnp.zeros((1, 3 * dim), jnp.float32),
        w_proj=xavier_uniform(ks[1], (dim, dim), dim, dim),
        b_proj=jnp.zeros((1, dim), jnp.float32),
        ln2_g=jnp.ones((1, dim), jnp.float32), ln2_b=jnp.zeros((1, dim), jnp.float32),
        w_fc1=xavier_uniform(ks[2], (dim, hidden), dim, hidden),
        b_fc1=jnp.zeros((1, hidden), jnp.float32),
        w_fc2=xavier_uniform(ks[3], (hidden, dim), hidden, dim),
        b_fc2=jnp.zeros((1, dim), jnp.float32),
    )


def init_model(key):
    grid = IMG_SIZE // PATCH
    K = IN_CHANS * PATCH * PATCH
    hidden = int(EMBED_DIM * MLP_RATIO)
    dec_hidden = int(DEC_EMBED_DIM * MLP_RATIO)
    keys = jax.random.split(key, 6 + DEPTH + DEC_DEPTH)
    p = {}
    p["patch_w"] = xavier_uniform(keys[0], (K, EMBED_DIM), K, EMBED_DIM)
    kb = 1.0 / math.sqrt(K)
    p["patch_b"] = jax.random.uniform(keys[1], (1, EMBED_DIM), jnp.float32, -kb, kb)
    p["cls_token"] = 0.02 * jax.random.normal(keys[2], (1, 1, EMBED_DIM), jnp.float32)
    p["mask_token"] = 0.02 * jax.random.normal(keys[3], (1, 1, DEC_EMBED_DIM), jnp.float32)
    p["pos_embed"] = jnp.asarray(get_2d_sincos_pos_embed(EMBED_DIM, grid, True))[None]
    p["dec_pos_embed"] = jnp.asarray(get_2d_sincos_pos_embed(DEC_EMBED_DIM, grid, True))[None]
    p["blocks"] = [init_block(keys[4 + i], EMBED_DIM, hidden) for i in range(DEPTH)]
    p["norm_g"] = jnp.ones((1, EMBED_DIM), jnp.float32)
    p["norm_b"] = jnp.zeros((1, EMBED_DIM), jnp.float32)
    p["dec_embed_w"] = xavier_uniform(keys[4 + DEPTH], (EMBED_DIM, DEC_EMBED_DIM),
                                      EMBED_DIM, DEC_EMBED_DIM)
    p["dec_embed_b"] = jnp.zeros((1, DEC_EMBED_DIM), jnp.float32)
    p["dec_blocks"] = [init_block(keys[5 + DEPTH + i], DEC_EMBED_DIM, dec_hidden)
                       for i in range(DEC_DEPTH)]
    p["dec_norm_g"] = jnp.ones((1, DEC_EMBED_DIM), jnp.float32)
    p["dec_norm_b"] = jnp.zeros((1, DEC_EMBED_DIM), jnp.float32)
    P = PATCH * PATCH * IN_CHANS
    p["dec_pred_w"] = xavier_uniform(keys[5 + DEPTH + DEC_DEPTH], (DEC_EMBED_DIM, P),
                                     DEC_EMBED_DIM, P)
    p["dec_pred_b"] = jnp.zeros((1, P), jnp.float32)
    return p


# --------------------- weight stacking / vector coalescing --------------------
def _stack_block_params(blocks, dim, hidden):
    """Depth-stack block weights.

    Matrices stay full-width (head-major columns, as in timm's qkv layout) and
    are stored bf16; every (1, *) vector for a block is coalesced into one
    (depth, 10, hidden) f32 array (rows: ln1_g, ln1_b, bq, bk, bv, b_proj,
    ln2_g, ln2_b, b_fc1, b_fc2).
    """
    assert hidden >= dim
    bf16 = jnp.bfloat16
    wq = jnp.stack([b["w_qkv"][:, :dim] for b in blocks]).astype(bf16)
    wk = jnp.stack([b["w_qkv"][:, dim:2 * dim] for b in blocks]).astype(bf16)
    wv = jnp.stack([b["w_qkv"][:, 2 * dim:] for b in blocks]).astype(bf16)
    wp = jnp.stack([b["w_proj"] for b in blocks]).astype(bf16)
    w1 = jnp.stack([b["w_fc1"] for b in blocks]).astype(bf16)
    w2 = jnp.stack([b["w_fc2"] for b in blocks]).astype(bf16)

    def vec_pack(b):
        bqkv = b["b_qkv"].reshape(-1)
        rows = [b["ln1_g"], b["ln1_b"],
                bqkv[:dim], bqkv[dim:2 * dim], bqkv[2 * dim:],
                b["b_proj"], b["ln2_g"], b["ln2_b"],
                b["b_fc1"], b["b_fc2"]]
        rows = [jnp.pad(r.reshape(1, -1), ((0, 0), (0, hidden - r.size)))
                for r in rows]
        return jnp.concatenate(rows, axis=0)            # (10, hidden)

    vecs = jnp.stack([vec_pack(b) for b in blocks])      # (depth, 10, hidden)
    return [wq, wk, wv, wp, w1, w2, vecs]


# --------------------------------- forward ------------------------------------
def forward(params, imgs, key, mask_ratio=MASK_RATIO):
    N, C, H, W = imgs.shape
    ph = PATCH
    g = H // ph
    L = g * g
    K = C * ph * ph
    P = ph * ph * C
    D = EMBED_DIM
    Dd = DEC_EMBED_DIM
    hidden = int(EMBED_DIM * MLP_RATIO)
    dec_hidden = int(DEC_EMBED_DIM * MLP_RATIO)
    len_keep = int(L * (1 - mask_ratio))
    seq_e = len_keep + 1
    Lp1 = L + 1

    # ---- patchify (pure reshapes): conv ordering (C,p,p) for the embedding,
    #      reference patchify ordering (p,p,C) for the loss target.
    x6 = imgs.reshape(N, C, g, ph, g, ph)
    xpat = x6.transpose(0, 2, 4, 1, 3, 5).reshape(N, L, K)
    target = x6.transpose(0, 2, 4, 3, 5, 1).reshape(N, L, P)

    # ---- random masking (plain-JAX index glue)
    # TODO(synk): torch.rand RNG stream cannot be reproduced bit-exactly in JAX;
    # same algorithm, different pseudo-random draw.
    noise = jax.random.uniform(key, (N, L), jnp.float32)
    ids_shuffle = jnp.argsort(noise, axis=1)
    ids_restore = jnp.argsort(ids_shuffle, axis=1)
    ids_keep = ids_shuffle[:, :len_keep]
    mask = (ids_restore >= len_keep).astype(jnp.float32)            # (N, L)

    # ---- encoder input: kept patches with a leading zero "cls" row; the pos
    #      array carries patch_b for real rows and (cls_token + pos[0]) for
    #      the zero row, so the kernel needs no concat and no separate bias.
    xpat_keep = jnp.take_along_axis(xpat, ids_keep[:, :, None], axis=1)
    xk_full = jnp.concatenate([jnp.zeros((N, 1, K), jnp.float32), xpat_keep],
                              axis=1).astype(jnp.bfloat16)          # (N, seq_e, K)
    pos_tok = jnp.broadcast_to(params["pos_embed"][:, 1:, :], (N, L, D))
    pos_keep = jnp.take_along_axis(pos_tok, ids_keep[:, :, None], axis=1) \
        + params["patch_b"]
    cls_row = jnp.broadcast_to(params["cls_token"] + params["pos_embed"][:, :1, :],
                               (N, 1, D))
    pos_full = jnp.concatenate([cls_row, pos_keep], axis=1)          # (N, seq_e, D)

    # ---- decoder un-shuffle: (L+1, seq_e) selection matrix + additive term
    kept = ids_restore < len_keep                                    # (N, L)
    col = jnp.where(kept, ids_restore + 1, 0)
    onehot = jax.nn.one_hot(col, seq_e, dtype=jnp.float32) * kept[..., None]
    cls_sel = jnp.zeros((N, 1, seq_e), jnp.float32).at[:, 0, 0].set(1.0)
    restore_R = jnp.concatenate([cls_sel, onehot], axis=1)           # (N, Lp1, seq_e)
    mask_col = jnp.concatenate([jnp.zeros((N, 1), jnp.float32), mask], axis=1)
    dec_add = (params["dec_pos_embed"]
               + mask_col[:, :, None] * params["mask_token"].reshape(1, 1, Dd))
    dec_add = jnp.broadcast_to(dec_add, (N, Lp1, Dd))                # (N, Lp1, Dd)

    # ---- lane-dense loss target / mask (row 0 = cls row, masked out)
    tgt_full = jnp.concatenate(
        [jnp.zeros((N, 1, PAD), jnp.float32),
         jnp.pad(target, ((0, 0), (0, 0), (0, PAD - P)))], axis=1)   # (N, Lp1, PAD)
    mask_full = mask_col[:, :, None]                                  # (N, Lp1, 1)

    # ---- weights: bf16 matmuls, coalesced f32 vectors, lane-padded pred head
    patch_w = params["patch_w"].astype(jnp.bfloat16)
    enc = _stack_block_params(params["blocks"], D, hidden)
    dec = _stack_block_params(params["dec_blocks"], Dd, dec_hidden)
    dembed_w = params["dec_embed_w"].astype(jnp.bfloat16)
    pred_w_pad = jnp.pad(params["dec_pred_w"],
                         ((0, 0), (0, PAD - P))).astype(jnp.bfloat16)

    def padrow(v):
        v = v.reshape(1, -1)
        return jnp.pad(v, ((0, 0), (0, PAD - v.shape[1])))

    head_vec = jnp.concatenate(
        [padrow(params["norm_g"]), padrow(params["norm_b"]),
         padrow(params["dec_embed_b"]),
         padrow(params["dec_norm_g"]), padrow(params["dec_norm_b"]),
         padrow(params["dec_pred_b"])], axis=0)                       # (6, PAD)

    per_sample = [xk_full, pos_full, restore_R, dec_add, tgt_full, mask_full]
    rep_inputs = ([patch_w] + enc + [head_vec, dembed_w] + dec + [pred_w_pad])

    # VMEM scaling guard: all weights are resident with constant index maps
    # (<~100 KiB here).  If the config scales towards real MAE sizes, switch to
    # a depth grid axis that streams one block's weights per step.
    weight_bytes = sum(int(np.prod(a.shape)) * a.dtype.itemsize for a in rep_inputs)
    assert weight_bytes < 8 * 1024 * 1024, "stream weights per depth instead"

    def _sample_spec(a):
        nd = a.ndim
        return pl.BlockSpec((None,) + a.shape[1:],
                            lambda n, nd=nd: (n,) + (0,) * (nd - 1))

    def _rep_spec(a):
        nd = a.ndim
        return pl.BlockSpec(a.shape, lambda n, nd=nd: (0,) * nd)

    in_specs = [_sample_spec(a) for a in per_sample] + [_rep_spec(a) for a in rep_inputs]

    # mask.sum() == N*(L-len_keep) by construction of the argsort masking, so
    # the loss denominator and the 1/P mean are folded into one static scale.
    loss_scale = 1.0 / float(P * N * (L - len_keep))
    kernel = functools.partial(
        mae_forward_kernel, nh_enc=NUM_HEADS, nh_dec=DEC_NUM_HEADS,
        dim=D, dec_dim=Dd, p_dim=P, loss_scale=loss_scale)

    # One sample per grid step (B=1): with N=2 this keeps grid length >= 2 so
    # both v7x TensorCores get work; for larger N, batch N//2 samples per step.
    out = pl.pallas_call(
        kernel,
        out_shape=jax.ShapeDtypeStruct((N, Lp1, PAD), jnp.float32),
        grid=(N,),
        in_specs=in_specs,
        out_specs=pl.BlockSpec((None, Lp1, PAD), lambda n: (n, 0, 0)),
        compiler_params=pltpu.CompilerParams(dimension_semantics=("parallel",)),
    )(*(per_sample + rep_inputs))

    loss = jnp.sum(out[:, 0, P])          # per-sample partials (spare lane)
    pred = out[:, 1:, :P]                 # drop cls row, un-pad lanes
    return loss, pred, mask


# ----------------------------------- main --------------------------------------
if __name__ == "__main__":
    root = jax.random.PRNGKey(0)
    pkey, ikey, mkey = jax.random.split(root, 3)
    params = init_model(pkey)
    imgs = jax.random.normal(ikey, (2, IN_CHANS, IMG_SIZE, IMG_SIZE), jnp.float32)

    fwd = jax.jit(forward)
    loss, pred, mask = fwd(params, imgs, mkey)
    jax.block_until_ready((loss, pred, mask))

    assert pred.shape == (2, (IMG_SIZE // PATCH) ** 2, PATCH * PATCH * IN_CHANS)
    assert mask.shape == (2, (IMG_SIZE // PATCH) ** 2)
    assert loss.shape == ()
    assert bool(jnp.isfinite(loss))
    print("KERNEL_OK")
</pallas_src>

<mosaic_0001>
module attributes {stable_mosaic.version = 11 : i64} {
  func.func @mae_forward_kernel(%arg0: i32, %arg1: memref<1x5x48xbf16, #tpu.memory_space<vmem>>, %arg2: memref<1x5x32xf32, #tpu.memory_space<vmem>>, %arg3: memref<1x17x5xf32, #tpu.memory_space<vmem>>, %arg4: memref<1x17x32xf32, #tpu.memory_space<vmem>>, %arg5: memref<1x17x128xf32, #tpu.memory_space<vmem>>, %arg6: memref<1x17x1xf32, #tpu.memory_space<vmem>>, %arg7: memref<48x32xbf16, #tpu.memory_space<vmem>>, %arg8: memref<2x32x32xbf16, #tpu.memory_space<vmem>>, %arg9: memref<2x32x32xbf16, #tpu.memory_space<vmem>>, %arg10: memref<2x32x32xbf16, #tpu.memory_space<vmem>>, %arg11: memref<2x32x32xbf16, #tpu.memory_space<vmem>>, %arg12: memref<2x32x128xbf16, #tpu.memory_space<vmem>>, %arg13: memref<2x128x32xbf16, #tpu.memory_space<vmem>>, %arg14: memref<2x10x128xf32, #tpu.memory_space<vmem>>, %arg15: memref<6x128xf32, #tpu.memory_space<vmem>>, %arg16: memref<32x32xbf16, #tpu.memory_space<vmem>>, %arg17: memref<1x32x32xbf16, #tpu.memory_space<vmem>>, %arg18: memref<1x32x32xbf16, #tpu.memory_space<vmem>>, %arg19: memref<1x32x32xbf16, #tpu.memory_space<vmem>>, %arg20: memref<1x32x32xbf16, #tpu.memory_space<vmem>>, %arg21: memref<1x32x128xbf16, #tpu.memory_space<vmem>>, %arg22: memref<1x128x32xbf16, #tpu.memory_space<vmem>>, %arg23: memref<1x10x128xf32, #tpu.memory_space<vmem>>, %arg24: memref<32x128xbf16, #tpu.memory_space<vmem>>, %arg25: memref<1x17x128xf32, #tpu.memory_space<vmem>>) attributes {dimension_semantics = [#tpu.dimension_semantics<parallel>], iteration_bounds = array<i64: 2>, scalar_prefetch = 0 : i64, scratch_operands = 0 : i64, tpu.core_type = #tpu.core_type<tc>, window_params = [{transform_indices = @transform_0, window_bounds = array<i64: 1, 5, 48>}, {transform_indices = @transform_1, window_bounds = array<i64: 1, 5, 32>}, {transform_indices = @transform_2, window_bounds = array<i64: 1, 17, 5>}, {transform_indices = @transform_3, window_bounds = array<i64: 1, 17, 32>}, {transform_indices = @transform_4, window_bounds = array<i64: 1, 17, 128>}, {transform_indices = @transform_5, window_bounds = array<i64: 1, 17, 1>}, {pipeline_mode = #tpu.pipeline_mode<synchronous>, transform_indices = @transform_6, window_bounds = array<i64: 48, 32>}, {pipeline_mode = #tpu.pipeline_mode<synchronous>, transform_indices = @transform_7, window_bounds = array<i64: 2, 32, 32>}, {pipeline_mode = #tpu.pipeline_mode<synchronous>, transform_indices = @transform_8, window_bounds = array<i64: 2, 32, 32>}, {pipeline_mode = #tpu.pipeline_mode<synchronous>, transform_indices = @transform_9, window_bounds = array<i64: 2, 32, 32>}, {pipeline_mode = #tpu.pipeline_mode<synchronous>, transform_indices = @transform_10, window_bounds = array<i64: 2, 32, 32>}, {pipeline_mode = #tpu.pipeline_mode<synchronous>, transform_indices = @transform_11, window_bounds = array<i64: 2, 32, 128>}, {pipeline_mode = #tpu.pipeline_mode<synchronous>, transform_indices = @transform_12, window_bounds = array<i64: 2, 128, 32>}, {pipeline_mode = #tpu.pipeline_mode<synchronous>, transform_indices = @transform_13, window_bounds = array<i64: 2, 10, 128>}, {pipeline_mode = #tpu.pipeline_mode<synchronous>, transform_indices = @transform_14, window_bounds = array<i64: 6, 128>}, {pipeline_mode = #tpu.pipeline_mode<synchronous>, transform_indices = @transform_15, window_bounds = array<i64: 32, 32>}, {pipeline_mode = #tpu.pipeline_mode<synchronous>, transform_indices = @transform_16, window_bounds = array<i64: 1, 32, 32>}, {pipeline_mode = #tpu.pipeline_mode<synchronous>, transform_indices = @transform_17, window_bounds = array<i64: 1, 32, 32>}, {pipeline_mode = #tpu.pipeline_mode<synchronous>, transform_indices = @transform_18, window_bounds = array<i64: 1, 32, 32>}, {pipeline_mode = #tpu.pipeline_mode<synchronous>, transform_indices = @transform_19, window_bounds = array<i64: 1, 32, 32>}, {pipeline_mode = #tpu.pipeline_mode<synchronous>, transform_indices = @transform_20, window_bounds = array<i64: 1, 32, 128>}, {pipeline_mode = #tpu.pipeline_mode<synchronous>, transform_indices = @transform_21, window_bounds = array<i64: 1, 128, 32>}, {pipeline_mode = #tpu.pipeline_mode<synchronous>, transform_indices = @transform_22, window_bounds = array<i64: 1, 10, 128>}, {pipeline_mode = #tpu.pipeline_mode<synchronous>, transform_indices = @transform_23, window_bounds = array<i64: 32, 128>}, {transform_indices = @transform_24, window_bounds = array<i64: 1, 17, 128>}]} {
    %c0 = arith.constant 0 : index
    %c0_0 = arith.constant 0 : index
    %0 = vector.load %arg15[%c0, %c0_0] : memref<6x128xf32, #tpu.memory_space<vmem>>, vector<6x128xf32>
    %c0_1 = arith.constant 0 : index
    %c0_2 = arith.constant 0 : index
    %c0_3 = arith.constant 0 : index
    %1 = vector.load %arg1[%c0_1, %c0_2, %c0_3] : memref<1x5x48xbf16, #tpu.memory_space<vmem>>, vector<1x5x48xbf16>
    %2 = vector.shape_cast %1 : vector<1x5x48xbf16> to vector<5x48xbf16>
    %c0_4 = arith.constant 0 : index
    %c0_5 = arith.constant 0 : index
    %3 = vector.load %arg7[%c0_4, %c0_5] : memref<48x32xbf16, #tpu.memory_space<vmem>>, vector<48x32xbf16>
    %cst = arith.constant dense<0.000000e+00> : vector<5x32xf32>
    %4 = tpu.matmul %2, %3, %cst {dimension_numbers = #tpu.dot_dimension_numbers<[1], [0], [0], [1], [0, 0, 1, 1], [], []>} : vector<5x48xbf16>, vector<48x32xbf16>, vector<5x32xf32> -> vector<5x32xf32>
    %c0_6 = arith.constant 0 : index
    %c0_7 = arith.constant 0 : index
    %c0_8 = arith.constant 0 : index
    %5 = vector.load %arg2[%c0_6, %c0_7, %c0_8] : memref<1x5x32xf32, #tpu.memory_space<vmem>>, vector<1x5x32xf32>
    %6 = vector.shape_cast %5 : vector<1x5x32xf32> to vector<5x32xf32>
    %7 = arith.addf %4, %6 : vector<5x32xf32>
    %c0_9 = arith.constant 0 : index
    %c0_10 = arith.constant 0 : index
    %c0_11 = arith.constant 0 : index
    %8 = vector.load %arg14[%c0_9, %c0_10, %c0_11] : memref<2x10x128xf32, #tpu.memory_space<vmem>>, vector<1x10x128xf32>
    %9 = vector.shape_cast %8 : vector<1x10x128xf32> to vector<10x128xf32>
    %10 = vector.extract_strided_slice %9 {offsets = [0, 0], sizes = [1, 32], strides = [1, 1]} : vector<10x128xf32> to vector<1x32xf32>
    %11 = vector.extract_strided_slice %9 {offsets = [1, 0], sizes = [1, 32], strides = [1, 1]} : vector<10x128xf32> to vector<1x32xf32>
    %cst_12 = arith.constant dense<0.000000e+00> : vector<5xf32>
    %12 = vector.multi_reduction <add>, %7, %cst_12 [1] : vector<5x32xf32> to vector<5xf32>
    %13 = vector.shape_cast %12 : vector<5xf32> to vector<5x1xf32>
    %cst_13 = arith.constant 3.200000e+01 : f32
    %14 = vector.broadcast %cst_13 : f32 to vector<5x1xf32>
    %15 = arith.divf %13, %14 : vector<5x1xf32>
    %16 = vector.broadcast %15 : vector<5x1xf32> to vector<5x32xf32>
    %17 = arith.subf %7, %16 : vector<5x32xf32>
    %18 = arith.mulf %17, %17 : vector<5x32xf32>
    %cst_14 = arith.constant dense<0.000000e+00> : vector<5xf32>
    %19 = vector.multi_reduction <add>, %18, %cst_14 [1] : vector<5x32xf32> to vector<5xf32>
    %20 = vector.shape_cast %19 : vector<5xf32> to vector<5x1xf32>
    %cst_15 = arith.constant 3.200000e+01 : f32
    %21 = vector.broadcast %cst_15 : f32 to vector<5x1xf32>
    %22 = arith.divf %20, %21 : vector<5x1xf32>
    %23 = vector.broadcast %15 : vector<5x1xf32> to vector<5x32xf32>
    %24 = arith.subf %7, %23 : vector<5x32xf32>
    %cst_16 = arith.constant 9.99999974E-6 : f32
    %25 = vector.broadcast %cst_16 : f32 to vector<5x1xf32>
    %26 = arith.addf %22, %25 : vector<5x1xf32>
    %27 = math.rsqrt %26 : vector<5x1xf32>
    %28 = vector.broadcast %27 : vector<5x1xf32> to vector<5x32xf32>
    %29 = arith.mulf %24, %28 : vector<5x32xf32>
    %30 = vector.broadcast %10 : vector<1x32xf32> to vector<5x32xf32>
    %31 = arith.mulf %29, %30 : vector<5x32xf32>
    %32 = vector.broadcast %11 : vector<1x32xf32> to vector<5x32xf32>
    %33 = arith.addf %31, %32 : vector<5x32xf32>
    %34 = arith.truncf %33 : vector<5x32xf32> to vector<5x32xbf16>
    %c0_17 = arith.constant 0 : index
    %c0_18 = arith.constant 0 : index
    %c0_19 = arith.constant 0 : index
    %35 = vector.load %arg8[%c0_17, %c0_18, %c0_19] : memref<2x32x32xbf16, #tpu.memory_space<vmem>>, vector<1x32x32xbf16>
    %36 = vector.shape_cast %35 : vector<1x32x32xbf16> to vector<32x32xbf16>
    %cst_20 = arith.constant dense<0.000000e+00> : vector<5x32xf32>
    %37 = tpu.matmul %34, %36, %cst_20 {dimension_numbers = #tpu.dot_dimension_numbers<[1], [0], [0], [1], [0, 0, 1, 1], [], []>} : vector<5x32xbf16>, vector<32x32xbf16>, vector<5x32xf32> -> vector<5x32xf32>
    %38 = vector.extract_strided_slice %9 {offsets = [2, 0], sizes = [1, 32], strides = [1, 1]} : vector<10x128xf32> to vector<1x32xf32>
    %39 = vector.broadcast %38 : vector<1x32xf32> to vector<5x32xf32>
    %40 = arith.addf %37, %39 : vector<5x32xf32>
    %c0_21 = arith.constant 0 : index
    %c0_22 = arith.constant 0 : index
    %c0_23 = arith.constant 0 : index
    %41 = vector.load %arg9[%c0_21, %c0_22, %c0_23] : memref<2x32x32xbf16, #tpu.memory_space<vmem>>, vector<1x32x32xbf16>
    %42 = vector.shape_cast %41 : vector<1x32x32xbf16> to vector<32x32xbf16>
    %cst_24 = arith.constant dense<0.000000e+00> : vector<5x32xf32>
    %43 = tpu.matmul %34, %42, %cst_24 {dimension_numbers = #tpu.dot_dimension_numbers<[1], [0], [0], [1], [0, 0, 1, 1], [], []>} : vector<5x32xbf16>, vector<32x32xbf16>, vector<5x32xf32> -> vector<5x32xf32>
    %44 = vector.extract_strided_slice %9 {offsets = [3, 0], sizes = [1, 32], strides = [1, 1]} : vector<10x128xf32> to vector<1x32xf32>
    %45 = vector.broadcast %44 : vector<1x32xf32> to vector<5x32xf32>
    %46 = arith.addf %43, %45 : vector<5x32xf32>
    %c0_25 = arith.constant 0 : index
    %c0_26 = arith.constant 0 : index
    %c0_27 = arith.constant 0 : index
    %47 = vector.load %arg10[%c0_25, %c0_26, %c0_27] : memref<2x32x32xbf16, #tpu.memory_space<vmem>>, vector<1x32x32xbf16>
    %48 = vector.shape_cast %47 : vector<1x32x32xbf16> to vector<32x32xbf16>
    %cst_28 = arith.constant dense<0.000000e+00> : vector<5x32xf32>
    %49 = tpu.matmul %34, %48, %cst_28 {dimension_numbers = #tpu.dot_dimension_numbers<[1], [0], [0], [1], [0, 0, 1, 1], [], []>} : vector<5x32xbf16>, vector<32x32xbf16>, vector<5x32xf32> -> vector<5x32xf32>
    %50 = vector.extract_strided_slice %9 {offsets = [4, 0], sizes = [1, 32], strides = [1, 1]} : vector<10x128xf32> to vector<1x32xf32>
    %51 = vector.broadcast %50 : vector<1x32xf32> to vector<5x32xf32>
    %52 = arith.addf %49, %51 : vector<5x32xf32>
    %53 = vector.extract_strided_slice %40 {offsets = [0, 0], sizes = [5, 8], strides = [1, 1]} : vector<5x32xf32> to vector<5x8xf32>
    %54 = vector.extract_strided_slice %46 {offsets = [0, 0], sizes = [5, 8], strides = [1, 1]} : vector<5x32xf32> to vector<5x8xf32>
    %55 = vector.extract_strided_slice %52 {offsets = [0, 0], sizes = [5, 8], strides = [1, 1]} : vector<5x32xf32> to vector<5x8xf32>
    %cst_29 = arith.constant dense<0.000000e+00> : vector<5x5xf32>
    %56 = tpu.matmul %53, %54, %cst_29 {dimension_numbers = #tpu.dot_dimension_numbers<[1], [1], [0], [0], [0, 0, 1, 0], [], []>} : vector<5x8xf32>, vector<5x8xf32>, vector<5x5xf32> -> vector<5x5xf32>
    %cst_30 = arith.constant 0.353553385 : f32
    %57 = vector.broadcast %cst_30 : f32 to vector<5x5xf32>
    %58 = arith.mulf %56, %57 : vector<5x5xf32>
    %cst_31 = arith.constant dense<0xFF800000> : vector<5xf32>
    %59 = vector.multi_reduction <maximumf>, %58, %cst_31 [1] : vector<5x5xf32> to vector<5xf32>
    %60 = vector.shape_cast %59 : vector<5xf32> to vector<5x1xf32>
    %61 = vector.broadcast %60 : vector<5x1xf32> to vector<5x5xf32>
    %62 = arith.subf %58, %61 : vector<5x5xf32>
    %63 = math.exp %62 : vector<5x5xf32>
    %cst_32 = arith.constant dense<0.000000e+00> : vector<5xf32>
    %64 = vector.multi_reduction <add>, %63, %cst_32 [1] : vector<5x5xf32> to vector<5xf32>
    %65 = vector.shape_cast %64 : vector<5xf32> to vector<5x1xf32>
    %66 = tpu.reciprocal %65 {approx = true} : vector<5x1xf32> -> vector<5x1xf32>
    %67 = vector.broadcast %66 : vector<5x1xf32> to vector<5x5xf32>
    %68 = arith.mulf %63, %67 : vector<5x5xf32>
    %cst_33 = arith.constant dense<0.000000e+00> : vector<5x8xf32>
    %69 = tpu.matmul %68, %55, %cst_33 {dimension_numbers = #tpu.dot_dimension_numbers<[1], [0], [0], [1], [0, 0, 1, 1], [], []>} : vector<5x5xf32>, vector<5x8xf32>, vector<5x8xf32> -> vector<5x8xf32>
    %70 = vector.extract_strided_slice %40 {offsets = [0, 8], sizes = [5, 8], strides = [1, 1]} : vector<5x32xf32> to vector<5x8xf32>
    %71 = vector.extract_strided_slice %46 {offsets = [0, 8], sizes = [5, 8], strides = [1, 1]} : vector<5x32xf32> to vector<5x8xf32>
    %72 = vector.extract_strided_slice %52 {offsets = [0, 8], sizes = [5, 8], strides = [1, 1]} : vector<5x32xf32> to vector<5x8xf32>
    %cst_34 = arith.constant dense<0.000000e+00> : vector<5x5xf32>
    %73 = tpu.matmul %70, %71, %cst_34 {dimension_numbers = #tpu.dot_dimension_numbers<[1], [1], [0], [0], [0, 0, 1, 0], [], []>} : vector<5x8xf32>, vector<5x8xf32>, vector<5x5xf32> -> vector<5x5xf32>
    %cst_35 = arith.constant 0.353553385 : f32
    %74 = vector.broadcast %cst_35 : f32 to vector<5x5xf32>
    %75 = arith.mulf %73, %74 : vector<5x5xf32>
    %cst_36 = arith.constant dense<0xFF800000> : vector<5xf32>
    %76 = vector.multi_reduction <maximumf>, %75, %cst_36 [1] : vector<5x5xf32> to vector<5xf32>
    %77 = vector.shape_cast %76 : vector<5xf32> to vector<5x1xf32>
    %78 = vector.broadcast %77 : vector<5x1xf32> to vector<5x5xf32>
    %79 = arith.subf %75, %78 : vector<5x5xf32>
    %80 = math.exp %79 : vector<5x5xf32>
    %cst_37 = arith.constant dense<0.000000e+00> : vector<5xf32>
    %81 = vector.multi_reduction <add>, %80, %cst_37 [1] : vector<5x5xf32> to vector<5xf32>
    %82 = vector.shape_cast %81 : vector<5xf32> to vector<5x1xf32>
    %83 = tpu.reciprocal %82 {approx = true} : vector<5x1xf32> -> vector<5x1xf32>
    %84 = vector.broadcast %83 : vector<5x1xf32> to vector<5x5xf32>
    %85 = arith.mulf %80, %84 : vector<5x5xf32>
    %cst_38 = arith.constant dense<0.000000e+00> : vector<5x8xf32>
    %86 = tpu.matmul %85, %72, %cst_38 {dimension_numbers = #tpu.dot_dimension_numbers<[1], [0], [0], [1], [0, 0, 1, 1], [], []>} : vector<5x5xf32>, vector<5x8xf32>, vector<5x8xf32> -> vector<5x8xf32>
    %87 = vector.extract_strided_slice %40 {offsets = [0, 16], sizes = [5, 8], strides = [1, 1]} : vector<5x32xf32> to vector<5x8xf32>
    %88 = vector.extract_strided_slice %46 {offsets = [0, 16], sizes = [5, 8], strides = [1, 1]} : vector<5x32xf32> to vector<5x8xf32>
    %89 = vector.extract_strided_slice %52 {offsets = [0, 16], sizes = [5, 8], strides = [1, 1]} : vector<5x32xf32> to vector<5x8xf32>
    %cst_39 = arith.constant dense<0.000000e+00> : vector<5x5xf32>
    %90 = tpu.matmul %87, %88, %cst_39 {dimension_numbers = #tpu.dot_dimension_numbers<[1], [1], [0], [0], [0, 0, 1, 0], [], []>} : vector<5x8xf32>, vector<5x8xf32>, vector<5x5xf32> -> vector<5x5xf32>
    %cst_40 = arith.constant 0.353553385 : f32
    %91 = vector.broadcast %cst_40 : f32 to vector<5x5xf32>
    %92 = arith.mulf %90, %91 : vector<5x5xf32>
    %cst_41 = arith.constant dense<0xFF800000> : vector<5xf32>
    %93 = vector.multi_reduction <maximumf>, %92, %cst_41 [1] : vector<5x5xf32> to vector<5xf32>
    %94 = vector.shape_cast %93 : vector<5xf32> to vector<5x1xf32>
    %95 = vector.broadcast %94 : vector<5x1xf32> to vector<5x5xf32>
    %96 = arith.subf %92, %95 : vector<5x5xf32>
    %97 = math.exp %96 : vector<5x5xf32>
    %cst_42 = arith.constant dense<0.000000e+00> : vector<5xf32>
    %98 = vector.multi_reduction <add>, %97, %cst_42 [1] : vector<5x5xf32> to vector<5xf32>
    %99 = vector.shape_cast %98 : vector<5xf32> to vector<5x1xf32>
    %100 = tpu.reciprocal %99 {approx = true} : vector<5x1xf32> -> vector<5x1xf32>
    %101 = vector.broadcast %100 : vector<5x1xf32> to vector<5x5xf32>
    %102 = arith.mulf %97, %101 : vector<5x5xf32>
    %cst_43 = arith.constant dense<0.000000e+00> : vector<5x8xf32>
    %103 = tpu.matmul %102, %89, %cst_43 {dimension_numbers = #tpu.dot_dimension_numbers<[1], [0], [0], [1], [0, 0, 1, 1], [], []>} : vector<5x5xf32>, vector<5x8xf32>, vector<5x8xf32> -> vector<5x8xf32>
    %104 = vector.extract_strided_slice %40 {offsets = [0, 24], sizes = [5, 8], strides = [1, 1]} : vector<5x32xf32> to vector<5x8xf32>
    %105 = vector.extract_strided_slice %46 {offsets = [0, 24], sizes = [5, 8], strides = [1, 1]} : vector<5x32xf32> to vector<5x8xf32>
    %106 = vector.extract_strided_slice %52 {offsets = [0, 24], sizes = [5, 8], strides = [1, 1]} : vector<5x32xf32> to vector<5x8xf32>
    %cst_44 = arith.constant dense<0.000000e+00> : vector<5x5xf32>
    %107 = tpu.matmul %104, %105, %cst_44 {dimension_numbers = #tpu.dot_dimension_numbers<[1], [1], [0], [0], [0, 0, 1, 0], [], []>} : vector<5x8xf32>, vector<5x8xf32>, vector<5x5xf32> -> vector<5x5xf32>
    %cst_45 = arith.constant 0.353553385 : f32
    %108 = vector.broadcast %cst_45 : f32 to vector<5x5xf32>
    %109 = arith.mulf %107, %108 : vector<5x5xf32>
    %cst_46 = arith.constant dense<0xFF800000> : vector<5xf32>
    %110 = vector.multi_reduction <maximumf>, %109, %cst_46 [1] : vector<5x5xf32> to vector<5xf32>
    %111 = vector.shape_cast %110 : vector<5xf32> to vector<5x1xf32>
    %112 = vector.broadcast %111 : vector<5x1xf32> to vector<5x5xf32>
    %113 = arith.subf %109, %112 : vector<5x5xf32>
    %114 = math.exp %113 : vector<5x5xf32>
    %cst_47 = arith.constant dense<0.000000e+00> : vector<5xf32>
    %115 = vector.multi_reduction <add>, %114, %cst_47 [1] : vector<5x5xf32> to vector<5xf32>
    %116 = vector.shape_cast %115 : vector<5xf32> to vector<5x1xf32>
    %117 = tpu.reciprocal %116 {approx = true} : vector<5x1xf32> -> vector<5x1xf32>
    %118 = vector.broadcast %117 : vector<5x1xf32> to vector<5x5xf32>
    %119 = arith.mulf %114, %118 : vector<5x5xf32>
    %cst_48 = arith.constant dense<0.000000e+00> : vector<5x8xf32>
    %120 = tpu.matmul %119, %106, %cst_48 {dimension_numbers = #tpu.dot_dimension_numbers<[1], [0], [0], [1], [0, 0, 1, 1], [], []>} : vector<5x5xf32>, vector<5x8xf32>, vector<5x8xf32> -> vector<5x8xf32>
    %121 = tpu.concatenate %69, %86, %103, %120 in 1 : vector<5x8xf32>, vector<5x8xf32>, vector<5x8xf32>, vector<5x8xf32> -> vector<5x32xf32>
    %122 = arith.truncf %121 : vector<5x32xf32> to vector<5x32xbf16>
    %c0_49 = arith.constant 0 : index
    %c0_50 = arith.constant 0 : index
    %c0_51 = arith.constant 0 : index
    %123 = vector.load %arg11[%c0_49, %c0_50, %c0_51] : memref<2x32x32xbf16, #tpu.memory_space<vmem>>, vector<1x32x32xbf16>
    %124 = vector.shape_cast %123 : vector<1x32x32xbf16> to vector<32x32xbf16>
    %cst_52 = arith.constant dense<0.000000e+00> : vector<5x32xf32>
    %125 = tpu.matmul %122, %124, %cst_52 {dimension_numbers = #tpu.dot_dimension_numbers<[1], [0], [0], [1], [0, 0, 1, 1], [], []>} : vector<5x32xbf16>, vector<32x32xbf16>, vector<5x32xf32> -> vector<5x32xf32>
    %126 = vector.extract_strided_slice %9 {offsets = [5, 0], sizes = [1, 32], strides = [1, 1]} : vector<10x128xf32> to vector<1x32xf32>
    %127 = vector.broadcast %126 : vector<1x32xf32> to vector<5x32xf32>
    %128 = arith.addf %125, %127 : vector<5x32xf32>
    %129 = arith.addf %7, %128 : vector<5x32xf32>
    %130 = vector.extract_strided_slice %9 {offsets = [6, 0], sizes = [1, 32], strides = [1, 1]} : vector<10x128xf32> to vector<1x32xf32>
    %131 = vector.extract_strided_slice %9 {offsets = [7, 0], sizes = [1, 32], strides = [1, 1]} : vector<10x128xf32> to vector<1x32xf32>
    %cst_53 = arith.constant dense<0.000000e+00> : vector<5xf32>
    %132 = vector.multi_reduction <add>, %129, %cst_53 [1] : vector<5x32xf32> to vector<5xf32>
    %133 = vector.shape_cast %132 : vector<5xf32> to vector<5x1xf32>
    %cst_54 = arith.constant 3.200000e+01 : f32
    %134 = vector.broadcast %cst_54 : f32 to vector<5x1xf32>
    %135 = arith.divf %133, %134 : vector<5x1xf32>
    %136 = vector.broadcast %135 : vector<5x1xf32> to vector<5x32xf32>
    %137 = arith.subf %129, %136 : vector<5x32xf32>
    %138 = arith.mulf %137, %137 : vector<5x32xf32>
    %cst_55 = arith.constant dense<0.000000e+00> : vector<5xf32>
    %139 = vector.multi_reduction <add>, %138, %cst_55 [1] : vector<5x32xf32> to vector<5xf32>
    %140 = vector.shape_cast %139 : vector<5xf32> to vector<5x1xf32>
    %cst_56 = arith.constant 3.200000e+01 : f32
    %141 = vector.broadcast %cst_56 : f32 to vector<5x1xf32>
    %142 = arith.divf %140, %141 : vector<5x1xf32>
    %143 = vector.broadcast %135 : vector<5x1xf32> to vector<5x32xf32>
    %144 = arith.subf %129, %143 : vector<5x32xf32>
    %cst_57 = arith.constant 9.99999974E-6 : f32
    %145 = vector.broadcast %cst_57 : f32 to vector<5x1xf32>
    %146 = arith.addf %142, %145 : vector<5x1xf32>
    %147 = math.rsqrt %146 : vector<5x1xf32>
    %148 = vector.broadcast %147 : vector<5x1xf32> to vector<5x32xf32>
    %149 = arith.mulf %144, %148 : vector<5x32xf32>
    %150 = vector.broadcast %130 : vector<1x32xf32> to vector<5x32xf32>
    %151 = arith.mulf %149, %150 : vector<5x32xf32>
    %152 = vector.broadcast %131 : vector<1x32xf32> to vector<5x32xf32>
    %153 = arith.addf %151, %152 : vector<5x32xf32>
    %154 = arith.truncf %153 : vector<5x32xf32> to vector<5x32xbf16>
    %c0_58 = arith.constant 0 : index
    %c0_59 = arith.constant 0 : index
    %c0_60 = arith.constant 0 : index
    %155 = vector.load %arg12[%c0_58, %c0_59, %c0_60] : memref<2x32x128xbf16, #tpu.memory_space<vmem>>, vector<1x32x128xbf16>
    %156 = vector.shape_cast %155 : vector<1x32x128xbf16> to vector<32x128xbf16>
    %cst_61 = arith.constant dense<0.000000e+00> : vector<5x128xf32>
    %157 = tpu.matmul %154, %156, %cst_61 {dimension_numbers = #tpu.dot_dimension_numbers<[1], [0], [0], [1], [0, 0, 1, 1], [], []>} : vector<5x32xbf16>, vector<32x128xbf16>, vector<5x128xf32> -> vector<5x128xf32>
    %158 = vector.extract_strided_slice %9 {offsets = [8, 0], sizes = [1, 128], strides = [1, 1]} : vector<10x128xf32> to vector<1x128xf32>
    %159 = vector.broadcast %158 : vector<1x128xf32> to vector<5x128xf32>
    %160 = arith.addf %157, %159 : vector<5x128xf32>
    %cst_62 = arith.constant 5.000000e-01 : f32
    %161 = vector.broadcast %cst_62 : f32 to vector<5x128xf32>
    %162 = arith.mulf %161, %160 : vector<5x128xf32>
    %cst_63 = arith.constant 4.471500e-02 : f32
    %163 = vector.broadcast %cst_63 : f32 to vector<5x128xf32>
    %164 = arith.mulf %163, %160 : vector<5x128xf32>
    %165 = arith.mulf %164, %160 : vector<5x128xf32>
    %166 = arith.mulf %165, %160 : vector<5x128xf32>
    %167 = arith.addf %160, %166 : vector<5x128xf32>
    %cst_64 = arith.constant 0.797884583 : f32
    %168 = vector.broadcast %cst_64 : f32 to vector<5x128xf32>
    %169 = arith.mulf %168, %167 : vector<5x128xf32>
    %170 = math.tanh %169 : vector<5x128xf32>
    %cst_65 = arith.constant 1.000000e+00 : f32
    %171 = vector.broadcast %cst_65 : f32 to vector<5x128xf32>
    %172 = arith.addf %171, %170 : vector<5x128xf32>
    %173 = arith.mulf %162, %172 : vector<5x128xf32>
    %174 = arith.truncf %173 : vector<5x128xf32> to vector<5x128xbf16>
    %c0_66 = arith.constant 0 : index
    %c0_67 = arith.constant 0 : index
    %c0_68 = arith.constant 0 : index
    %175 = vector.load %arg13[%c0_66, %c0_67, %c0_68] : memref<2x128x32xbf16, #tpu.memory_space<vmem>>, vector<1x128x32xbf16>
    %176 = vector.shape_cast %175 : vector<1x128x32xbf16> to vector<128x32xbf16>
    %cst_69 = arith.constant dense<0.000000e+00> : vector<5x32xf32>
    %177 = tpu.matmul %174, %176, %cst_69 {dimension_numbers = #tpu.dot_dimension_numbers<[1], [0], [0], [1], [0, 0, 1, 1], [], []>} : vector<5x128xbf16>, vector<128x32xbf16>, vector<5x32xf32> -> vector<5x32xf32>
    %178 = vector.extract_strided_slice %9 {offsets = [9, 0], sizes = [1, 32], strides = [1, 1]} : vector<10x128xf32> to vector<1x32xf32>
    %179 = vector.broadcast %178 : vector<1x32xf32> to vector<5x32xf32>
    %180 = arith.addf %177, %179 : vector<5x32xf32>
    %181 = arith.addf %129, %180 : vector<5x32xf32>
    %c1 = arith.constant 1 : index
    %c0_70 = arith.constant 0 : index
    %c0_71 = arith.constant 0 : index
    %182 = vector.load %arg14[%c1, %c0_70, %c0_71] : memref<2x10x128xf32, #tpu.memory_space<vmem>>, vector<1x10x128xf32>
    %183 = vector.shape_cast %182 : vector<1x10x128xf32> to vector<10x128xf32>
    %184 = vector.extract_strided_slice %183 {offsets = [0, 0], sizes = [1, 32], strides = [1, 1]} : vector<10x128xf32> to vector<1x32xf32>
    %185 = vector.extract_strided_slice %183 {offsets = [1, 0], sizes = [1, 32], strides = [1, 1]} : vector<10x128xf32> to vector<1x32xf32>
    %cst_72 = arith.constant dense<0.000000e+00> : vector<5xf32>
    %186 = vector.multi_reduction <add>, %181, %cst_72 [1] : vector<5x32xf32> to vector<5xf32>
    %187 = vector.shape_cast %186 : vector<5xf32> to vector<5x1xf32>
    %cst_73 = arith.constant 3.200000e+01 : f32
    %188 = vector.broadcast %cst_73 : f32 to vector<5x1xf32>
    %189 = arith.divf %187, %188 : vector<5x1xf32>
    %190 = vector.broadcast %189 : vector<5x1xf32> to vector<5x32xf32>
    %191 = arith.subf %181, %190 : vector<5x32xf32>
    %192 = arith.mulf %191, %191 : vector<5x32xf32>
    %cst_74 = arith.constant dense<0.000000e+00> : vector<5xf32>
    %193 = vector.multi_reduction <add>, %192, %cst_74 [1] : vector<5x32xf32> to vector<5xf32>
    %194 = vector.shape_cast %193 : vector<5xf32> to vector<5x1xf32>
    %cst_75 = arith.constant 3.200000e+01 : f32
    %195 = vector.broadcast %cst_75 : f32 to vector<5x1xf32>
    %196 = arith.divf %194, %195 : vector<5x1xf32>
    %197 = vector.broadcast %189 : vector<5x1xf32> to vector<5x32xf32>
    %198 = arith.subf %181, %197 : vector<5x32xf32>
    %cst_76 = arith.constant 9.99999974E-6 : f32
    %199 = vector.broadcast %cst_76 : f32 to vector<5x1xf32>
    %200 = arith.addf %196, %199 : vector<5x1xf32>
    %201 = math.rsqrt %200 : vector<5x1xf32>
    %202 = vector.broadcast %201 : vector<5x1xf32> to vector<5x32xf32>
    %203 = arith.mulf %198, %202 : vector<5x32xf32>
    %204 = vector.broadcast %184 : vector<1x32xf32> to vector<5x32xf32>
    %205 = arith.mulf %203, %204 : vector<5x32xf32>
    %206 = vector.broadcast %185 : vector<1x32xf32> to vector<5x32xf32>
    %207 = arith.addf %205, %206 : vector<5x32xf32>
    %208 = arith.truncf %207 : vector<5x32xf32> to vector<5x32xbf16>
    %c1_77 = arith.constant 1 : index
    %c0_78 = arith.constant 0 : index
    %c0_79 = arith.constant 0 : index
    %209 = vector.load %arg8[%c1_77, %c0_78, %c0_79] : memref<2x32x32xbf16, #tpu.memory_space<vmem>>, vector<1x32x32xbf16>
    %210 = vector.shape_cast %209 : vector<1x32x32xbf16> to vector<32x32xbf16>
    %cst_80 = arith.constant dense<0.000000e+00> : vector<5x32xf32>
    %211 = tpu.matmul %208, %210, %cst_80 {dimension_numbers = #tpu.dot_dimension_numbers<[1], [0], [0], [1], [0, 0, 1, 1], [], []>} : vector<5x32xbf16>, vector<32x32xbf16>, vector<5x32xf32> -> vector<5x32xf32>
    %212 = vector.extract_strided_slice %183 {offsets = [2, 0], sizes = [1, 32], strides = [1, 1]} : vector<10x128xf32> to vector<1x32xf32>
    %213 = vector.broadcast %212 : vector<1x32xf32> to vector<5x32xf32>
    %214 = arith.addf %211, %213 : vector<5x32xf32>
    %c1_81 = arith.constant 1 : index
    %c0_82 = arith.constant 0 : index
    %c0_83 = arith.constant 0 : index
    %215 = vector.load %arg9[%c1_81, %c0_82, %c0_83] : memref<2x32x32xbf16, #tpu.memory_space<vmem>>, vector<1x32x32xbf16>
    %216 = vector.shape_cast %215 : vector<1x32x32xbf16> to vector<32x32xbf16>
    %cst_84 = arith.constant dense<0.000000e+00> : vector<5x32xf32>
    %217 = tpu.matmul %208, %216, %cst_84 {dimension_numbers = #tpu.dot_dimension_numbers<[1], [0], [0], [1], [0, 0, 1, 1], [], []>} : vector<5x32xbf16>, vector<32x32xbf16>, vector<5x32xf32> -> vector<5x32xf32>
    %218 = vector.extract_strided_slice %183 {offsets = [3, 0], sizes = [1, 32], strides = [1, 1]} : vector<10x128xf32> to vector<1x32xf32>
    %219 = vector.broadcast %218 : vector<1x32xf32> to vector<5x32xf32>
    %220 = arith.addf %217, %219 : vector<5x32xf32>
    %c1_85 = arith.constant 1 : index
    %c0_86 = arith.constant 0 : index
    %c0_87 = arith.constant 0 : index
    %221 = vector.load %arg10[%c1_85, %c0_86, %c0_87] : memref<2x32x32xbf16, #tpu.memory_space<vmem>>, vector<1x32x32xbf16>
    %222 = vector.shape_cast %221 : vector<1x32x32xbf16> to vector<32x32xbf16>
    %cst_88 = arith.constant dense<0.000000e+00> : vector<5x32xf32>
    %223 = tpu.matmul %208, %222, %cst_88 {dimension_numbers = #tpu.dot_dimension_numbers<[1], [0], [0], [1], [0, 0, 1, 1], [], []>} : vector<5x32xbf16>, vector<32x32xbf16>, vector<5x32xf32> -> vector<5x32xf32>
    %224 = vector.extract_strided_slice %183 {offsets = [4, 0], sizes = [1, 32], strides = [1, 1]} : vector<10x128xf32> to vector<1x32xf32>
    %225 = vector.broadcast %224 : vector<1x32xf32> to vector<5x32xf32>
    %226 = arith.addf %223, %225 : vector<5x32xf32>
    %227 = vector.extract_strided_slice %214 {offsets = [0, 0], sizes = [5, 8], strides = [1, 1]} : vector<5x32xf32> to vector<5x8xf32>
    %228 = vector.extract_strided_slice %220 {offsets = [0, 0], sizes = [5, 8], strides = [1, 1]} : vector<5x32xf32> to vector<5x8xf32>
    %229 = vector.extract_strided_slice %226 {offsets = [0, 0], sizes = [5, 8], strides = [1, 1]} : vector<5x32xf32> to vector<5x8xf32>
    %cst_89 = arith.constant dense<0.000000e+00> : vector<5x5xf32>
    %230 = tpu.matmul %227, %228, %cst_89 {dimension_numbers = #tpu.dot_dimension_numbers<[1], [1], [0], [0], [0, 0, 1, 0], [], []>} : vector<5x8xf32>, vector<5x8xf32>, vector<5x5xf32> -> vector<5x5xf32>
    %cst_90 = arith.constant 0.353553385 : f32
    %231 = vector.broadcast %cst_90 : f32 to vector<5x5xf32>
    %232 = arith.mulf %230, %231 : vector<5x5xf32>
    %cst_91 = arith.constant dense<0xFF800000> : vector<5xf32>
    %233 = vector.multi_reduction <maximumf>, %232, %cst_91 [1] : vector<5x5xf32> to vector<5xf32>
    %234 = vector.shape_cast %233 : vector<5xf32> to vector<5x1xf32>
    %235 = vector.broadcast %234 : vector<5x1xf32> to vector<5x5xf32>
    %236 = arith.subf %232, %235 : vector<5x5xf32>
    %237 = math.exp %236 : vector<5x5xf32>
    %cst_92 = arith.constant dense<0.000000e+00> : vector<5xf32>
    %238 = vector.multi_reduction <add>, %237, %cst_92 [1] : vector<5x5xf32> to vector<5xf32>
    %239 = vector.shape_cast %238 : vector<5xf32> to vector<5x1xf32>
    %240 = tpu.reciprocal %239 {approx = true} : vector<5x1xf32> -> vector<5x1xf32>
    %241 = vector.broadcast %240 : vector<5x1xf32> to vector<5x5xf32>
    %242 = arith.mulf %237, %241 : vector<5x5xf32>
    %cst_93 = arith.constant dense<0.000000e+00> : vector<5x8xf32>
    %243 = tpu.matmul %242, %229, %cst_93 {dimension_numbers = #tpu.dot_dimension_numbers<[1], [0], [0], [1], [0, 0, 1, 1], [], []>} : vector<5x5xf32>, vector<5x8xf32>, vector<5x8xf32> -> vector<5x8xf32>
    %244 = vector.extract_strided_slice %214 {offsets = [0, 8], sizes = [5, 8], strides = [1, 1]} : vector<5x32xf32> to vector<5x8xf32>
    %245 = vector.extract_strided_slice %220 {offsets = [0, 8], sizes = [5, 8], strides = [1, 1]} : vector<5x32xf32> to vector<5x8xf32>
    %246 = vector.extract_strided_slice %226 {offsets = [0, 8], sizes = [5, 8], strides = [1, 1]} : vector<5x32xf32> to vector<5x8xf32>
    %cst_94 = arith.constant dense<0.000000e+00> : vector<5x5xf32>
    %247 = tpu.matmul %244, %245, %cst_94 {dimension_numbers = #tpu.dot_dimension_numbers<[1], [1], [0], [0], [0, 0, 1, 0], [], []>} : vector<5x8xf32>, vector<5x8xf32>, vector<5x5xf32> -> vector<5x5xf32>
    %cst_95 = arith.constant 0.353553385 : f32
    %248 = vector.broadcast %cst_95 : f32 to vector<5x5xf32>
    %249 = arith.mulf %247, %248 : vector<5x5xf32>
    %cst_96 = arith.constant dense<0xFF800000> : vector<5xf32>
    %250 = vector.multi_reduction <maximumf>, %249, %cst_96 [1] : vector<5x5xf32> to vector<5xf32>
    %251 = vector.shape_cast %250 : vector<5xf32> to vector<5x1xf32>
    %252 = vector.broadcast %251 : vector<5x1xf32> to vector<5x5xf32>
    %253 = arith.subf %249, %252 : vector<5x5xf32>
    %254 = math.exp %253 : vector<5x5xf32>
    %cst_97 = arith.constant dense<0.000000e+00> : vector<5xf32>
    %255 = vector.multi_reduction <add>, %254, %cst_97 [1] : vector<5x5xf32> to vector<5xf32>
    %256 = vector.shape_cast %255 : vector<5xf32> to vector<5x1xf32>
    %257 = tpu.reciprocal %256 {approx = true} : vector<5x1xf32> -> vector<5x1xf32>
    %258 = vector.broadcast %257 : vector<5x1xf32> to vector<5x5xf32>
    %259 = arith.mulf %254, %258 : vector<5x5xf32>
    %cst_98 = arith.constant dense<0.000000e+00> : vector<5x8xf32>
    %260 = tpu.matmul %259, %246, %cst_98 {dimension_numbers = #tpu.dot_dimension_numbers<[1], [0], [0], [1], [0, 0, 1, 1], [], []>} : vector<5x5xf32>, vector<5x8xf32>, vector<5x8xf32> -> vector<5x8xf32>
    %261 = vector.extract_strided_slice %214 {offsets = [0, 16], sizes = [5, 8], strides = [1, 1]} : vector<5x32xf32> to vector<5x8xf32>
    %262 = vector.extract_strided_slice %220 {offsets = [0, 16], sizes = [5, 8], strides = [1, 1]} : vector<5x32xf32> to vector<5x8xf32>
    %263 = vector.extract_strided_slice %226 {offsets = [0, 16], sizes = [5, 8], strides = [1, 1]} : vector<5x32xf32> to vector<5x8xf32>
    %cst_99 = arith.constant dense<0.000000e+00> : vector<5x5xf32>
    %264 = tpu.matmul %261, %262, %cst_99 {dimension_numbers = #tpu.dot_dimension_numbers<[1], [1], [0], [0], [0, 0, 1, 0], [], []>} : vector<5x8xf32>, vector<5x8xf32>, vector<5x5xf32> -> vector<5x5xf32>
    %cst_100 = arith.constant 0.353553385 : f32
    %265 = vector.broadcast %cst_100 : f32 to vector<5x5xf32>
    %266 = arith.mulf %264, %265 : vector<5x5xf32>
    %cst_101 = arith.constant dense<0xFF800000> : vector<5xf32>
    %267 = vector.multi_reduction <maximumf>, %266, %cst_101 [1] : vector<5x5xf32> to vector<5xf32>
    %268 = vector.shape_cast %267 : vector<5xf32> to vector<5x1xf32>
    %269 = vector.broadcast %268 : vector<5x1xf32> to vector<5x5xf32>
    %270 = arith.subf %266, %269 : vector<5x5xf32>
    %271 = math.exp %270 : vector<5x5xf32>
    %cst_102 = arith.constant dense<0.000000e+00> : vector<5xf32>
    %272 = vector.multi_reduction <add>, %271, %cst_102 [1] : vector<5x5xf32> to vector<5xf32>
    %273 = vector.shape_cast %272 : vector<5xf32> to vector<5x1xf32>
    %274 = tpu.reciprocal %273 {approx = true} : vector<5x1xf32> -> vector<5x1xf32>
    %275 = vector.broadcast %274 : vector<5x1xf32> to vector<5x5xf32>
    %276 = arith.mulf %271, %275 : vector<5x5xf32>
    %cst_103 = arith.constant dense<0.000000e+00> : vector<5x8xf32>
    %277 = tpu.matmul %276, %263, %cst_103 {dimension_numbers = #tpu.dot_dimension_numbers<[1], [0], [0], [1], [0, 0, 1, 1], [], []>} : vector<5x5xf32>, vector<5x8xf32>, vector<5x8xf32> -> vector<5x8xf32>
    %278 = vector.extract_strided_slice %214 {offsets = [0, 24], sizes = [5, 8], strides = [1, 1]} : vector<5x32xf32> to vector<5x8xf32>
    %279 = vector.extract_strided_slice %220 {offsets = [0, 24], sizes = [5, 8], strides = [1, 1]} : vector<5x32xf32> to vector<5x8xf32>
    %280 = vector.extract_strided_slice %226 {offsets = [0, 24], sizes = [5, 8], strides = [1, 1]} : vector<5x32xf32> to vector<5x8xf32>
    %cst_104 = arith.constant dense<0.000000e+00> : vector<5x5xf32>
    %281 = tpu.matmul %278, %279, %cst_104 {dimension_numbers = #tpu.dot_dimension_numbers<[1], [1], [0], [0], [0, 0, 1, 0], [], []>} : vector<5x8xf32>, vector<5x8xf32>, vector<5x5xf32> -> vector<5x5xf32>
    %cst_105 = arith.constant 0.353553385 : f32
    %282 = vector.broadcast %cst_105 : f32 to vector<5x5xf32>
    %283 = arith.mulf %281, %282 : vector<5x5xf32>
    %cst_106 = arith.constant dense<0xFF800000> : vector<5xf32>
    %284 = vector.multi_reduction <maximumf>, %283, %cst_106 [1] : vector<5x5xf32> to vector<5xf32>
    %285 = vector.shape_cast %284 : vector<5xf32> to vector<5x1xf32>
    %286 = vector.broadcast %285 : vector<5x1xf32> to vector<5x5xf32>
    %287 = arith.subf %283, %286 : vector<5x5xf32>
    %288 = math.exp %287 : vector<5x5xf32>
    %cst_107 = arith.constant dense<0.000000e+00> : vector<5xf32>
    %289 = vector.multi_reduction <add>, %288, %cst_107 [1] : vector<5x5xf32> to vector<5xf32>
    %290 = vector.shape_cast %289 : vector<5xf32> to vector<5x1xf32>
    %291 = tpu.reciprocal %290 {approx = true} : vector<5x1xf32> -> vector<5x1xf32>
    %292 = vector.broadcast %291 : vector<5x1xf32> to vector<5x5xf32>
    %293 = arith.mulf %288, %292 : vector<5x5xf32>
    %cst_108 = arith.constant dense<0.000000e+00> : vector<5x8xf32>
    %294 = tpu.matmul %293, %280, %cst_108 {dimension_numbers = #tpu.dot_dimension_numbers<[1], [0], [0], [1], [0, 0, 1, 1], [], []>} : vector<5x5xf32>, vector<5x8xf32>, vector<5x8xf32> -> vector<5x8xf32>
    %295 = tpu.concatenate %243, %260, %277, %294 in 1 : vector<5x8xf32>, vector<5x8xf32>, vector<5x8xf32>, vector<5x8xf32> -> vector<5x32xf32>
    %296 = arith.truncf %295 : vector<5x32xf32> to vector<5x32xbf16>
    %c1_109 = arith.constant 1 : index
    %c0_110 = arith.constant 0 : index
    %c0_111 = arith.constant 0 : index
    %297 = vector.load %arg11[%c1_109, %c0_110, %c0_111] : memref<2x32x32xbf16, #tpu.memory_space<vmem>>, vector<1x32x32xbf16>
    %298 = vector.shape_cast %297 : vector<1x32x32xbf16> to vector<32x32xbf16>
    %cst_112 = arith.constant dense<0.000000e+00> : vector<5x32xf32>
    %299 = tpu.matmul %296, %298, %cst_112 {dimension_numbers = #tpu.dot_dimension_numbers<[1], [0], [0], [1], [0, 0, 1, 1], [], []>} : vector<5x32xbf16>, vector<32x32xbf16>, vector<5x32xf32> -> vector<5x32xf32>
    %300 = vector.extract_strided_slice %183 {offsets = [5, 0], sizes = [1, 32], strides = [1, 1]} : vector<10x128xf32> to vector<1x32xf32>
    %301 = vector.broadcast %300 : vector<1x32xf32> to vector<5x32xf32>
    %302 = arith.addf %299, %301 : vector<5x32xf32>
    %303 = arith.addf %181, %302 : vector<5x32xf32>
    %304 = vector.extract_strided_slice %183 {offsets = [6, 0], sizes = [1, 32], strides = [1, 1]} : vector<10x128xf32> to vector<1x32xf32>
    %305 = vector.extract_strided_slice %183 {offsets = [7, 0], sizes = [1, 32], strides = [1, 1]} : vector<10x128xf32> to vector<1x32xf32>
    %cst_113 = arith.constant dense<0.000000e+00> : vector<5xf32>
    %306 = vector.multi_reduction <add>, %303, %cst_113 [1] : vector<5x32xf32> to vector<5xf32>
    %307 = vector.shape_cast %306 : vector<5xf32> to vector<5x1xf32>
    %cst_114 = arith.constant 3.200000e+01 : f32
    %308 = vector.broadcast %cst_114 : f32 to vector<5x1xf32>
    %309 = arith.divf %307, %308 : vector<5x1xf32>
    %310 = vector.broadcast %309 : vector<5x1xf32> to vector<5x32xf32>
    %311 = arith.subf %303, %310 : vector<5x32xf32>
    %312 = arith.mulf %311, %311 : vector<5x32xf32>
    %cst_115 = arith.constant dense<0.000000e+00> : vector<5xf32>
    %313 = vector.multi_reduction <add>, %312, %cst_115 [1] : vector<5x32xf32> to vector<5xf32>
    %314 = vector.shape_cast %313 : vector<5xf32> to vector<5x1xf32>
    %cst_116 = arith.constant 3.200000e+01 : f32
    %315 = vector.broadcast %cst_116 : f32 to vector<5x1xf32>
    %316 = arith.divf %314, %315 : vector<5x1xf32>
    %317 = vector.broadcast %309 : vector<5x1xf32> to vector<5x32xf32>
    %318 = arith.subf %303, %317 : vector<5x32xf32>
    %cst_117 = arith.constant 9.99999974E-6 : f32
    %319 = vector.broadcast %cst_117 : f32 to vector<5x1xf32>
    %320 = arith.addf %316, %319 : vector<5x1xf32>
    %321 = math.rsqrt %320 : vector<5x1xf32>
    %322 = vector.broadcast %321 : vector<5x1xf32> to vector<5x32xf32>
    %323 = arith.mulf %318, %322 : vector<5x32xf32>
    %324 = vector.broadcast %304 : vector<1x32xf32> to vector<5x32xf32>
    %325 = arith.mulf %323, %324 : vector<5x32xf32>
    %326 = vector.broadcast %305 : vector<1x32xf32> to vector<5x32xf32>
    %327 = arith.addf %325, %326 : vector<5x32xf32>
    %328 = arith.truncf %327 : vector<5x32xf32> to vector<5x32xbf16>
    %c1_118 = arith.constant 1 : index
    %c0_119 = arith.constant 0 : index
    %c0_120 = arith.constant 0 : index
    %329 = vector.load %arg12[%c1_118, %c0_119, %c0_120] : memref<2x32x128xbf16, #tpu.memory_space<vmem>>, vector<1x32x128xbf16>
    %330 = vector.shape_cast %329 : vector<1x32x128xbf16> to vector<32x128xbf16>
    %cst_121 = arith.constant dense<0.000000e+00> : vector<5x128xf32>
    %331 = tpu.matmul %328, %330, %cst_121 {dimension_numbers = #tpu.dot_dimension_numbers<[1], [0], [0], [1], [0, 0, 1, 1], [], []>} : vector<5x32xbf16>, vector<32x128xbf16>, vector<5x128xf32> -> vector<5x128xf32>
    %332 = vector.extract_strided_slice %183 {offsets = [8, 0], sizes = [1, 128], strides = [1, 1]} : vector<10x128xf32> to vector<1x128xf32>
    %333 = vector.broadcast %332 : vector<1x128xf32> to vector<5x128xf32>
    %334 = arith.addf %331, %333 : vector<5x128xf32>
    %cst_122 = arith.constant 5.000000e-01 : f32
    %335 = vector.broadcast %cst_122 : f32 to vector<5x128xf32>
    %336 = arith.mulf %335, %334 : vector<5x128xf32>
    %cst_123 = arith.constant 4.471500e-02 : f32
    %337 = vector.broadcast %cst_123 : f32 to vector<5x128xf32>
    %338 = arith.mulf %337, %334 : vector<5x128xf32>
    %339 = arith.mulf %338, %334 : vector<5x128xf32>
    %340 = arith.mulf %339, %334 : vector<5x128xf32>
    %341 = arith.addf %334, %340 : vector<5x128xf32>
    %cst_124 = arith.constant 0.797884583 : f32
    %342 = vector.broadcast %cst_124 : f32 to vector<5x128xf32>
    %343 = arith.mulf %342, %341 : vector<5x128xf32>
    %344 = math.tanh %343 : vector<5x128xf32>
    %cst_125 = arith.constant 1.000000e+00 : f32
    %345 = vector.broadcast %cst_125 : f32 to vector<5x128xf32>
    %346 = arith.addf %345, %344 : vector<5x128xf32>
    %347 = arith.mulf %336, %346 : vector<5x128xf32>
    %348 = arith.truncf %347 : vector<5x128xf32> to vector<5x128xbf16>
    %c1_126 = arith.constant 1 : index
    %c0_127 = arith.constant 0 : index
    %c0_128 = arith.constant 0 : index
    %349 = vector.load %arg13[%c1_126, %c0_127, %c0_128] : memref<2x128x32xbf16, #tpu.memory_space<vmem>>, vector<1x128x32xbf16>
    %350 = vector.shape_cast %349 : vector<1x128x32xbf16> to vector<128x32xbf16>
    %cst_129 = arith.constant dense<0.000000e+00> : vector<5x32xf32>
    %351 = tpu.matmul %348, %350, %cst_129 {dimension_numbers = #tpu.dot_dimension_numbers<[1], [0], [0], [1], [0, 0, 1, 1], [], []>} : vector<5x128xbf16>, vector<128x32xbf16>, vector<5x32xf32> -> vector<5x32xf32>
    %352 = vector.extract_strided_slice %183 {offsets = [9, 0], sizes = [1, 32], strides = [1, 1]} : vector<10x128xf32> to vector<1x32xf32>
    %353 = vector.broadcast %352 : vector<1x32xf32> to vector<5x32xf32>
    %354 = arith.addf %351, %353 : vector<5x32xf32>
    %355 = arith.addf %303, %354 : vector<5x32xf32>
    %356 = vector.extract_strided_slice %0 {offsets = [0, 0], sizes = [1, 32], strides = [1, 1]} : vector<6x128xf32> to vector<1x32xf32>
    %357 = vector.extract_strided_slice %0 {offsets = [1, 0], sizes = [1, 32], strides = [1, 1]} : vector<6x128xf32> to vector<1x32xf32>
    %cst_130 = arith.constant dense<0.000000e+00> : vector<5xf32>
    %358 = vector.multi_reduction <add>, %355, %cst_130 [1] : vector<5x32xf32> to vector<5xf32>
    %359 = vector.shape_cast %358 : vector<5xf32> to vector<5x1xf32>
    %cst_131 = arith.constant 3.200000e+01 : f32
    %360 = vector.broadcast %cst_131 : f32 to vector<5x1xf32>
    %361 = arith.divf %359, %360 : vector<5x1xf32>
    %362 = vector.broadcast %361 : vector<5x1xf32> to vector<5x32xf32>
    %363 = arith.subf %355, %362 : vector<5x32xf32>
    %364 = arith.mulf %363, %363 : vector<5x32xf32>
    %cst_132 = arith.constant dense<0.000000e+00> : vector<5xf32>
    %365 = vector.multi_reduction <add>, %364, %cst_132 [1] : vector<5x32xf32> to vector<5xf32>
    %366 = vector.shape_cast %365 : vector<5xf32> to vector<5x1xf32>
    %cst_133 = arith.constant 3.200000e+01 : f32
    %367 = vector.broadcast %cst_133 : f32 to vector<5x1xf32>
    %368 = arith.divf %366, %367 : vector<5x1xf32>
    %369 = vector.broadcast %361 : vector<5x1xf32> to vector<5x32xf32>
    %370 = arith.subf %355, %369 : vector<5x32xf32>
    %cst_134 = arith.constant 9.99999974E-6 : f32
    %371 = vector.broadcast %cst_134 : f32 to vector<5x1xf32>
    %372 = arith.addf %368, %371 : vector<5x1xf32>
    %373 = math.rsqrt %372 : vector<5x1xf32>
    %374 = vector.broadcast %373 : vector<5x1xf32> to vector<5x32xf32>
    %375 = arith.mulf %370, %374 : vector<5x32xf32>
    %376 = vector.broadcast %356 : vector<1x32xf32> to vector<5x32xf32>
    %377 = arith.mulf %375, %376 : vector<5x32xf32>
    %378 = vector.broadcast %357 : vector<1x32xf32> to vector<5x32xf32>
    %379 = arith.addf %377, %378 : vector<5x32xf32>
    %380 = arith.truncf %379 : vector<5x32xf32> to vector<5x32xbf16>
    %c0_135 = arith.constant 0 : index
    %c0_136 = arith.constant 0 : index
    %381 = vector.load %arg16[%c0_135, %c0_136] : memref<32x32xbf16, #tpu.memory_space<vmem>>, vector<32x32xbf16>
    %cst_137 = arith.constant dense<0.000000e+00> : vector<5x32xf32>
    %382 = tpu.matmul %380, %381, %cst_137 {dimension_numbers = #tpu.dot_dimension_numbers<[1], [0], [0], [1], [0, 0, 1, 1], [], []>} : vector<5x32xbf16>, vector<32x32xbf16>, vector<5x32xf32> -> vector<5x32xf32>
    %383 = vector.extract_strided_slice %0 {offsets = [2, 0], sizes = [1, 32], strides = [1, 1]} : vector<6x128xf32> to vector<1x32xf32>
    %384 = vector.broadcast %383 : vector<1x32xf32> to vector<5x32xf32>
    %385 = arith.addf %382, %384 : vector<5x32xf32>
    %c0_138 = arith.constant 0 : index
    %c0_139 = arith.constant 0 : index
    %c0_140 = arith.constant 0 : index
    %386 = vector.load %arg3[%c0_138, %c0_139, %c0_140] : memref<1x17x5xf32, #tpu.memory_space<vmem>>, vector<1x17x5xf32>
    %387 = vector.shape_cast %386 : vector<1x17x5xf32> to vector<17x5xf32>
    %cst_141 = arith.constant dense<0.000000e+00> : vector<17x32xf32>
    %388 = tpu.matmul %387, %385, %cst_141 {dimension_numbers = #tpu.dot_dimension_numbers<[1], [0], [0], [1], [0, 0, 1, 1], [], []>} : vector<17x5xf32>, vector<5x32xf32>, vector<17x32xf32> -> vector<17x32xf32>
    %c0_142 = arith.constant 0 : index
    %c0_143 = arith.constant 0 : index
    %c0_144 = arith.constant 0 : index
    %389 = vector.load %arg4[%c0_142, %c0_143, %c0_144] : memref<1x17x32xf32, #tpu.memory_space<vmem>>, vector<1x17x32xf32>
    %390 = vector.shape_cast %389 : vector<1x17x32xf32> to vector<17x32xf32>
    %391 = arith.addf %388, %390 : vector<17x32xf32>
    %c0_145 = arith.constant 0 : index
    %c0_146 = arith.constant 0 : index
    %c0_147 = arith.constant 0 : index
    %392 = vector.load %arg23[%c0_145, %c0_146, %c0_147] : memref<1x10x128xf32, #tpu.memory_space<vmem>>, vector<1x10x128xf32>
    %393 = vector.shape_cast %392 : vector<1x10x128xf32> to vector<10x128xf32>
    %394 = vector.extract_strided_slice %393 {offsets = [0, 0], sizes = [1, 32], strides = [1, 1]} : vector<10x128xf32> to vector<1x32xf32>
    %395 = vector.extract_strided_slice %393 {offsets = [1, 0], sizes = [1, 32], strides = [1, 1]} : vector<10x128xf32> to vector<1x32xf32>
    %cst_148 = arith.constant dense<0.000000e+00> : vector<17xf32>
    %396 = vector.multi_reduction <add>, %391, %cst_148 [1] : vector<17x32xf32> to vector<17xf32>
    %397 = vector.shape_cast %396 : vector<17xf32> to vector<17x1xf32>
    %cst_149 = arith.constant 3.200000e+01 : f32
    %398 = vector.broadcast %cst_149 : f32 to vector<17x1xf32>
    %399 = arith.divf %397, %398 : vector<17x1xf32>
    %400 = vector.broadcast %399 : vector<17x1xf32> to vector<17x32xf32>
    %401 = arith.subf %391, %400 : vector<17x32xf32>
    %402 = arith.mulf %401, %401 : vector<17x32xf32>
    %cst_150 = arith.constant dense<0.000000e+00> : vector<17xf32>
    %403 = vector.multi_reduction <add>, %402, %cst_150 [1] : vector<17x32xf32> to vector<17xf32>
    %404 = vector.shape_cast %403 : vector<17xf32> to vector<17x1xf32>
    %cst_151 = arith.constant 3.200000e+01 : f32
    %405 = vector.broadcast %cst_151 : f32 to vector<17x1xf32>
    %406 = arith.divf %404, %405 : vector<17x1xf32>
    %407 = vector.broadcast %399 : vector<17x1xf32> to vector<17x32xf32>
    %408 = arith.subf %391, %407 : vector<17x32xf32>
    %cst_152 = arith.constant 9.99999974E-6 : f32
    %409 = vector.broadcast %cst_152 : f32 to vector<17x1xf32>
    %410 = arith.addf %406, %409 : vector<17x1xf32>
    %411 = math.rsqrt %410 : vector<17x1xf32>
    %412 = vector.broadcast %411 : vector<17x1xf32> to vector<17x32xf32>
    %413 = arith.mulf %408, %412 : vector<17x32xf32>
    %414 = vector.broadcast %394 : vector<1x32xf32> to vector<17x32xf32>
    %415 = arith.mulf %413, %414 : vector<17x32xf32>
    %416 = vector.broadcast %395 : vector<1x32xf32> to vector<17x32xf32>
    %417 = arith.addf %415, %416 : vector<17x32xf32>
    %418 = arith.truncf %417 : vector<17x32xf32> to vector<17x32xbf16>
    %c0_153 = arith.constant 0 : index
    %c0_154 = arith.constant 0 : index
    %c0_155 = arith.constant 0 : index
    %419 = vector.load %arg17[%c0_153, %c0_154, %c0_155] : memref<1x32x32xbf16, #tpu.memory_space<vmem>>, vector<1x32x32xbf16>
    %420 = vector.shape_cast %419 : vector<1x32x32xbf16> to vector<32x32xbf16>
    %cst_156 = arith.constant dense<0.000000e+00> : vector<17x32xf32>
    %421 = tpu.matmul %418, %420, %cst_156 {dimension_numbers = #tpu.dot_dimension_numbers<[1], [0], [0], [1], [0, 0, 1, 1], [], []>} : vector<17x32xbf16>, vector<32x32xbf16>, vector<17x32xf32> -> vector<17x32xf32>
    %422 = vector.extract_strided_slice %393 {offsets = [2, 0], sizes = [1, 32], strides = [1, 1]} : vector<10x128xf32> to vector<1x32xf32>
    %423 = vector.broadcast %422 : vector<1x32xf32> to vector<17x32xf32>
    %424 = arith.addf %421, %423 : vector<17x32xf32>
    %c0_157 = arith.constant 0 : index
    %c0_158 = arith.constant 0 : index
    %c0_159 = arith.constant 0 : index
    %425 = vector.load %arg18[%c0_157, %c0_158, %c0_159] : memref<1x32x32xbf16, #tpu.memory_space<vmem>>, vector<1x32x32xbf16>
    %426 = vector.shape_cast %425 : vector<1x32x32xbf16> to vector<32x32xbf16>
    %cst_160 = arith.constant dense<0.000000e+00> : vector<17x32xf32>
    %427 = tpu.matmul %418, %426, %cst_160 {dimension_numbers = #tpu.dot_dimension_numbers<[1], [0], [0], [1], [0, 0, 1, 1], [], []>} : vector<17x32xbf16>, vector<32x32xbf16>, vector<17x32xf32> -> vector<17x32xf32>
    %428 = vector.extract_strided_slice %393 {offsets = [3, 0], sizes = [1, 32], strides = [1, 1]} : vector<10x128xf32> to vector<1x32xf32>
    %429 = vector.broadcast %428 : vector<1x32xf32> to vector<17x32xf32>
    %430 = arith.addf %427, %429 : vector<17x32xf32>
    %c0_161 = arith.constant 0 : index
    %c0_162 = arith.constant 0 : index
    %c0_163 = arith.constant 0 : index
    %431 = vector.load %arg19[%c0_161, %c0_162, %c0_163] : memref<1x32x32xbf16, #tpu.memory_space<vmem>>, vector<1x32x32xbf16>
    %432 = vector.shape_cast %431 : vector<1x32x32xbf16> to vector<32x32xbf16>
    %cst_164 = arith.constant dense<0.000000e+00> : vector<17x32xf32>
    %433 = tpu.matmul %418, %432, %cst_164 {dimension_numbers = #tpu.dot_dimension_numbers<[1], [0], [0], [1], [0, 0, 1, 1], [], []>} : vector<17x32xbf16>, vector<32x32xbf16>, vector<17x32xf32> -> vector<17x32xf32>
    %434 = vector.extract_strided_slice %393 {offsets = [4, 0], sizes = [1, 32], strides = [1, 1]} : vector<10x128xf32> to vector<1x32xf32>
    %435 = vector.broadcast %434 : vector<1x32xf32> to vector<17x32xf32>
    %436 = arith.addf %433, %435 : vector<17x32xf32>
    %437 = vector.extract_strided_slice %424 {offsets = [0, 0], sizes = [17, 8], strides = [1, 1]} : vector<17x32xf32> to vector<17x8xf32>
    %438 = vector.extract_strided_slice %430 {offsets = [0, 0], sizes = [17, 8], strides = [1, 1]} : vector<17x32xf32> to vector<17x8xf32>
    %439 = vector.extract_strided_slice %436 {offsets = [0, 0], sizes = [17, 8], strides = [1, 1]} : vector<17x32xf32> to vector<17x8xf32>
    %cst_165 = arith.constant dense<0.000000e+00> : vector<17x17xf32>
    %440 = tpu.matmul %437, %438, %cst_165 {dimension_numbers = #tpu.dot_dimension_numbers<[1], [1], [0], [0], [0, 0, 1, 0], [], []>} : vector<17x8xf32>, vector<17x8xf32>, vector<17x17xf32> -> vector<17x17xf32>
    %cst_166 = arith.constant 0.353553385 : f32
    %441 = vector.broadcast %cst_166 : f32 to vector<17x17xf32>
    %442 = arith.mulf %440, %441 : vector<17x17xf32>
    %cst_167 = arith.constant dense<0xFF800000> : vector<17xf32>
    %443 = vector.multi_reduction <maximumf>, %442, %cst_167 [1] : vector<17x17xf32> to vector<17xf32>
    %444 = vector.shape_cast %443 : vector<17xf32> to vector<17x1xf32>
    %445 = vector.broadcast %444 : vector<17x1xf32> to vector<17x17xf32>
    %446 = arith.subf %442, %445 : vector<17x17xf32>
    %447 = math.exp %446 : vector<17x17xf32>
    %cst_168 = arith.constant dense<0.000000e+00> : vector<17xf32>
    %448 = vector.multi_reduction <add>, %447, %cst_168 [1] : vector<17x17xf32> to vector<17xf32>
    %449 = vector.shape_cast %448 : vector<17xf32> to vector<17x1xf32>
    %450 = tpu.reciprocal %449 {approx = true} : vector<17x1xf32> -> vector<17x1xf32>
    %451 = vector.broadcast %450 : vector<17x1xf32> to vector<17x17xf32>
    %452 = arith.mulf %447, %451 : vector<17x17xf32>
    %cst_169 = arith.constant dense<0.000000e+00> : vector<17x8xf32>
    %453 = tpu.matmul %452, %439, %cst_169 {dimension_numbers = #tpu.dot_dimension_numbers<[1], [0], [0], [1], [0, 0, 1, 1], [], []>} : vector<17x17xf32>, vector<17x8xf32>, vector<17x8xf32> -> vector<17x8xf32>
    %454 = vector.extract_strided_slice %424 {offsets = [0, 8], sizes = [17, 8], strides = [1, 1]} : vector<17x32xf32> to vector<17x8xf32>
    %455 = vector.extract_strided_slice %430 {offsets = [0, 8], sizes = [17, 8], strides = [1, 1]} : vector<17x32xf32> to vector<17x8xf32>
    %456 = vector.extract_strided_slice %436 {offsets = [0, 8], sizes = [17, 8], strides = [1, 1]} : vector<17x32xf32> to vector<17x8xf32>
    %cst_170 = arith.constant dense<0.000000e+00> : vector<17x17xf32>
    %457 = tpu.matmul %454, %455, %cst_170 {dimension_numbers = #tpu.dot_dimension_numbers<[1], [1], [0], [0], [0, 0, 1, 0], [], []>} : vector<17x8xf32>, vector<17x8xf32>, vector<17x17xf32> -> vector<17x17xf32>
    %cst_171 = arith.constant 0.353553385 : f32
    %458 = vector.broadcast %cst_171 : f32 to vector<17x17xf32>
    %459 = arith.mulf %457, %458 : vector<17x17xf32>
    %cst_172 = arith.constant dense<0xFF800000> : vector<17xf32>
    %460 = vector.multi_reduction <maximumf>, %459, %cst_172 [1] : vector<17x17xf32> to vector<17xf32>
    %461 = vector.shape_cast %460 : vector<17xf32> to vector<17x1xf32>
    %462 = vector.broadcast %461 : vector<17x1xf32> to vector<17x17xf32>
    %463 = arith.subf %459, %462 : vector<17x17xf32>
    %464 = math.exp %463 : vector<17x17xf32>
    %cst_173 = arith.constant dense<0.000000e+00> : vector<17xf32>
    %465 = vector.multi_reduction <add>, %464, %cst_173 [1] : vector<17x17xf32> to vector<17xf32>
    %466 = vector.shape_cast %465 : vector<17xf32> to vector<17x1xf32>
    %467 = tpu.reciprocal %466 {approx = true} : vector<17x1xf32> -> vector<17x1xf32>
    %468 = vector.broadcast %467 : vector<17x1xf32> to vector<17x17xf32>
    %469 = arith.mulf %464, %468 : vector<17x17xf32>
    %cst_174 = arith.constant dense<0.000000e+00> : vector<17x8xf32>
    %470 = tpu.matmul %469, %456, %cst_174 {dimension_numbers = #tpu.dot_dimension_numbers<[1], [0], [0], [1], [0, 0, 1, 1], [], []>} : vector<17x17xf32>, vector<17x8xf32>, vector<17x8xf32> -> vector<17x8xf32>
    %471 = vector.extract_strided_slice %424 {offsets = [0, 16], sizes = [17, 8], strides = [1, 1]} : vector<17x32xf32> to vector<17x8xf32>
    %472 = vector.extract_strided_slice %430 {offsets = [0, 16], sizes = [17, 8], strides = [1, 1]} : vector<17x32xf32> to vector<17x8xf32>
    %473 = vector.extract_strided_slice %436 {offsets = [0, 16], sizes = [17, 8], strides = [1, 1]} : vector<17x32xf32> to vector<17x8xf32>
    %cst_175 = arith.constant dense<0.000000e+00> : vector<17x17xf32>
    %474 = tpu.matmul %471, %472, %cst_175 {dimension_numbers = #tpu.dot_dimension_numbers<[1], [1], [0], [0], [0, 0, 1, 0], [], []>} : vector<17x8xf32>, vector<17x8xf32>, vector<17x17xf32> -> vector<17x17xf32>
    %cst_176 = arith.constant 0.353553385 : f32
    %475 = vector.broadcast %cst_176 : f32 to vector<17x17xf32>
    %476 = arith.mulf %474, %475 : vector<17x17xf32>
    %cst_177 = arith.constant dense<0xFF800000> : vector<17xf32>
    %477 = vector.multi_reduction <maximumf>, %476, %cst_177 [1] : vector<17x17xf32> to vector<17xf32>
    %478 = vector.shape_cast %477 : vector<17xf32> to vector<17x1xf32>
    %479 = vector.broadcast %478 : vector<17x1xf32> to vector<17x17xf32>
    %480 = arith.subf %476, %479 : vector<17x17xf32>
    %481 = math.exp %480 : vector<17x17xf32>
    %cst_178 = arith.constant dense<0.000000e+00> : vector<17xf32>
    %482 = vector.multi_reduction <add>, %481, %cst_178 [1] : vector<17x17xf32> to vector<17xf32>
    %483 = vector.shape_cast %482 : vector<17xf32> to vector<17x1xf32>
    %484 = tpu.reciprocal %483 {approx = true} : vector<17x1xf32> -> vector<17x1xf32>
    %485 = vector.broadcast %484 : vector<17x1xf32> to vector<17x17xf32>
    %486 = arith.mulf %481, %485 : vector<17x17xf32>
    %cst_179 = arith.constant dense<0.000000e+00> : vector<17x8xf32>
    %487 = tpu.matmul %486, %473, %cst_179 {dimension_numbers = #tpu.dot_dimension_numbers<[1], [0], [0], [1], [0, 0, 1, 1], [], []>} : vector<17x17xf32>, vector<17x8xf32>, vector<17x8xf32> -> vector<17x8xf32>
    %488 = vector.extract_strided_slice %424 {offsets = [0, 24], sizes = [17, 8], strides = [1, 1]} : vector<17x32xf32> to vector<17x8xf32>
    %489 = vector.extract_strided_slice %430 {offsets = [0, 24], sizes = [17, 8], strides = [1, 1]} : vector<17x32xf32> to vector<17x8xf32>
    %490 = vector.extract_strided_slice %436 {offsets = [0, 24], sizes = [17, 8], strides = [1, 1]} : vector<17x32xf32> to vector<17x8xf32>
    %cst_180 = arith.constant dense<0.000000e+00> : vector<17x17xf32>
    %491 = tpu.matmul %488, %489, %cst_180 {dimension_numbers = #tpu.dot_dimension_numbers<[1], [1], [0], [0], [0, 0, 1, 0], [], []>} : vector<17x8xf32>, vector<17x8xf32>, vector<17x17xf32> -> vector<17x17xf32>
    %cst_181 = arith.constant 0.353553385 : f32
    %492 = vector.broadcast %cst_181 : f32 to vector<17x17xf32>
    %493 = arith.mulf %491, %492 : vector<17x17xf32>
    %cst_182 = arith.constant dense<0xFF800000> : vector<17xf32>
    %494 = vector.multi_reduction <maximumf>, %493, %cst_182 [1] : vector<17x17xf32> to vector<17xf32>
    %495 = vector.shape_cast %494 : vector<17xf32> to vector<17x1xf32>
    %496 = vector.broadcast %495 : vector<17x1xf32> to vector<17x17xf32>
    %497 = arith.subf %493, %496 : vector<17x17xf32>
    %498 = math.exp %497 : vector<17x17xf32>
    %cst_183 = arith.constant dense<0.000000e+00> : vector<17xf32>
    %499 = vector.multi_reduction <add>, %498, %cst_183 [1] : vector<17x17xf32> to vector<17xf32>
    %500 = vector.shape_cast %499 : vector<17xf32> to vector<17x1xf32>
    %501 = tpu.reciprocal %500 {approx = true} : vector<17x1xf32> -> vector<17x1xf32>
    %502 = vector.broadcast %501 : vector<17x1xf32> to vector<17x17xf32>
    %503 = arith.mulf %498, %502 : vector<17x17xf32>
    %cst_184 = arith.constant dense<0.000000e+00> : vector<17x8xf32>
    %504 = tpu.matmul %503, %490, %cst_184 {dimension_numbers = #tpu.dot_dimension_numbers<[1], [0], [0], [1], [0, 0, 1, 1], [], []>} : vector<17x17xf32>, vector<17x8xf32>, vector<17x8xf32> -> vector<17x8xf32>
    %505 = tpu.concatenate %453, %470, %487, %504 in 1 : vector<17x8xf32>, vector<17x8xf32>, vector<17x8xf32>, vector<17x8xf32> -> vector<17x32xf32>
    %506 = arith.truncf %505 : vector<17x32xf32> to vector<17x32xbf16>
    %c0_185 = arith.constant 0 : index
    %c0_186 = arith.constant 0 : index
    %c0_187 = arith.constant 0 : index
    %507 = vector.load %arg20[%c0_185, %c0_186, %c0_187] : memref<1x32x32xbf16, #tpu.memory_space<vmem>>, vector<1x32x32xbf16>
    %508 = vector.shape_cast %507 : vector<1x32x32xbf16> to vector<32x32xbf16>
    %cst_188 = arith.constant dense<0.000000e+00> : vector<17x32xf32>
    %509 = tpu.matmul %506, %508, %cst_188 {dimension_numbers = #tpu.dot_dimension_numbers<[1], [0], [0], [1], [0, 0, 1, 1], [], []>} : vector<17x32xbf16>, vector<32x32xbf16>, vector<17x32xf32> -> vector<17x32xf32>
    %510 = vector.extract_strided_slice %393 {offsets = [5, 0], sizes = [1, 32], strides = [1, 1]} : vector<10x128xf32> to vector<1x32xf32>
    %511 = vector.broadcast %510 : vector<1x32xf32> to vector<17x32xf32>
    %512 = arith.addf %509, %511 : vector<17x32xf32>
    %513 = arith.addf %391, %512 : vector<17x32xf32>
    %514 = vector.extract_strided_slice %393 {offsets = [6, 0], sizes = [1, 32], strides = [1, 1]} : vector<10x128xf32> to vector<1x32xf32>
    %515 = vector.extract_strided_slice %393 {offsets = [7, 0], sizes = [1, 32], strides = [1, 1]} : vector<10x128xf32> to vector<1x32xf32>
    %cst_189 = arith.constant dense<0.000000e+00> : vector<17xf32>
    %516 = vector.multi_reduction <add>, %513, %cst_189 [1] : vector<17x32xf32> to vector<17xf32>
    %517 = vector.shape_cast %516 : vector<17xf32> to vector<17x1xf32>
    %cst_190 = arith.constant 3.200000e+01 : f32
    %518 = vector.broadcast %cst_190 : f32 to vector<17x1xf32>
    %519 = arith.divf %517, %518 : vector<17x1xf32>
    %520 = vector.broadcast %519 : vector<17x1xf32> to vector<17x32xf32>
    %521 = arith.subf %513, %520 : vector<17x32xf32>
    %522 = arith.mulf %521, %521 : vector<17x32xf32>
    %cst_191 = arith.constant dense<0.000000e+00> : vector<17xf32>
    %523 = vector.multi_reduction <add>, %522, %cst_191 [1] : vector<17x32xf32> to vector<17xf32>
    %524 = vector.shape_cast %523 : vector<17xf32> to vector<17x1xf32>
    %cst_192 = arith.constant 3.200000e+01 : f32
    %525 = vector.broadcast %cst_192 : f32 to vector<17x1xf32>
    %526 = arith.divf %524, %525 : vector<17x1xf32>
    %527 = vector.broadcast %519 : vector<17x1xf32> to vector<17x32xf32>
    %528 = arith.subf %513, %527 : vector<17x32xf32>
    %cst_193 = arith.constant 9.99999974E-6 : f32
    %529 = vector.broadcast %cst_193 : f32 to vector<17x1xf32>
    %530 = arith.addf %526, %529 : vector<17x1xf32>
    %531 = math.rsqrt %530 : vector<17x1xf32>
    %532 = vector.broadcast %531 : vector<17x1xf32> to vector<17x32xf32>
    %533 = arith.mulf %528, %532 : vector<17x32xf32>
    %534 = vector.broadcast %514 : vector<1x32xf32> to vector<17x32xf32>
    %535 = arith.mulf %533, %534 : vector<17x32xf32>
    %536 = vector.broadcast %515 : vector<1x32xf32> to vector<17x32xf32>
    %537 = arith.addf %535, %536 : vector<17x32xf32>
    %538 = arith.truncf %537 : vector<17x32xf32> to vector<17x32xbf16>
    %c0_194 = arith.constant 0 : index
    %c0_195 = arith.constant 0 : index
    %c0_196 = arith.constant 0 : index
    %539 = vector.load %arg21[%c0_194, %c0_195, %c0_196] : memref<1x32x128xbf16, #tpu.memory_space<vmem>>, vector<1x32x128xbf16>
    %540 = vector.shape_cast %539 : vector<1x32x128xbf16> to vector<32x128xbf16>
    %cst_197 = arith.constant dense<0.000000e+00> : vector<17x128xf32>
    %541 = tpu.matmul %538, %540, %cst_197 {dimension_numbers = #tpu.dot_dimension_numbers<[1], [0], [0], [1], [0, 0, 1, 1], [], []>} : vector<17x32xbf16>, vector<32x128xbf16>, vector<17x128xf32> -> vector<17x128xf32>
    %542 = vector.extract_strided_slice %393 {offsets = [8, 0], sizes = [1, 128], strides = [1, 1]} : vector<10x128xf32> to vector<1x128xf32>
    %543 = vector.broadcast %542 : vector<1x128xf32> to vector<17x128xf32>
    %544 = arith.addf %541, %543 : vector<17x128xf32>
    %cst_198 = arith.constant 5.000000e-01 : f32
    %545 = vector.broadcast %cst_198 : f32 to vector<17x128xf32>
    %546 = arith.mulf %545, %544 : vector<17x128xf32>
    %cst_199 = arith.constant 4.471500e-02 : f32
    %547 = vector.broadcast %cst_199 : f32 to vector<17x128xf32>
    %548 = arith.mulf %547, %544 : vector<17x128xf32>
    %549 = arith.mulf %548, %544 : vector<17x128xf32>
    %550 = arith.mulf %549, %544 : vector<17x128xf32>
    %551 = arith.addf %544, %550 : vector<17x128xf32>
    %cst_200 = arith.constant 0.797884583 : f32
    %552 = vector.broadcast %cst_200 : f32 to vector<17x128xf32>
    %553 = arith.mulf %552, %551 : vector<17x128xf32>
    %554 = math.tanh %553 : vector<17x128xf32>
    %cst_201 = arith.constant 1.000000e+00 : f32
    %555 = vector.broadcast %cst_201 : f32 to vector<17x128xf32>
    %556 = arith.addf %555, %554 : vector<17x128xf32>
    %557 = arith.mulf %546, %556 : vector<17x128xf32>
    %558 = arith.truncf %557 : vector<17x128xf32> to vector<17x128xbf16>
    %c0_202 = arith.constant 0 : index
    %c0_203 = arith.constant 0 : index
    %c0_204 = arith.constant 0 : index
    %559 = vector.load %arg22[%c0_202, %c0_203, %c0_204] : memref<1x128x32xbf16, #tpu.memory_space<vmem>>, vector<1x128x32xbf16>
    %560 = vector.shape_cast %559 : vector<1x128x32xbf16> to vector<128x32xbf16>
    %cst_205 = arith.constant dense<0.000000e+00> : vector<17x32xf32>
    %561 = tpu.matmul %558, %560, %cst_205 {dimension_numbers = #tpu.dot_dimension_numbers<[1], [0], [0], [1], [0, 0, 1, 1], [], []>} : vector<17x128xbf16>, vector<128x32xbf16>, vector<17x32xf32> -> vector<17x32xf32>
    %562 = vector.extract_strided_slice %393 {offsets = [9, 0], sizes = [1, 32], strides = [1, 1]} : vector<10x128xf32> to vector<1x32xf32>
    %563 = vector.broadcast %562 : vector<1x32xf32> to vector<17x32xf32>
    %564 = arith.addf %561, %563 : vector<17x32xf32>
    %565 = arith.addf %513, %564 : vector<17x32xf32>
    %566 = vector.extract_strided_slice %0 {offsets = [3, 0], sizes = [1, 32], strides = [1, 1]} : vector<6x128xf32> to vector<1x32xf32>
    %567 = vector.extract_strided_slice %0 {offsets = [4, 0], sizes = [1, 32], strides = [1, 1]} : vector<6x128xf32> to vector<1x32xf32>
    %cst_206 = arith.constant dense<0.000000e+00> : vector<17xf32>
    %568 = vector.multi_reduction <add>, %565, %cst_206 [1] : vector<17x32xf32> to vector<17xf32>
    %569 = vector.shape_cast %568 : vector<17xf32> to vector<17x1xf32>
    %cst_207 = arith.constant 3.200000e+01 : f32
    %570 = vector.broadcast %cst_207 : f32 to vector<17x1xf32>
    %571 = arith.divf %569, %570 : vector<17x1xf32>
    %572 = vector.broadcast %571 : vector<17x1xf32> to vector<17x32xf32>
    %573 = arith.subf %565, %572 : vector<17x32xf32>
    %574 = arith.mulf %573, %573 : vector<17x32xf32>
    %cst_208 = arith.constant dense<0.000000e+00> : vector<17xf32>
    %575 = vector.multi_reduction <add>, %574, %cst_208 [1] : vector<17x32xf32> to vector<17xf32>
    %576 = vector.shape_cast %575 : vector<17xf32> to vector<17x1xf32>
    %cst_209 = arith.constant 3.200000e+01 : f32
    %577 = vector.broadcast %cst_209 : f32 to vector<17x1xf32>
    %578 = arith.divf %576, %577 : vector<17x1xf32>
    %579 = vector.broadcast %571 : vector<17x1xf32> to vector<17x32xf32>
    %580 = arith.subf %565, %579 : vector<17x32xf32>
    %cst_210 = arith.constant 9.99999974E-6 : f32
    %581 = vector.broadcast %cst_210 : f32 to vector<17x1xf32>
    %582 = arith.addf %578, %581 : vector<17x1xf32>
    %583 = math.rsqrt %582 : vector<17x1xf32>
    %584 = vector.broadcast %583 : vector<17x1xf32> to vector<17x32xf32>
    %585 = arith.mulf %580, %584 : vector<17x32xf32>
    %586 = vector.broadcast %566 : vector<1x32xf32> to vector<17x32xf32>
    %587 = arith.mulf %585, %586 : vector<17x32xf32>
    %588 = vector.broadcast %567 : vector<1x32xf32> to vector<17x32xf32>
    %589 = arith.addf %587, %588 : vector<17x32xf32>
    %590 = arith.truncf %589 : vector<17x32xf32> to vector<17x32xbf16>
    %c0_211 = arith.constant 0 : index
    %c0_212 = arith.constant 0 : index
    %591 = vector.load %arg24[%c0_211, %c0_212] : memref<32x128xbf16, #tpu.memory_space<vmem>>, vector<32x128xbf16>
    %cst_213 = arith.constant dense<0.000000e+00> : vector<17x128xf32>
    %592 = tpu.matmul %590, %591, %cst_213 {dimension_numbers = #tpu.dot_dimension_numbers<[1], [0], [0], [1], [0, 0, 1, 1], [], []>} : vector<17x32xbf16>, vector<32x128xbf16>, vector<17x128xf32> -> vector<17x128xf32>
    %593 = vector.extract_strided_slice %0 {offsets = [5, 0], sizes = [1, 128], strides = [1, 1]} : vector<6x128xf32> to vector<1x128xf32>
    %594 = vector.broadcast %593 : vector<1x128xf32> to vector<17x128xf32>
    %595 = arith.addf %592, %594 : vector<17x128xf32>
    %c0_214 = arith.constant 0 : index
    %c0_215 = arith.constant 0 : index
    %c0_216 = arith.constant 0 : index
    %596 = vector.load %arg5[%c0_214, %c0_215, %c0_216] : memref<1x17x128xf32, #tpu.memory_space<vmem>>, vector<1x17x128xf32>
    %597 = vector.shape_cast %596 : vector<1x17x128xf32> to vector<17x128xf32>
    %598 = arith.subf %595, %597 : vector<17x128xf32>
    %599 = arith.mulf %598, %598 : vector<17x128xf32>
    %c0_217 = arith.constant 0 : index
    %c0_218 = arith.constant 0 : index
    %c0_219 = arith.constant 0 : index
    %600 = vector.load %arg6[%c0_217, %c0_218, %c0_219] : memref<1x17x1xf32, #tpu.memory_space<vmem>>, vector<1x17x1xf32>
    %601 = vector.shape_cast %600 : vector<1x17x1xf32> to vector<17x1xf32>
    %602 = vector.broadcast %601 : vector<17x1xf32> to vector<17x128xf32>
    %603 = arith.mulf %599, %602 : vector<17x128xf32>
    %cst_220 = arith.constant dense<0.000000e+00> : vector<17xf32>
    %604 = vector.multi_reduction <add>, %603, %cst_220 [1] : vector<17x128xf32> to vector<17xf32>
    %605 = vector.shape_cast %604 : vector<17xf32> to vector<17x1xf32>
    %cst_221 = arith.constant dense<0.000000e+00> : vector<1xf32>
    %606 = vector.multi_reduction <add>, %605, %cst_221 [0] : vector<17x1xf32> to vector<1xf32>
    %607 = vector.shape_cast %606 : vector<1xf32> to vector<1x1xf32>
    %608 = tpu.iota {dimensions = array<i32: 0>} : vector<17x128xi32>
    %609 = tpu.iota {dimensions = array<i32: 1>} : vector<17x128xi32>
    %c0_i32 = arith.constant 0 : i32
    %610 = vector.broadcast %c0_i32 : i32 to vector<17x128xi32>
    %611 = arith.cmpi eq, %608, %610 : vector<17x128xi32>
    %c48_i32 = arith.constant 48 : i32
    %612 = vector.broadcast %c48_i32 : i32 to vector<17x128xi32>
    %613 = arith.cmpi eq, %609, %612 : vector<17x128xi32>
    %614 = arith.andi %611, %613 : vector<17x128xi1>
    %cst_222 = arith.constant 8.68055562E-4 : f32
    %615 = vector.broadcast %cst_222 : f32 to vector<1x1xf32>
    %616 = arith.mulf %607, %615 : vector<1x1xf32>
    %617 = vector.shape_cast %616 : vector<1x1xf32> to vector<1x1xf32>
    %618 = vector.broadcast %617 : vector<1x1xf32> to vector<17x128xf32>
    %619 = arith.select %614, %618, %595 : vector<17x128xi1>, vector<17x128xf32>
    %c0_223 = arith.constant 0 : index
    %c0_224 = arith.constant 0 : index
    %c0_225 = arith.constant 0 : index
    %620 = vector.load %arg25[%c0_223, %c0_224, %c0_225] : memref<1x17x128xf32, #tpu.memory_space<vmem>>, vector<1x17x128xf32>
    %621 = vector.shape_cast %620 : vector<1x17x128xf32> to vector<17x128xf32>
    %622 = vector.shape_cast %619 : vector<17x128xf32> to vector<1x17x128xf32>
    tpu.vector_store %arg25[%c0_223, %c0_224, %c0_225], %622 {strides = array<i32>} : memref<1x17x128xf32, #tpu.memory_space<vmem>>, vector<1x17x128xf32>,
    return
  }
  func.func @transform_0(%arg0: i32) -> (i32, i32, i32) {
    %c0_i32 = arith.constant 0 : i32
    %c0_i32_0 = arith.constant 0 : i32
    %c0_i32_1 = arith.constant 0 : i32
    return %arg0, %c0_i32, %c0_i32_0 : i32, i32, i32
  }
  func.func @transform_1(%arg0: i32) -> (i32, i32, i32) {
    %c0_i32 = arith.constant 0 : i32
    %c0_i32_0 = arith.constant 0 : i32
    %c0_i32_1 = arith.constant 0 : i32
    return %arg0, %c0_i32, %c0_i32_0 : i32, i32, i32
  }
  func.func @transform_2(%arg0: i32) -> (i32, i32, i32) {
    %c0_i32 = arith.constant 0 : i32
    %c0_i32_0 = arith.constant 0 : i32
    %c0_i32_1 = arith.constant 0 : i32
    return %arg0, %c0_i32, %c0_i32_0 : i32, i32, i32
  }
  func.func @transform_3(%arg0: i32) -> (i32, i32, i32) {
    %c0_i32 = arith.constant 0 : i32
    %c0_i32_0 = arith.constant 0 : i32
    %c0_i32_1 = arith.constant 0 : i32
    return %arg0, %c0_i32, %c0_i32_0 : i32, i32, i32
  }
  func.func @transform_4(%arg0: i32) -> (i32, i32, i32) {
    %c0_i32 = arith.constant 0 : i32
    %c0_i32_0 = arith.constant 0 : i32
    %c0_i32_1 = arith.constant 0 : i32
    return %arg0, %c0_i32, %c0_i32_0 : i32, i32, i32
  }
  func.func @transform_5(%arg0: i32) -> (i32, i32, i32) {
    %c0_i32 = arith.constant 0 : i32
    %c0_i32_0 = arith.constant 0 : i32
    %c0_i32_1 = arith.constant 0 : i32
    return %arg0, %c0_i32, %c0_i32_0 : i32, i32, i32
  }
  func.func @transform_6(%arg0: i32) -> (i32, i32) {
    %c0_i32 = arith.constant 0 : i32
    %c0_i32_0 = arith.constant 0 : i32
    %c0_i32_1 = arith.constant 0 : i32
    return %c0_i32, %c0_i32_0 : i32, i32
  }
  func.func @transform_7(%arg0: i32) -> (i32, i32, i32) {
    %c0_i32 = arith.constant 0 : i32
    %c0_i32_0 = arith.constant 0 : i32
    %c0_i32_1 = arith.constant 0 : i32
    %c0_i32_2 = arith.constant 0 : i32
    return %c0_i32, %c0_i32_0, %c0_i32_1 : i32, i32, i32
  }
  func.func @transform_8(%arg0: i32) -> (i32, i32, i32) {
    %c0_i32 = arith.constant 0 : i32
    %c0_i32_0 = arith.constant 0 : i32
    %c0_i32_1 = arith.constant 0 : i32
    %c0_i32_2 = arith.constant 0 : i32
    return %c0_i32, %c0_i32_0, %c0_i32_1 : i32, i32, i32
  }
  func.func @transform_9(%arg0: i32) -> (i32, i32, i32) {
    %c0_i32 = arith.constant 0 : i32
    %c0_i32_0 = arith.constant 0 : i32
    %c0_i32_1 = arith.constant 0 : i32
    %c0_i32_2 = arith.constant 0 : i32
    return %c0_i32, %c0_i32_0, %c0_i32_1 : i32, i32, i32
  }
  func.func @transform_10(%arg0: i32) -> (i32, i32, i32) {
    %c0_i32 = arith.constant 0 : i32
    %c0_i32_0 = arith.constant 0 : i32
    %c0_i32_1 = arith.constant 0 : i32
    %c0_i32_2 = arith.constant 0 : i32
    return %c0_i32, %c0_i32_0, %c0_i32_1 : i32, i32, i32
  }
  func.func @transform_11(%arg0: i32) -> (i32, i32, i32) {
    %c0_i32 = arith.constant 0 : i32
    %c0_i32_0 = arith.constant 0 : i32
    %c0_i32_1 = arith.constant 0 : i32
    %c0_i32_2 = arith.constant 0 : i32
    return %c0_i32, %c0_i32_0, %c0_i32_1 : i32, i32, i32
  }
  func.func @transform_12(%arg0: i32) -> (i32, i32, i32) {
    %c0_i32 = arith.constant 0 : i32
    %c0_i32_0 = arith.constant 0 : i32
    %c0_i32_1 = arith.constant 0 : i32
    %c0_i32_2 = arith.constant 0 : i32
    return %c0_i32, %c0_i32_0, %c0_i32_1 : i32, i32, i32
  }
  func.func @transform_13(%arg0: i32) -> (i32, i32, i32) {
    %c0_i32 = arith.constant 0 : i32
    %c0_i32_0 = arith.constant 0 : i32
    %c0_i32_1 = arith.constant 0 : i32
    %c0_i32_2 = arith.constant 0 : i32
    return %c0_i32, %c0_i32_0, %c0_i32_1 : i32, i32, i32
  }
  func.func @transform_14(%arg0: i32) -> (i32, i32) {
    %c0_i32 = arith.constant 0 : i32
    %c0_i32_0 = arith.constant 0 : i32
    %c0_i32_1 = arith.constant 0 : i32
    return %c0_i32, %c0_i32_0 : i32, i32
  }
  func.func @transform_15(%arg0: i32) -> (i32, i32) {
    %c0_i32 = arith.constant 0 : i32
    %c0_i32_0 = arith.constant 0 : i32
    %c0_i32_1 = arith.constant 0 : i32
    return %c0_i32, %c0_i32_0 : i32, i32
  }
  func.func @transform_16(%arg0: i32) -> (i32, i32, i32) {
    %c0_i32 = arith.constant 0 : i32
    %c0_i32_0 = arith.constant 0 : i32
    %c0_i32_1 = arith.constant 0 : i32
    %c0_i32_2 = arith.constant 0 : i32
    return %c0_i32, %c0_i32_0, %c0_i32_1 : i32, i32, i32
  }
  func.func @transform_17(%arg0: i32) -> (i32, i32, i32) {
    %c0_i32 = arith.constant 0 : i32
    %c0_i32_0 = arith.constant 0 : i32
    %c0_i32_1 = arith.constant 0 : i32
    %c0_i32_2 = arith.constant 0 : i32
    return %c0_i32, %c0_i32_0, %c0_i32_1 : i32, i32, i32
  }
  func.func @transform_18(%arg0: i32) -> (i32, i32, i32) {
    %c0_i32 = arith.constant 0 : i32
    %c0_i32_0 = arith.constant 0 : i32
    %c0_i32_1 = arith.constant 0 : i32
    %c0_i32_2 = arith.constant 0 : i32
    return %c0_i32, %c0_i32_0, %c0_i32_1 : i32, i32, i32
  }
  func.func @transform_19(%arg0: i32) -> (i32, i32, i32) {
    %c0_i32 = arith.constant 0 : i32
    %c0_i32_0 = arith.constant 0 : i32
    %c0_i32_1 = arith.constant 0 : i32
    %c0_i32_2 = arith.constant 0 : i32
    return %c0_i32, %c0_i32_0, %c0_i32_1 : i32, i32, i32
  }
  func.func @transform_20(%arg0: i32) -> (i32, i32, i32) {
    %c0_i32 = arith.constant 0 : i32
    %c0_i32_0 = arith.constant 0 : i32
    %c0_i32_1 = arith.constant 0 : i32
    %c0_i32_2 = arith.constant 0 : i32
    return %c0_i32, %c0_i32_0, %c0_i32_1 : i32, i32, i32
  }
  func.func @transform_21(%arg0: i32) -> (i32, i32, i32) {
    %c0_i32 = arith.constant 0 : i32
    %c0_i32_0 = arith.constant 0 : i32
    %c0_i32_1 = arith.constant 0 : i32
    %c0_i32_2 = arith.constant 0 : i32
    return %c0_i32, %c0_i32_0, %c0_i32_1 : i32, i32, i32
  }
  func.func @transform_22(%arg0: i32) -> (i32, i32, i32) {
    %c0_i32 = arith.constant 0 : i32
    %c0_i32_0 = arith.constant 0 : i32
    %c0_i32_1 = arith.constant 0 : i32
    %c0_i32_2 = arith.constant 0 : i32
    return %c0_i32, %c0_i32_0, %c0_i32_1 : i32, i32, i32
  }
  func.func @transform_23(%arg0: i32) -> (i32, i32) {
    %c0_i32 = arith.constant 0 : i32
    %c0_i32_0 = arith.constant 0 : i32
    %c0_i32_1 = arith.constant 0 : i32
    return %c0_i32, %c0_i32_0 : i32, i32
  }
  func.func @transform_24(%arg0: i32) -> (i32, i32, i32) {
    %c0_i32 = arith.constant 0 : i32
    %c0_i32_0 = arith.constant 0 : i32
    %c0_i32_1 = arith.constant 0 : i32
    return %arg0, %c0_i32, %c0_i32_0 : i32, i32, i32
  }
}

</mosaic_0001>

<bundles_post_ra>
// kernel: forward.1
= control target key start
LH: loop header
LB: loop body
LE: loop exit
PB: predicated region body
PF: predicated region fallthrough
CT: control target
= control target key end

     0   :  { %s7449_s0 = inlined_call_operand.vmem [shape: bf16[2,5,48], index: 0, kind: input, shape index: {}]   ;;  %s7450_s1 = inlined_call_operand.vmem [shape: f32[2,5,32], index: 1, kind: input, shape index: {}]   ;;  %s7451_s2 = inlined_call_operand.vmem [shape: f32[2,17,5], index: 2, kind: input, shape index: {}]   ;;  %s7452_s3 = inlined_call_operand.vmem [shape: f32[2,17,32], index: 3, kind: input, shape index: {}]   ;;  %s7453_s4 = inlined_call_operand.vmem [shape: f32[2,17,128], index: 4, kind: input, shape index: {}]   ;;  %s7454_s5 = inlined_call_operand.vmem [shape: f32[2,17,1], index: 5, kind: input, shape index: {}]   ;;  %s7455_s6 = inlined_call_operand.vmem [shape: bf16[48,32], index: 6, kind: input, shape index: {}]   ;;  %s7456_s7 = inlined_call_operand.vmem [shape: bf16[2,32,32], index: 7, kind: input, shape index: {}]   ;;  %s7457_s8 = inlined_call_operand.vmem [shape: bf16[2,32,32], index: 8, kind: input, shape index: {}]   ;;  %s7458_s9 = inlined_call_operand.vmem [shape: bf16[2,32,32], index: 9, kind: input, shape index: {}]   ;;  %s7459_s10 = inlined_call_operand.vmem [shape: bf16[2,32,32], index: 10, kind: input, shape index: {}]   ;;  %s7460_s11 = inlined_call_operand.vmem [shape: bf16[2,32,128], index: 11, kind: input, shape index: {}]   ;;  %s7461_s12 = inlined_call_operand.vmem [shape: bf16[2,128,32], index: 12, kind: input, shape index: {}]   ;;  %s7462_s13 = inlined_call_operand.vmem [shape: f32[2,10,128], index: 13, kind: input, shape index: {}]   ;;  %s7463_s14 = inlined_call_operand.vmem [shape: f32[6,128], index: 14, kind: input, shape index: {}]   ;;  %s7464_s15 = inlined_call_operand.vmem [shape: bf16[32,32], index: 15, kind: input, shape index: {}]   ;;  %s7465_s16 = inlined_call_operand.vmem [shape: bf16[1,32,32], index: 16, kind: input, shape index: {}]   ;;  %s7466_s17 = inlined_call_operand.vmem [shape: bf16[1,32,32], index: 17, kind: input, shape index: {}]   ;;  %s7467_s18 = inlined_call_operand.vmem [shape: bf16[1,32,32], index: 18, kind: input, shape index: {}]   ;;  %s7468_s19 = inlined_call_operand.vmem [shape: bf16[1,32,32], index: 19, kind: input, shape index: {}]   ;;  %s7469_s20 = inlined_call_operand.vmem [shape: bf16[1,32,128], index: 20, kind: input, shape index: {}]   ;;  %s7470_s21 = inlined_call_operand.vmem [shape: bf16[1,128,32], index: 21, kind: input, shape index: {}]   ;;  %s7471_s22 = inlined_call_operand.vmem [shape: f32[1,10,128], index: 22, kind: input, shape index: {}]   ;;  %s7472_s23 = inlined_call_operand.vmem [shape: bf16[32,128], index: 23, kind: input, shape index: {}]   ;;  %s7473_s24 = inlined_call_operand.vmem [shape: f32[2,17,128], index: 24, kind: output, shape index: {}]  }
   0x1   :  { %7491 = sst [smem:[#allocation2_spill]] %s7449_s0 }
   0x2   :  { %7492 = sst [smem:[#allocation3_spill]] %s7450_s1 }
   0x3   :  { %7493 = sst [smem:[#allocation4_spill]] %s7451_s2 }
   0x4   :  { %7494 = sst [smem:[#allocation5_spill]] %s7452_s3 }
   0x5   :  { %7495 = sst [smem:[#allocation6_spill]] %s7453_s4 }
   0x6   :  { %7496 = sst [smem:[#allocation7_spill]] %s7454_s5  ;;  %s6513_s5 = smov 0  }
   0x7   :  { %7497 = sst [smem:[#allocation8_spill]] %s7455_s6 }
   0x8   :  { %7498 = sst [smem:[#allocation9_spill]] %s7456_s7 }
   0x9   :  { %7499 = sst [smem:[#allocation10_spill]] %s7457_s8 }
   0xa LB: > { %s5352_s26 = sadd.s32 4294967295, %s6377_s5   ;;  %p5356_p0 = scmp.ge.s32.totalorder %s6377_s5, 1  ;;  %s6377_s5 = sphi %s6513_s5, %s34_s5  }
   0xb   : > { %p710_p1 = scmp.lt.s32.totalorder %s6377_s5, 3 }
   0xd   : > { %p711_p2 = pnand %p5356_p0, %p710_p1 }
   0xe   : > { %s7500_s6 = sld [smem:[#allocation8_spill]] (!%p711_p2)  ;;  %p799_p3 = scmp.lt.s32.totalorder (!%p711_p2), %s5352_s26, 1 }
   0xf   : > { %714 = sbr.rel (%p711_p2) target bundleno = 9415 (0x24c7), region = 116  ;;  %s7501_s8 = sld [smem:[#allocation2_spill]] (!%p711_p2) }
  0x10   : > { %s7502_s2 = sld [smem:[#allocation3_spill]] (!%p711_p2)  ;;  %s7477_s25 = smov (!%p711_p2), 24  }
  0x11   : > { %s7504_s7 = sld [smem:[#allocation10_spill]] (!%p711_p2)  ;;  %s7505_s27 = smov (!%p711_p2), 104  }
  0x12   : > { %s7506_s3 = smov (!%p711_p2), 8  }
  0x14   : > { %v6190_v0 = vld [vmem:[%s7500_s6 + $0x10] sm:$0xff]   ;;  %v6379_v1 = vmov 0.0   ;;  %v6191_v2 = vld [vmem:[%s7500_s6 + $0x8] sm:$0xff]   ;;  %vm6380_vm0 = vmmov 0   ;;  %s7516_s26 = smov (!%p799_p3, %s5352_s26), 1  ;;  %v6192_v3 = vld [vmem:[%s7500_s6] sm:$0xff]   ;;  %v921_v24 = vlaneseq }
  0x15   : > { %5738 = vmatprep.subr.bf16.mxu0 %v6379_v1  ;;  %5748 = vmatprep.subr.bf16.mxu1 %v6379_v1  ;;  %s5357_s30 = sshll.u32 %s7516_s26, 2  ;;  %vm860_vm1 = vcmask 392192   ;;  %s5358_s1 = sshll.u32 %s7516_s26, 3  ;;  %vm906_vm2 = vcmask 258048   ;;  %v6194_v18 = vld [vmem:[%s7458_s9 + $0x8] sm:$0xff]   ;;  %v6196_v20 = vld [vmem:[%s7458_s9] sm:$0xff]  }
  0x16   : > { %5739 = vmatpush3.bf16.msra.mxu0 %v6190_v0  ;;  %5744 = vmatprep.mubr.msk.bf16.mxu0 %vm6380_vm0, %v6379_v1  ;;  %s802_s4 = scalar_lea.vmem %s7501_s8, %s5357_s30  ;;  %s806_s29 = scalar_lea.vmem %s7502_s2, %s5358_s1  ;;  %v6574_v25 = vshrl.u32 %v921_v24, 7  ;;  %v6582_v27 = vld [vmem:[%s7462_s13] sm:$0xff]  ;;  %vm952_vm3 = vcmask 261120   ;;  %vm1210_vm4 = vcmask 1044480   ;;  %vm1116_vm5 = vcmask 64512  }
  0x17   : > { %5740 = vmatprep.subr.bf16.mxu0 %v6379_v1  ;;  %5752 = vmatprep.mubr.msk.bf16.mxu1 %vm6380_vm0, %v6379_v1  ;;  %v834_v4 = vld [vmem:[%s802_s4] sm:$0x7]  ;;  %s7503_s30 = sld [smem:[#allocation9_spill]]  ;;  %v6197_v35 = vld [vmem:[%s7504_s7 + $0x8] sm:$0xff]   ;;  %s7487_s8 = smov 120   ;;  %vm1194_vm6 = vcmask 36864  }
  0x18   : > { %v841_v5 = vld [vmem:[%s806_s29] sm:$0x1f]  ;;  %v6577_v26 = vsub.s32 0, %v6574_v25  ;;  %v6585_v28 = vsub.s32 1, %v6574_v25  ;;  %v6609_v38 = vsub.s32 2, %v6574_v25  ;;  %v6612_v39 = vsub.s32 4, %v6574_v25 }
  0x19   : > { %v6198_v37 = vld [vmem:[%s7504_s7] sm:$0xff]   ;;  %v6621_v46 = vsub.s32 3, %v6574_v25  ;;  %s7485_s4 = smov 112   ;;  %s7483_s1 = smov 104   ;;  %vm1206_vm7 = vcmask 39936   ;;  %vm1798_vm8 = vcmask 130048  }
  0x1a   : > { %5741 = vmatpush3.bf16.msra.mxu0 %v6191_v2  ;;  %v924_v29 = vrot.slane %v6582_v27, %v6577_v26  ;;  %v929_v32 = vrot.slane %v6582_v27, %v6585_v28  ;;  %v939_v40 = vrot.slane %v6582_v27, %v6609_v38  ;;  %v1063_v41 = vrot.slane %v6582_v27, %v6612_v39  ;;  %s7481_s2 = smov 8   ;;  %s7479_s29 = smov 16  }
  0x1b   : > { %5742 = vmatprep.subr.bf16.mxu0 %v6379_v1  ;;  %v1003_v51 = vrot.slane %v6582_v27, %v6621_v46  ;;  %vm1800_vm9 = vcmask 195584   ;;  %s6990_s28 = smul.u32 24, %s7516_s26  ;;  %vm3433_vm10 = vcmask 253952   ;;  %vm3838_vm11 = vcmask 1040384  }
  0x1c   : > { %vm3794_vm12 = vcmask 138240   ;;  %vm3801_vm13 = vcmask 131072   ;;  %vm5223_vm14 = vcmp.eq.s32.totalorder %v6574_v25, 0 }
  0x1d   : > { %v6193_v17 = vld [vmem:[%s7503_s30 + $0x8] sm:$0xff]   ;;  %v6195_v19 = vld [vmem:[%s7503_s30] sm:$0xff]   ;;  %s7437_s26 = scalar_lea.vmem %s7473_s24, %s6990_s28 }
  0x1e   : > { %5743 = vmatpush3.bf16.msra.mxu0 %v6192_v3  ;;  %5749 = vmatpush3.bf16.msra.mxu1 %v6193_v17 }
  0x1f   : > { %5764 = vmatprep.subr.bf16.mxu0 %v6379_v1  ;;  %5750 = vmatprep.subr.bf16.mxu1 %v6379_v1 }
  0x21   : > { %5745 = vmatmul.mubr.msk.bf16.vlgmr.msra.gmra.mxu0 %vm860_vm1, %v834_v4 }
  0x22   : > { %5768 = vmatprep.mubr.msk.bf16.mxu0 %vm6380_vm0, %v6379_v1  ;;  %5765 = vmatpush3.bf16.msra.mxu0 %v6194_v18 }
  0x23   : > { %5766 = vmatprep.subr.bf16.mxu0 %v6379_v1  ;;  %5751 = vmatpush3.bf16.msra.mxu1 %v6195_v19 }
  0x24   : > { %5756 = vmatprep.subr.bf16.mxu1 %v6379_v1 }
  0x26   : > { %5767 = vmatpush3.bf16.msra.mxu0 %v6196_v20 }
  0x27   : > { %5777 = vmatprep.subr.mxu0 %v6379_v1 }
  0xe1   : > { %v898_v6 = vpop.f32.mrf.mxu0 }
  0xe2   : > { %v6551_v7 = vadd.f32 %v898_v6, %v841_v5 }
  0xe3   : > { %v5746_v8 = vpop.f32.mrf.mxu0 }
  0xe4   : > { %v907_v9 = vsel %vm906_vm2, %v6551_v7, 0.0 }
  0xe5   : > { %908 = vadd.xlane.f32.xlu0 %v907_v9  ;;  %v901_v10 = vpop.f32.mrf.mxu0 }
  0xe7   : > { %v5747_v11 = vpop.f32.mrf.mxu0 }
 0x16e   : > { %v909_v12 = vpop.xlane.xlu0 %908 }
 0x16f   : > { %v911_v13 = vmul.f32 0.03125, %v909_v12 }
 0x171   : > { %v912_v14 = vsub.f32 %v6551_v7, %v911_v13 }
 0x173   : > { %v913_v15 = vmul.f32 %v912_v14, %v912_v14 }
 0x175   : > { %v914_v16 = vsel %vm906_vm2, %v913_v15, 0.0 }
 0x176   : > { %915 = vadd.xlane.f32.xlu0 %v914_v16 }
 0x1ff   : > { %v916_v21 = vpop.xlane.xlu0 %915 }
 0x200   : > { %v917_v22 = vmul.f32 0.03125, %v916_v21 }
 0x202   : > { %v918_v23 = vadd.f32 1e-05, %v917_v22 }
 0x204   : > { %6251 = vrsqrt.f32 %v918_v23 }
 0x211   : > { %v6252_v30 = vpop.eup %6251 }
 0x212   : > { %v920_v31 = vmul.f32 %v6252_v30, %v912_v14 }
 0x214   : > { %v925_v33 = vmul.f32 %v924_v29, %v920_v31 }
 0x216   : > { %v930_v34 = vadd.f32 %v929_v32, %v925_v33 }
 0x218   : > { %v931_v36 = vpack.c.bf16 %v930_v34, %v930_v34 }
 0x21a   : > { %5753 = vmatmul.mubr.msk.bf16.vlgmr.msra.gmra.mxu1 %vm952_vm3, %v931_v36  ;;  %5769 = vmatmul.mubr.msk.bf16.vlgmr.msra.gmra.mxu0 %vm952_vm3, %v931_v36 }
 0x21b   : > { %5757 = vmatpush3.bf16.msra.mxu1 %v6197_v35  ;;  %5760 = vmatprep.mubr.msk.bf16.mxu1 %vm6380_vm0, %v6379_v1 }
 0x21c   : > { %5758 = vmatprep.subr.bf16.mxu1 %v6379_v1  ;;  %5779 = vmatprep.mubr.msk.f32.mxu0 %vm6380_vm0, %v6379_v1 }
 0x21f   : > { %5759 = vmatpush3.bf16.msra.mxu1 %v6198_v37 }
 0x220   : > { %5772 = vmatprep.subr.mxu1 %v6379_v1 }
 0x222   : > { %5761 = vmatmul.mubr.msk.bf16.vlgmr.msra.gmra.mxu1 %vm952_vm3, %v931_v36 }
 0x223   : > { %5774 = vmatprep.mubr.msk.f32.mxu1 %vm6380_vm0, %v6379_v1 }
 0x2da   : > { %v990_v42 = vpop.f32.mrf.mxu1  ;;  %v1110_v43 = vpop.f32.mrf.mxu0 }
 0x2db   : > { %v991_v44 = vadd.f32 %v990_v42, %v939_v40  ;;  %v6618_v45 = vadd.f32 %v1110_v43, %v1063_v41 }
 0x2dc   : > { %v5754_v47 = vpop.f32.mrf.mxu1  ;;  %v5770_v48 = vpop.f32.mrf.mxu0 }
 0x2dd   : > { %1284 = vrot.lane.b32.xlu1 %v991_v44, %s7487_s8  ;;  %5778 = vmatpush3.msk.msra.mxu0 %vm1210_vm4, %v6618_v45 }
 0x2de   : > { %v993_v49 = vpop.f32.mrf.mxu1  ;;  %v1113_v50 = vpop.f32.mrf.mxu0  ;;  %5787 = vmatprep.subr.mxu0 %v6379_v1 }
 0x2e0   : > { %v5755_v52 = vpop.f32.mrf.mxu1  ;;  %v5771_v53 = vpop.f32.mrf.mxu0 }
 0x2e2   : > { %v1050_v54 = vpop.f32.mrf.mxu1 }
 0x2e3   : > { %v1051_v55 = vadd.f32 %v1050_v54, %v1003_v51 }
 0x2e4   : > { %v5762_v56 = vpop.f32.mrf.mxu1 }
 0x2e5   : > { %1453 = vrot.lane.b32.xlu0 %v1051_v55, %s7485_s4  ;;  %1286 = vrot.lane.b32.xlu1 %v1051_v55, %s7487_s8 }
 0x2e6   : > { %5773 = vmatpush3.xpose.msk.msra.mxu1 %vm1116_vm5, %v1051_v55  ;;  %v1053_v57 = vpop.f32.mrf.mxu1 }
 0x2e7   : > { %5782 = vmatprep.subr.mxu1 %v6379_v1 }
 0x2e8   : > { %v5763_v58 = vpop.f32.mrf.mxu1 }
 0x2e9   : > { %5775 = vmatmul.mubr.msk.f32.vlgmr.msra.gmra.mxu1 %vm1116_vm5, %v991_v44  ;;  %1451 = vrot.lane.b32.xlu1 %v991_v44, %s7485_s4 }
 0x2ea   : > { %5784 = vmatprep.mubr.msk.f32.mxu1 %vm6380_vm0, %v6379_v1 }
 0x2ed   : > { %1620 = vrot.lane.b32.xlu1 %v1051_v55, %s7483_s1 }
 0x2f1   : > { %1618 = vrot.lane.b32.xlu1 %v991_v44, %s7483_s1 }
 0x34f   : > { %v1285_v59 = vpop.permute.xlu1 %1284 }
 0x357   : > { %v1287_v60 = vpop.permute.xlu1 %1286  ;;  %v1454_v61 = vpop.permute.xlu0 %1453 }
 0x358   : > { %5783 = vmatpush3.xpose.msk.msra.mxu1 %vm1116_vm5, %v1287_v60 }
 0x359   : > { %5792 = vmatprep.subr.mxu1 %v6379_v1 }
 0x35b   : > { %v1452_v62 = vpop.permute.xlu1 %1451  ;;  %5785 = vmatmul.mubr.msk.f32.vlgmr.msra.gmra.mxu1 %vm1116_vm5, %v1285_v59 }
 0x35c   : > { %5793 = vmatpush3.xpose.msk.msra.mxu1 %vm1116_vm5, %v1454_v61  ;;  %5794 = vmatprep.mubr.msk.f32.mxu1 %vm6380_vm0, %v6379_v1 }
 0x35d   : > { %5802 = vmatprep.subr.mxu1 %v6379_v1 }
 0x35f   : > { %v1621_v63 = vpop.permute.xlu1 %1620  ;;  %5795 = vmatmul.mubr.msk.f32.vlgmr.msra.gmra.mxu1 %vm1116_vm5, %v1452_v62 }
 0x360   : > { %5803 = vmatpush3.xpose.msk.msra.mxu1 %vm1116_vm5, %v1621_v63  ;;  %5804 = vmatprep.mubr.msk.f32.mxu1 %vm6380_vm0, %v6379_v1 }
 0x361   : > { %5812 = vmatprep.subr.bf16.mxu1 %v6379_v1 }
 0x363   : > { %v1619_v0 = vpop.permute.xlu1 %1618 }
 0x364   : > { %5805 = vmatmul.mubr.msk.f32.vlgmr.msra.gmra.mxu1 %vm1116_vm5, %v1619_v0  ;;  %v6199_v0 = vld [vmem:[%s7459_s10 + $0x8] sm:$0xff]  }
 0x365   : > { %5816 = vmatprep.mubr.msk.bf16.mxu1 %vm6380_vm0, %v6379_v1  ;;  %5813 = vmatpush3.bf16.msra.mxu1 %v6199_v0 }
 0x366   : > { %5814 = vmatprep.subr.bf16.mxu1 %v6379_v1 }
 0x3a9   : > { %v1189_v2 = vpop.f32.mrf.mxu1 }
 0x3aa   : > { %v1193_v3 = vmul.f32 0.35355338, %v1189_v2 }
 0x3ab   : > { %v5776_v4 = vpop.f32.mrf.mxu1 }
 0x3ac   : > { %v1195_v5 = vsel %vm1194_vm6, %v1193_v3, -inf }
 0x3ad   : > { %1196 = vmax.xlane.f32.xlu1 %v1195_v5 }
 0x41b   : > { %v1358_v6 = vpop.f32.mrf.mxu1 }
 0x41c   : > { %v1362_v8 = vmul.f32 0.35355338, %v1358_v6  ;;  %v6200_v6 = vld [vmem:[%s7459_s10] sm:$0xff]  }
 0x41d   : > { %v5786_v9 = vpop.f32.mrf.mxu1  ;;  %5815 = vmatpush3.bf16.msra.mxu1 %v6200_v6 }
 0x41e   : > { %v1363_v10 = vsel %vm1194_vm6, %v1362_v8, -inf  ;;  %5828 = vmatprep.subr.bf16.mxu1 %v6379_v1 }
 0x41f   : > { %1364 = vmax.xlane.f32.xlu0 %v1363_v10  ;;  %v1525_v11 = vpop.f32.mrf.mxu1 }
 0x420   : > { %v1529_v12 = vmul.f32 0.35355338, %v1525_v11 }
 0x421   : > { %v5796_v13 = vpop.f32.mrf.mxu1 }
 0x422   : > { %v1530_v14 = vsel %vm1194_vm6, %v1529_v12, -inf }
 0x423   : > { %1531 = vmax.xlane.f32.xlu1 %v1530_v14 }
 0x424   : > { %v1692_v15 = vpop.f32.mrf.mxu1 }
 0x425   : > { %v1696_v16 = vmul.f32 0.35355338, %v1692_v15 }
 0x426   : > { %v5806_v17 = vpop.f32.mrf.mxu1 }
 0x427   : > { %v1697_v18 = vsel %vm1194_vm6, %v1696_v16, -inf  ;;  %v6704_v17 = vsub.s32 5, %v6574_v25 }
 0x428   : > { %1698 = vmax.xlane.f32.xlu1 %v1697_v18 }
 0x429   : > { %v1810_v18 = vrot.slane %v6582_v27, %v6704_v17 }
 0x436   : > { %v1197_v19 = vpop.xlane.xlu1 %1196 }
 0x437   : > { %v1198_v20 = vsub.f32 %v1193_v3, %v1197_v19 }
 0x439   : > { %v1199_v21 = vmul.f32 1.442695, %v1198_v20 }
 0x43b   : > { %6253 = vpow2.f32 %v1199_v21 }
 0x448   : > { %v6254_v22 = vpop.eup %6253 }
 0x449   : > { %v1201_v23 = vsel %vm1194_vm6, %v6254_v22, 0.0 }
 0x44a   : > { %1202 = vadd.xlane.f32.xlu0 %v1201_v23 }
 0x4a8   : > { %v1365_v29 = vpop.xlane.xlu0 %1364 }
 0x4a9   : > { %v1366_v30 = vsub.f32 %v1362_v8, %v1365_v29 }
 0x4ab   : > { %v1367_v31 = vmul.f32 1.442695, %v1366_v30 }
 0x4ac   : > { %v1532_v32 = vpop.xlane.xlu1 %1531 }
 0x4ad   : > { %6255 = vpow2.f32 %v1367_v31  ;;  %v1533_v33 = vsub.f32 %v1529_v12, %v1532_v32 }
 0x4af   : > { %v1534_v34 = vmul.f32 1.442695, %v1533_v33 }
 0x4b1   : > { %6257 = vpow2.f32 %v1534_v34  ;;  %v1699_v42 = vpop.xlane.xlu1 %1698 }
 0x4b2   : > { %v1700_v43 = vsub.f32 %v1696_v16, %v1699_v42  ;;  %v6724_v42 = vsub.s32 6, %v6574_v25 }
 0x4b4   : > { %v1701_v44 = vmul.f32 1.442695, %v1700_v43  ;;  %v6727_v43 = vsub.s32 7, %v6574_v25 }
 0x4ba   : > { %v6256_v35 = vpop.eup %6255 }
 0x4bb   : > { %v1369_v36 = vsel %vm1194_vm6, %v6256_v35, 0.0 }
 0x4bc   : > { %1370 = vadd.xlane.f32.xlu1 %v1369_v36  ;;  %v6201_v36 = vld [vmem:[%s7460_s11 + $0x8] sm:$0xff]  }
 0x4be   : > { %v6258_v37 = vpop.eup %6257 }
 0x4bf   : > { %v1536_v40 = vsel %vm1194_vm6, %v6258_v37, 0.0 }
 0x4c0   : > { %1537 = vadd.xlane.f32.xlu0 %v1536_v40 }
 0x4cd   : > { %1541 = vrot.lane.b32.xlu1 %v6618_v45, %s7485_s4 }
 0x4d3   : > { %v1203_v41 = vpop.xlane.xlu0 %1202 }
 0x4d4   : > { %6259 = vrcp.f32 %v1203_v41 }
 0x4d5   : > { %6261 = vpow2.f32 %v1701_v44  ;;  %v1883_v44 = vrot.slane %v6582_v27, %v6724_v42 }
 0x4d6   : > { %1374 = vrot.lane.b32.xlu0 %v6618_v45, %s7487_s8 }
 0x4e1   : > { %v6260_v47 = vpop.eup %6259 }
 0x4e2   : > { %v1205_v48 = vmul.f32 %v6260_v47, %v6254_v22  ;;  %v6262_v49 = vpop.eup %6261 }
 0x4e3   : > { %v1703_v50 = vsel %vm1194_vm6, %v6262_v49, 0.0 }
 0x4e4   : > { %5780 = vmatmul.mubr.msk.f32.vlgmr.msra.gmra.mxu0 %vm1206_vm7, %v1205_v48 }
 0x4e5   : > { %5789 = vmatprep.mubr.msk.f32.mxu0 %vm6380_vm0, %v6379_v1 }
 0x4f1   : > { %1704 = vadd.xlane.f32.xlu1 %v1703_v50 }
 0x502   : > { %1708 = vrot.lane.b32.xlu1 %v6618_v45, %s7483_s1 }
 0x545   : > { %v1371_v51 = vpop.xlane.xlu1 %1370 }
 0x546   : > { %6263 = vrcp.f32 %v1371_v51 }
 0x549   : > { %v1538_v52 = vpop.xlane.xlu0 %1537  ;;  %v1542_v56 = vpop.permute.xlu1 %1541 }
 0x54a   : > { %6265 = vrcp.f32 %v1538_v52 }
 0x54d   : > { %v1375_v53 = vpop.permute.xlu0 %1374 }
 0x54e   : > { %5788 = vmatpush3.msk.msra.mxu0 %vm1210_vm4, %v1375_v53  ;;  %v6203_v53 = vld [vmem:[%s7461_s12 + $0x38] sm:$0xff]  }
 0x54f   : > { %5797 = vmatprep.subr.mxu0 %v6379_v1 }
 0x553   : > { %v6264_v54 = vpop.eup %6263 }
 0x554   : > { %v1373_v55 = vmul.f32 %v6264_v54, %v6256_v35  ;;  %v6204_v54 = vld [vmem:[%s7461_s12 + $0x30] sm:$0xff]  }
 0x556   : > { %5790 = vmatmul.mubr.msk.f32.vlgmr.msra.gmra.mxu0 %vm1206_vm7, %v1373_v55  ;;  %v6206_v55 = vld [vmem:[%s7461_s12 + $0x20] sm:$0xff]  }
 0x557   : > { %v6266_v57 = vpop.eup %6265  ;;  %5798 = vmatpush3.msk.msra.mxu0 %vm1210_vm4, %v1542_v56  ;;  %5799 = vmatprep.mubr.msk.f32.mxu0 %vm6380_vm0, %v6379_v1  ;;  %v6207_v56 = vld [vmem:[%s7461_s12 + $0x18] sm:$0xff]  }
 0x558   : > { %v1540_v45 = vmul.f32 %v6266_v57, %v6258_v37  ;;  %5807 = vmatprep.subr.mxu0 %v6379_v1  ;;  %v6208_v57 = vld [vmem:[%s7461_s12 + $0x10] sm:$0xff]  }
 0x55a   : > { %5800 = vmatmul.mubr.msk.f32.vlgmr.msra.gmra.mxu0 %vm1206_vm7, %v1540_v45  ;;  %v6209_v45 = vld [vmem:[%s7461_s12 + $0x8] sm:$0xff]  }
 0x55b   : > { %5809 = vmatprep.mubr.msk.f32.mxu0 %vm6380_vm0, %v6379_v1 }
 0x57a   : > { %v1705_v58 = vpop.xlane.xlu1 %1704 }
 0x57b   : > { %6267 = vrcp.f32 %v1705_v58  ;;  %v6210_v58 = vld [vmem:[%s7461_s12] sm:$0xff]  }
 0x57e   : > { %v1709_v59 = vpop.permute.xlu1 %1708 }
 0x57f   : > { %5808 = vmatpush3.msk.msra.mxu0 %vm1210_vm4, %v1709_v59  ;;  %v905_v59 = vld [vmem:[%s7462_s13 + $0x8] sm:$0x3] }
 0x580   : > { %5820 = vmatprep.subr.bf16.mxu0 %v6379_v1 }
 0x588   : > { %v6268_v60 = vpop.eup %6267 }
 0x589   : > { %v1707_v61 = vmul.f32 %v6268_v60, %v6262_v49  ;;  %v1888_v49 = vrot.slane %v6582_v27, %v6727_v43  ;;  %v6205_v27 = vld [vmem:[%s7461_s12 + $0x28] sm:$0xff]   ;;  %v1898_v60 = vrot.slane %v905_v59, %v6577_v26 }
 0x58b   : > { %5810 = vmatmul.mubr.msk.f32.vlgmr.msra.gmra.mxu0 %vm1206_vm7, %v1707_v61 }
 0x58c   : > { %5824 = vmatprep.mubr.msk.bf16.mxu0 %vm6380_vm0, %v6379_v1  ;;  %5821 = vmatpush3.bf16.msra.mxu0 %v6201_v36 }
 0x58d   : > { %5822 = vmatprep.subr.bf16.mxu0 %v6379_v1 }
 0x5a4   : > { %v1280_v62 = vpop.f32.mrf.mxu0 }
 0x5a6   : > { %v5781_v63 = vpop.f32.mrf.mxu0 }
 0x616   : > { %v1447_v2 = vpop.f32.mrf.mxu0 }
 0x617   : > { %1786 = vrot.lane.b32.xlu0 %v1447_v2, %s7481_s2  ;;  %s7509_s2 = sld [smem:[#allocation4_spill]] }
 0x618   : > { %v5791_v3 = vpop.f32.mrf.mxu0 }
 0x61a   : > { %v1614_v4 = vpop.f32.mrf.mxu0 }
 0x61b   : > { %1790 = vrot.lane.b32.xlu1 %v1614_v4, %s7479_s29  ;;  %s7507_s29 = smov 16  }
 0x61c   : > { %v5801_v5 = vpop.f32.mrf.mxu0 }
 0x64b   : > { %v1781_v8 = vpop.f32.mrf.mxu0 }
 0x64c   : > { %1794 = vrot.lane.b32.xlu0 %v1781_v8, %s7477_s25  ;;  %s7508_s25 = smov 24  }
 0x64d   : > { %v5811_v9 = vpop.f32.mrf.mxu0 }
 0x689   : > { %v1787_v10 = vpop.permute.xlu0 %1786 }
 0x68a   : > { %v1797_v12 = vsel %vm1116_vm5, %v1280_v62, %v1787_v10 }
 0x68d   : > { %v1791_v11 = vpop.permute.xlu1 %1790 }
 0x68e   : > { %v1799_v13 = vsel %vm1798_vm8, %v1797_v12, %v1791_v11 }
 0x6be   : > { %v1795_v14 = vpop.permute.xlu0 %1794 }
 0x6bf   : > { %v1801_v15 = vsel %vm1800_vm9, %v1799_v13, %v1795_v14  ;;  %v1983_v14 = vrot.slane %v905_v59, %v6585_v28 }
 0x6c0   : > { %v1802_v16 = vpack.c.bf16 %v1801_v15, %v1801_v15 }
 0x6c2   : > { %5817 = vmatmul.mubr.msk.bf16.vlgmr.msra.gmra.mxu1 %vm952_vm3, %v1802_v16 }
 0x6c3   : > { %5844 = vmatprep.mubr.msk.bf16.mxu1 %vm6380_vm0, %v6379_v1  ;;  %5829 = vmatpush3.bf16.msra.mxu1 %v6203_v53  ;;  %v6215_v53 = vld [vmem:[%s7458_s9 + $0x18] sm:$0xff]  }
 0x6c4   : > { %5830 = vmatprep.subr.bf16.mxu1 %v6379_v1 }
 0x6c7   : > { %5831 = vmatpush3.bf16.msra.mxu1 %v6204_v54  ;;  %v6216_v54 = vld [vmem:[%s7458_s9 + $0x10] sm:$0xff]  }
 0x6c8   : > { %5832 = vmatprep.subr.bf16.mxu1 %v6379_v1 }
 0x6cb   : > { %5833 = vmatpush3.bf16.msra.mxu1 %v6205_v27 }
 0x6cc   : > { %5834 = vmatprep.subr.bf16.mxu1 %v6379_v1 }
 0x6cf   : > { %5835 = vmatpush3.bf16.msra.mxu1 %v6206_v55 }
 0x6d0   : > { %5836 = vmatprep.subr.bf16.mxu1 %v6379_v1 }
 0x6d3   : > { %5837 = vmatpush3.bf16.msra.mxu1 %v6207_v56 }
 0x6d4   : > { %5838 = vmatprep.subr.bf16.mxu1 %v6379_v1 }
 0x6d7   : > { %5839 = vmatpush3.bf16.msra.mxu1 %v6208_v57 }
 0x6d8   : > { %5840 = vmatprep.subr.bf16.mxu1 %v6379_v1 }
 0x6db   : > { %5841 = vmatpush3.bf16.msra.mxu1 %v6209_v45 }
 0x6dc   : > { %5842 = vmatprep.subr.bf16.mxu1 %v6379_v1 }
 0x6df   : > { %5843 = vmatpush3.bf16.msra.mxu1 %v6210_v58 }
 0x6e0   : > { %5882 = vmatprep.subr.mxu1 %v6379_v1 }
 0x782   : > { %v1860_v19 = vpop.f32.mrf.mxu1 }
 0x783   : > { %v1861_v20 = vadd.f32 %v1860_v19, %v1810_v18 }
 0x784   : > { %v5818_v21 = vpop.f32.mrf.mxu1 }
 0x785   : > { %v6709_v22 = vadd.f32 %v1861_v20, %v6551_v7  ;;  %v6202_v7 = vld [vmem:[%s7460_s11] sm:$0xff]  }
 0x786   : > { %v1863_v23 = vpop.f32.mrf.mxu1  ;;  %5823 = vmatpush3.bf16.msra.mxu0 %v6202_v7 }
 0x787   : > { %v1867_v29 = vsel %vm906_vm2, %v6709_v22, 0.0  ;;  %5848 = vmatprep.subr.bf16.mxu0 %v6379_v1 }
 0x788   : > { %1868 = vadd.xlane.f32.xlu1 %v1867_v29  ;;  %v5819_v30 = vpop.f32.mrf.mxu1 }
 0x811   : > { %v1869_v31 = vpop.xlane.xlu1 %1868 }
 0x812   : > { %v1870_v32 = vmul.f32 0.03125, %v1869_v31 }
 0x814   : > { %v1871_v33 = vsub.f32 %v6709_v22, %v1870_v32 }
 0x816   : > { %v1872_v34 = vmul.f32 %v1871_v33, %v1871_v33 }
 0x818   : > { %v1873_v35 = vsel %vm906_vm2, %v1872_v34, 0.0  ;;  %v6211_v34 = vld [vmem:[%s7503_s30 + $0x18] sm:$0xff]  }
 0x819   : > { %1874 = vadd.xlane.f32.xlu0 %v1873_v35 }
 0x8a2   : > { %v1875_v37 = vpop.xlane.xlu0 %1874 }
 0x8a3   : > { %v1876_v40 = vmul.f32 0.03125, %v1875_v37  ;;  %v6793_v37 = vld [vmem:[%s7462_s13 + $0x10] sm:$0xff] }
 0x8a4   : > { %v2108_v27 = vrot.slane %v6793_v37, %v6609_v38  ;;  %v2172_v58 = vrot.slane %v6793_v37, %v6621_v46 }
 0x8a5   : > { %v1877_v41 = vadd.f32 1e-05, %v1876_v40  ;;  %v2092_v40 = vrot.slane %v6793_v37, %v6577_v26 }
 0x8a7   : > { %6269 = vrsqrt.f32 %v1877_v41 }
 0x8b4   : > { %v6270_v47 = vpop.eup %6269 }
 0x8b5   : > { %v1879_v48 = vmul.f32 %v6270_v47, %v1871_v33  ;;  %v2097_v47 = vrot.slane %v6793_v37, %v6585_v28 }
 0x8b7   : > { %v1884_v50 = vmul.f32 %v1883_v44, %v1879_v48 }
 0x8b9   : > { %v1889_v51 = vadd.f32 %v1888_v49, %v1884_v50  ;;  %v6213_v50 = vld [vmem:[%s7504_s7 + $0x18] sm:$0xff]  }
 0x8bb   : > { %v1890_v52 = vpack.c.bf16 %v1889_v51, %v1889_v51 }
 0x8bd   : > { %5825 = vmatmul.mubr.msk.bf16.vlgmr.msra.gmra.mxu0 %vm952_vm3, %v1890_v52  ;;  %v6214_v52 = vld [vmem:[%s7504_s7 + $0x10] sm:$0xff]   ;;  %s7510_s7 = sld [smem:[#allocation5_spill]] }
 0x8be   : > { %5852 = vmatprep.mubr.msk.bf16.mxu0 %vm6380_vm0, %v6379_v1  ;;  %5849 = vmatpush3.bf16.msra.mxu0 %v6211_v34 }
 0x8bf   : > { %5850 = vmatprep.subr.bf16.mxu0 %v6379_v1 }
 0x97d   : > { %v1948_v61 = vpop.f32.mrf.mxu0 }
 0x97e   : > { %v1949_v62 = vadd.f32 %v1948_v61, %v1898_v60 }
 0x97f   : > { %v5826_v63 = vpop.f32.mrf.mxu0 }
 0x980   : > { %v1955_v0 = vmul.f32 0.044715, %v1949_v62  ;;  %v1954_v10 = vmul.f32 0.5, %v1949_v62 }
 0x981   : > { %v1951_v2 = vpop.f32.mrf.mxu0 }
 0x982   : > { %v1956_v3 = vmul.f32 %v1955_v0, %v1949_v62  ;;  %v2233_v0 = vrot.slane %v6793_v37, %v6612_v39 }
 0x983   : > { %v5827_v4 = vpop.f32.mrf.mxu0 }
 0x984   : > { %v1957_v5 = vmul.f32 %v1956_v3, %v1949_v62 }
 0x986   : > { %v1958_v6 = vadd.f32 %v1957_v5, %v1949_v62 }
 0x988   : > { %v1959_v8 = vmul.f32 0.7978846, %v1958_v6 }
 0x98a   : > { %6271 = vtanh.f32 %v1959_v8 }
 0x997   : > { %v6272_v9 = vpop.eup %6271 }
 0x998   : > { %v1961_v11 = vadd.f32 1.0, %v6272_v9 }
 0x99a   : > { %v1962_v12 = vmul.f32 %v1961_v11, %v1954_v10 }
 0x99c   : > { %v1963_v13 = vpack.c.bf16 %v1962_v12, %v1962_v12 }
 0x99e   : > { %5845 = vmatmul.mubr.bf16.vlgmr.msra.gmra.mxu1 %v1963_v13 }
 0x99f   : > { %5884 = vmatprep.mubr.msk.f32.mxu1 %vm6380_vm0, %v6379_v1 }
 0xa5e   : > { %v2066_v15 = vpop.f32.mrf.mxu1 }
 0xa5f   : > { %v2067_v16 = vadd.f32 %v2066_v15, %v1983_v14 }
 0xa60   : > { %v5846_v18 = vpop.f32.mrf.mxu1 }
 0xa61   : > { %v6776_v19 = vadd.f32 %v2067_v16, %v6709_v22  ;;  %v6212_v22 = vld [vmem:[%s7503_s30 + $0x10] sm:$0xff]  }
 0xa62   : > { %v2069_v20 = vpop.f32.mrf.mxu1  ;;  %5851 = vmatpush3.bf16.msra.mxu0 %v6212_v22 }
 0xa63   : > { %v2076_v21 = vsel %vm906_vm2, %v6776_v19, 0.0  ;;  %5856 = vmatprep.subr.bf16.mxu0 %v6379_v1 }
 0xa64   : > { %2077 = vadd.xlane.f32.xlu0 %v2076_v21  ;;  %v5847_v23 = vpop.f32.mrf.mxu1 }
 0xaed   : > { %v2078_v29 = vpop.xlane.xlu0 %2077 }
 0xaee   : > { %v2079_v30 = vmul.f32 0.03125, %v2078_v29 }
 0xaf0   : > { %v2080_v31 = vsub.f32 %v6776_v19, %v2079_v30 }
 0xaf2   : > { %v2081_v32 = vmul.f32 %v2080_v31, %v2080_v31 }
 0xaf4   : > { %v2082_v33 = vsel %vm906_vm2, %v2081_v32, 0.0 }
 0xaf5   : > { %2083 = vadd.xlane.f32.xlu1 %v2082_v33 }
 0xb7e   : > { %v2084_v35 = vpop.xlane.xlu1 %2083 }
 0xb7f   : > { %v2085_v36 = vmul.f32 0.03125, %v2084_v35 }
 0xb81   : > { %v2086_v7 = vadd.f32 1e-05, %v2085_v36 }
 0xb83   : > { %6273 = vrsqrt.f32 %v2086_v7 }
 0xb90   : > { %v6274_v41 = vpop.eup %6273 }
 0xb91   : > { %v2088_v44 = vmul.f32 %v6274_v41, %v2080_v31 }
 0xb93   : > { %v2093_v48 = vmul.f32 %v2092_v40, %v2088_v44 }
 0xb95   : > { %v2098_v49 = vadd.f32 %v2097_v47, %v2093_v48 }
 0xb97   : > { %v2099_v51 = vpack.c.bf16 %v2098_v49, %v2098_v49 }
 0xb99   : > { %5853 = vmatmul.mubr.msk.bf16.vlgmr.msra.gmra.mxu0 %vm952_vm3, %v2099_v51 }
 0xb9a   : > { %5857 = vmatpush3.bf16.msra.mxu0 %v6213_v50  ;;  %5860 = vmatprep.mubr.msk.bf16.mxu0 %vm6380_vm0, %v6379_v1 }
 0xb9b   : > { %5858 = vmatprep.subr.bf16.mxu0 %v6379_v1 }
 0xb9e   : > { %5859 = vmatpush3.bf16.msra.mxu0 %v6214_v52 }
 0xb9f   : > { %5864 = vmatprep.subr.bf16.mxu0 %v6379_v1 }
 0xba1   : > { %5861 = vmatmul.mubr.msk.bf16.vlgmr.msra.gmra.mxu0 %vm952_vm3, %v2099_v51 }
 0xba2   : > { %5865 = vmatpush3.bf16.msra.mxu0 %v6215_v53  ;;  %5868 = vmatprep.mubr.msk.bf16.mxu0 %vm6380_vm0, %v6379_v1 }
 0xba3   : > { %5866 = vmatprep.subr.bf16.mxu0 %v6379_v1 }
 0xba6   : > { %5867 = vmatpush3.bf16.msra.mxu0 %v6216_v54 }
 0xba7   : > { %5872 = vmatprep.subr.mxu0 %v6379_v1 }
 0xba9   : > { %5869 = vmatmul.mubr.msk.bf16.vlgmr.msra.gmra.mxu0 %vm952_vm3, %v2099_v51 }
 0xbaa   : > { %5874 = vmatprep.mubr.msk.f32.mxu0 %vm6380_vm0, %v6379_v1 }
 0xc59   : > { %v2158_v55 = vpop.f32.mrf.mxu0 }
 0xc5a   : > { %v2159_v56 = vadd.f32 %v2158_v55, %v2108_v27 }
 0xc5b   : > { %v5854_v57 = vpop.f32.mrf.mxu0 }
 0xc5c   : > { %2450 = vrot.lane.b32.xlu1 %v2159_v56, %s7487_s8 }
 0xc5d   : > { %v2161_v45 = vpop.f32.mrf.mxu0 }
 0xc5f   : > { %v5855_v59 = vpop.f32.mrf.mxu0 }
 0xc61   : > { %v2219_v60 = vpop.f32.mrf.mxu0 }
 0xc62   : > { %v2220_v61 = vadd.f32 %v2219_v60, %v2172_v58 }
 0xc63   : > { %v5862_v62 = vpop.f32.mrf.mxu0 }
 0xc64   : > { %2619 = vrot.lane.b32.xlu1 %v2220_v61, %s7485_s4  ;;  %2452 = vrot.lane.b32.xlu0 %v2220_v61, %s7487_s8 }
 0xc65   : > { %5873 = vmatpush3.xpose.msk.msra.mxu0 %vm1116_vm5, %v2220_v61  ;;  %v2222_v63 = vpop.f32.mrf.mxu0 }
 0xc66   : > { %5877 = vmatprep.subr.mxu0 %v6379_v1 }
 0xc67   : > { %v5863_v2 = vpop.f32.mrf.mxu0 }
 0xc68   : > { %5875 = vmatmul.mubr.msk.f32.vlgmr.msra.gmra.mxu0 %vm1116_vm5, %v2159_v56  ;;  %2786 = vrot.lane.b32.xlu1 %v2220_v61, %s7505_s27 }
 0xc69   : > { %2617 = vrot.lane.b32.xlu0 %v2159_v56, %s7485_s4  ;;  %v2280_v3 = vpop.f32.mrf.mxu0  ;;  %5879 = vmatprep.mubr.msk.f32.mxu0 %vm6380_vm0, %v6379_v1 }
 0xc6a   : > { %v6840_v4 = vadd.f32 %v2280_v3, %v2233_v0 }
 0xc6b   : > { %v5870_v5 = vpop.f32.mrf.mxu0 }
 0xc6c   : > { %5878 = vmatpush3.msk.msra.mxu0 %vm1210_vm4, %v6840_v4 }
 0xc6d   : > { %2784 = vrot.lane.b32.xlu0 %v2159_v56, %s7505_s27  ;;  %v2283_v6 = vpop.f32.mrf.mxu0  ;;  %5887 = vmatprep.subr.mxu0 %v6379_v1 }
 0xc6f   : > { %v5871_v8 = vpop.f32.mrf.mxu0 }
 0xcce   : > { %v2451_v9 = vpop.permute.xlu1 %2450 }
 0xcd6   : > { %v2453_v10 = vpop.permute.xlu0 %2452  ;;  %v2620_v11 = vpop.permute.xlu1 %2619 }
 0xcd7   : > { %5883 = vmatpush3.xpose.msk.msra.mxu1 %vm1116_vm5, %v2453_v10 }
 0xcd8   : > { %5892 = vmatprep.subr.mxu1 %v6379_v1 }
 0xcda   : > { %5885 = vmatmul.mubr.msk.f32.vlgmr.msra.gmra.mxu1 %vm1116_vm5, %v2451_v9  ;;  %v2787_v13 = vpop.permute.xlu1 %2786 }
 0xcdb   : > { %v2618_v12 = vpop.permute.xlu0 %2617  ;;  %5893 = vmatpush3.xpose.msk.msra.mxu1 %vm1116_vm5, %v2620_v11  ;;  %5894 = vmatprep.mubr.msk.f32.mxu1 %vm6380_vm0, %v6379_v1 }
 0xcdc   : > { %5902 = vmatprep.subr.mxu1 %v6379_v1 }
 0xcde   : > { %5895 = vmatmul.mubr.msk.f32.vlgmr.msra.gmra.mxu1 %vm1116_vm5, %v2618_v12 }
 0xcdf   : > { %5903 = vmatpush3.xpose.msk.msra.mxu1 %vm1116_vm5, %v2787_v13  ;;  %5904 = vmatprep.mubr.msk.f32.mxu1 %vm6380_vm0, %v6379_v1  ;;  %v2785_v14 = vpop.permute.xlu0 %2784 }
 0xce0   : > { %5912 = vmatprep.subr.bf16.mxu1 %v6379_v1 }
 0xce2   : > { %5905 = vmatmul.mubr.msk.f32.vlgmr.msra.gmra.mxu1 %vm1116_vm5, %v2785_v14 }
 0xce3   : > { %5916 = vmatprep.mubr.msk.bf16.mxu1 %vm6380_vm0, %v6379_v1 }
 0xd28   : > { %v2358_v15 = vpop.f32.mrf.mxu0 }
 0xd29   : > { %v2362_v16 = vmul.f32 0.35355338, %v2358_v15 }
 0xd2a   : > { %v5876_v18 = vpop.f32.mrf.mxu0 }
 0xd2b   : > { %v2363_v20 = vsel %vm1194_vm6, %v2362_v16, -inf  ;;  %v6217_v18 = vld [vmem:[%s7459_s10 + $0x18] sm:$0xff]  }
 0xd2c   : > { %2364 = vmax.xlane.f32.xlu1 %v2363_v20  ;;  %5913 = vmatpush3.bf16.msra.mxu1 %v6217_v18 }
 0xd2d   : > { %5914 = vmatprep.subr.bf16.mxu1 %v6379_v1 }
 0xd9a   : > { %v2524_v21 = vpop.f32.mrf.mxu1 }
 0xd9b   : > { %v2528_v23 = vmul.f32 0.35355338, %v2524_v21 }
 0xd9c   : > { %v5886_v29 = vpop.f32.mrf.mxu1 }
 0xd9d   : > { %v2529_v30 = vsel %vm1194_vm6, %v2528_v23, -inf }
 0xd9e   : > { %2530 = vmax.xlane.f32.xlu0 %v2529_v30  ;;  %v2691_v31 = vpop.f32.mrf.mxu1  ;;  %v6218_v30 = vld [vmem:[%s7459_s10 + $0x10] sm:$0xff]  }
 0xd9f   : > { %v2695_v32 = vmul.f32 0.35355338, %v2691_v31  ;;  %5915 = vmatpush3.bf16.msra.mxu1 %v6218_v30 }
 0xda0   : > { %v5896_v33 = vpop.f32.mrf.mxu1  ;;  %5928 = vmatprep.subr.bf16.mxu1 %v6379_v1 }
 0xda1   : > { %v2696_v34 = vsel %vm1194_vm6, %v2695_v32, -inf }
 0xda2   : > { %2697 = vmax.xlane.f32.xlu0 %v2696_v34  ;;  %v2858_v22 = vpop.f32.mrf.mxu1 }
 0xda3   : > { %v2862_v35 = vmul.f32 0.35355338, %v2858_v22 }
 0xda4   : > { %v5906_v36 = vpop.f32.mrf.mxu1 }
 0xda5   : > { %v2863_v7 = vsel %vm1194_vm6, %v2862_v35, -inf }
 0xda6   : > { %2864 = vmax.xlane.f32.xlu1 %v2863_v7 }
 0xdb5   : > { %v2365_v40 = vpop.xlane.xlu1 %2364 }
 0xdb6   : > { %v2366_v41 = vsub.f32 %v2362_v16, %v2365_v40 }
 0xdb8   : > { %v2367_v44 = vmul.f32 1.442695, %v2366_v41  ;;  %v2975_v41 = vrot.slane %v6793_v37, %v6704_v17 }
 0xdba   : > { %6275 = vpow2.f32 %v2367_v44 }
 0xdc7   : > { %v6276_v47 = vpop.eup %6275 }
 0xdc8   : > { %v2369_v48 = vsel %vm1194_vm6, %v6276_v47, 0.0 }
 0xdc9   : > { %2370 = vadd.xlane.f32.xlu0 %v2369_v48 }
 0xe27   : > { %v2531_v49 = vpop.xlane.xlu0 %2530 }
 0xe28   : > { %v2532_v50 = vsub.f32 %v2528_v23, %v2531_v49 }
 0xe2a   : > { %v2533_v51 = vmul.f32 1.442695, %v2532_v50 }
 0xe2b   : > { %v2698_v52 = vpop.xlane.xlu0 %2697 }
 0xe2c   : > { %6277 = vpow2.f32 %v2533_v51  ;;  %v2699_v53 = vsub.f32 %v2695_v32, %v2698_v52 }
 0xe2e   : > { %v2700_v54 = vmul.f32 1.442695, %v2699_v53 }
 0xe2f   : > { %v2865_v58 = vpop.xlane.xlu1 %2864 }
 0xe30   : > { %6279 = vpow2.f32 %v2700_v54  ;;  %v2866_v59 = vsub.f32 %v2862_v35, %v2865_v58 }
 0xe32   : > { %v2867_v60 = vmul.f32 1.442695, %v2866_v59 }
 0xe39   : > { %v6278_v27 = vpop.eup %6277 }
 0xe3a   : > { %v2535_v55 = vsel %vm1194_vm6, %v6278_v27, 0.0 }
 0xe3b   : > { %2536 = vadd.xlane.f32.xlu1 %v2535_v55 }
 0xe3d   : > { %v6280_v56 = vpop.eup %6279 }
 0xe3e   : > { %v2702_v57 = vsel %vm1194_vm6, %v6280_v56, 0.0 }
 0xe3f   : > { %2703 = vadd.xlane.f32.xlu0 %v2702_v57  ;;  %v6219_v57 = vld [vmem:[%s7460_s11 + $0x18] sm:$0xff]  }
 0xe4c   : > { %2707 = vrot.lane.b32.xlu1 %v6840_v4, %s7485_s4  ;;  %s816_s4 = scalar_lea.vmem %s7510_s7, %s6990_s28  ;;  %s7511_s7 = smov 120  }
 0xe52   : > { %v2371_v45 = vpop.xlane.xlu0 %2370 }
 0xe53   : > { %6281 = vrcp.f32 %v2371_v45 }
 0xe54   : > { %6283 = vpow2.f32 %v2867_v60  ;;  %v3048_v60 = vrot.slane %v6793_v37, %v6724_v42 }
 0xe55   : > { %2540 = vrot.lane.b32.xlu0 %v6840_v4, %s7487_s8  ;;  %s811_s8 = scalar_lea.vmem %s7509_s2, %s6990_s28 }
 0xe60   : > { %v6282_v61 = vpop.eup %6281 }
 0xe61   : > { %v2373_v62 = vmul.f32 %v6282_v61, %v6276_v47  ;;  %v6284_v63 = vpop.eup %6283 }
 0xe62   : > { %v2869_v0 = vsel %vm1194_vm6, %v6284_v63, 0.0 }
 0xe63   : > { %5880 = vmatmul.mubr.msk.f32.vlgmr.msra.gmra.mxu0 %vm1206_vm7, %v2373_v62 }
 0xe64   : > { %5889 = vmatprep.mubr.msk.f32.mxu0 %vm6380_vm0, %v6379_v1 }
 0xe70   : > { %2870 = vadd.xlane.f32.xlu1 %v2869_v0 }
 0xe81   : > { %2874 = vrot.lane.b32.xlu1 %v6840_v4, %s7505_s27 }
 0xec4   : > { %v2537_v2 = vpop.xlane.xlu1 %2536 }
 0xec5   : > { %6285 = vrcp.f32 %v2537_v2 }
 0xec8   : > { %v2704_v3 = vpop.xlane.xlu0 %2703  ;;  %v2708_v9 = vpop.permute.xlu1 %2707 }
 0xec9   : > { %6287 = vrcp.f32 %v2704_v3 }
 0xecc   : > { %v2541_v5 = vpop.permute.xlu0 %2540 }
 0xecd   : > { %5888 = vmatpush3.msk.msra.mxu0 %vm1210_vm4, %v2541_v5  ;;  %v6221_v5 = vld [vmem:[%s7461_s12 + $0x78] sm:$0xff]  }
 0xece   : > { %5897 = vmatprep.subr.mxu0 %v6379_v1 }
 0xed2   : > { %v6286_v6 = vpop.eup %6285 }
 0xed3   : > { %v2539_v8 = vmul.f32 %v6286_v6, %v6278_v27  ;;  %v6222_v6 = vld [vmem:[%s7461_s12 + $0x70] sm:$0xff]  }
 0xed5   : > { %5890 = vmatmul.mubr.msk.f32.vlgmr.msra.gmra.mxu0 %vm1206_vm7, %v2539_v8  ;;  %v6224_v8 = vld [vmem:[%s7461_s12 + $0x60] sm:$0xff]  }
 0xed6   : > { %v6288_v10 = vpop.eup %6287  ;;  %5898 = vmatpush3.msk.msra.mxu0 %vm1210_vm4, %v2708_v9  ;;  %5899 = vmatprep.mubr.msk.f32.mxu0 %vm6380_vm0, %v6379_v1  ;;  %v6225_v9 = vld [vmem:[%s7461_s12 + $0x58] sm:$0xff]  }
 0xed7   : > { %v2706_v4 = vmul.f32 %v6288_v10, %v6280_v56  ;;  %5907 = vmatprep.subr.mxu0 %v6379_v1  ;;  %v6226_v10 = vld [vmem:[%s7461_s12 + $0x50] sm:$0xff]  }
 0xed9   : > { %5900 = vmatmul.mubr.msk.f32.vlgmr.msra.gmra.mxu0 %vm1206_vm7, %v2706_v4  ;;  %v6227_v4 = vld [vmem:[%s7461_s12 + $0x48] sm:$0xff]  }
 0xeda   : > { %5909 = vmatprep.mubr.msk.f32.mxu0 %vm6380_vm0, %v6379_v1 }
 0xef9   : > { %v2871_v11 = vpop.xlane.xlu1 %2870 }
 0xefa   : > { %6289 = vrcp.f32 %v2871_v11  ;;  %v6228_v11 = vld [vmem:[%s7461_s12 + $0x40] sm:$0xff]  }
 0xefd   : > { %v2875_v12 = vpop.permute.xlu1 %2874 }
 0xefe   : > { %5908 = vmatpush3.msk.msra.mxu0 %vm1210_vm4, %v2875_v12  ;;  %v5408_v12 = vld [vmem:[%s7462_s13 + $0x18] sm:$0x3] }
 0xeff   : > { %5920 = vmatprep.subr.bf16.mxu0 %v6379_v1 }
 0xf07   : > { %v6290_v13 = vpop.eup %6289 }
 0xf08   : > { %v2873_v14 = vmul.f32 %v6290_v13, %v6284_v63  ;;  %v3053_v63 = vrot.slane %v6793_v37, %v6727_v43  ;;  %v6223_v37 = vld [vmem:[%s7461_s12 + $0x68] sm:$0xff]   ;;  %v3064_v13 = vrot.slane %v5408_v12, %v6577_v26 }
 0xf0a   : > { %5910 = vmatmul.mubr.msk.f32.vlgmr.msra.gmra.mxu0 %vm1206_vm7, %v2873_v14 }
 0xf0b   : > { %5924 = vmatprep.mubr.msk.bf16.mxu0 %vm6380_vm0, %v6379_v1  ;;  %5921 = vmatpush3.bf16.msra.mxu0 %v6219_v57 }
 0xf0c   : > { %5922 = vmatprep.subr.bf16.mxu0 %v6379_v1 }
 0xf23   : > { %v2446_v15 = vpop.f32.mrf.mxu0 }
 0xf25   : > { %v5881_v16 = vpop.f32.mrf.mxu0 }
 0xf95   : > { %v2613_v20 = vpop.f32.mrf.mxu0 }
 0xf96   : > { %2952 = vrot.lane.b32.xlu0 %v2613_v20, %s7506_s3 }
 0xf97   : > { %v5891_v21 = vpop.f32.mrf.mxu0 }
 0xf99   : > { %v2780_v23 = vpop.f32.mrf.mxu0 }
 0xf9a   : > { %2956 = vrot.lane.b32.xlu1 %v2780_v23, %s7507_s29 }
 0xf9b   : > { %v5901_v29 = vpop.f32.mrf.mxu0 }
 0xfca   : > { %v2947_v31 = vpop.f32.mrf.mxu0 }
 0xfcb   : > { %2960 = vrot.lane.b32.xlu0 %v2947_v31, %s7508_s25 }
 0xfcc   : > { %v5911_v32 = vpop.f32.mrf.mxu0 }
0x1008   : > { %v2953_v33 = vpop.permute.xlu0 %2952 }
0x1009   : > { %v2963_v22 = vsel %vm1116_vm5, %v2446_v15, %v2953_v33 }
0x100c   : > { %v2957_v34 = vpop.permute.xlu1 %2956 }
0x100d   : > { %v2964_v35 = vsel %vm1798_vm8, %v2963_v22, %v2957_v34 }
0x103d   : > { %v2961_v36 = vpop.permute.xlu0 %2960 }
0x103e   : > { %v2965_v7 = vsel %vm1800_vm9, %v2964_v35, %v2961_v36  ;;  %v3150_v36 = vrot.slane %v5408_v12, %v6585_v28 }
0x103f   : > { %v2966_v40 = vpack.c.bf16 %v2965_v7, %v2965_v7 }
0x1041   : > { %5917 = vmatmul.mubr.msk.bf16.vlgmr.msra.gmra.mxu1 %vm952_vm3, %v2966_v40 }
0x1042   : > { %5944 = vmatprep.mubr.msk.bf16.mxu1 %vm6380_vm0, %v6379_v1  ;;  %5929 = vmatpush3.bf16.msra.mxu1 %v6221_v5 }
0x1043   : > { %5930 = vmatprep.subr.bf16.mxu1 %v6379_v1 }
0x1046   : > { %5931 = vmatpush3.bf16.msra.mxu1 %v6222_v6  ;;  %v3327_v6 = vld [vmem:[%s811_s8] sm:$0xff] }
0x1047   : > { %5932 = vmatprep.subr.bf16.mxu1 %v6379_v1 }
0x104a   : > { %5933 = vmatpush3.bf16.msra.mxu1 %v6223_v37 }
0x104b   : > { %5934 = vmatprep.subr.bf16.mxu1 %v6379_v1 }
0x104e   : > { %5935 = vmatpush3.bf16.msra.mxu1 %v6224_v8 }
0x104f   : > { %5936 = vmatprep.subr.bf16.mxu1 %v6379_v1 }
0x1052   : > { %5937 = vmatpush3.bf16.msra.mxu1 %v6225_v9  ;;  %v3328_v9 = vld [vmem:[%s811_s8 + $0x8] sm:$0xff] }
0x1053   : > { %5938 = vmatprep.subr.bf16.mxu1 %v6379_v1 }
0x1056   : > { %5939 = vmatpush3.bf16.msra.mxu1 %v6226_v10 }
0x1057   : > { %5940 = vmatprep.subr.bf16.mxu1 %v6379_v1 }
0x105a   : > { %5941 = vmatpush3.bf16.msra.mxu1 %v6227_v4  ;;  %v3329_v4 = vld [vmem:[%s811_s8 + $0x10] sm:$0x1] }
0x105b   : > { %5942 = vmatprep.subr.bf16.mxu1 %v6379_v1 }
0x105e   : > { %5943 = vmatpush3.bf16.msra.mxu1 %v6228_v11  ;;  %v3330_v11 = vld [vmem:[%s816_s4] sm:$0xff] }
0x1101   : > { %v3025_v44 = vpop.f32.mrf.mxu1 }
0x1102   : > { %v3026_v47 = vadd.f32 %v3025_v44, %v2975_v41 }
0x1103   : > { %v5918_v48 = vpop.f32.mrf.mxu1 }
0x1104   : > { %v6913_v49 = vadd.f32 %v3026_v47, %v6776_v19  ;;  %v6220_v19 = vld [vmem:[%s7460_s11 + $0x10] sm:$0xff]  }
0x1105   : > { %v3028_v50 = vpop.f32.mrf.mxu1  ;;  %5923 = vmatpush3.bf16.msra.mxu0 %v6220_v19 }
0x1106   : > { %v3032_v51 = vsel %vm906_vm2, %v6913_v49, 0.0  ;;  %5948 = vmatprep.subr.bf16.mxu0 %v6379_v1 }
0x1107   : > { %3033 = vadd.xlane.f32.xlu1 %v3032_v51  ;;  %v5919_v52 = vpop.f32.mrf.mxu1 }
0x1190   : > { %v3034_v53 = vpop.xlane.xlu1 %3033 }
0x1191   : > { %v3035_v54 = vmul.f32 0.03125, %v3034_v53 }
0x1193   : > { %v3036_v27 = vsub.f32 %v6913_v49, %v3035_v54 }
0x1195   : > { %v3037_v55 = vmul.f32 %v3036_v27, %v3036_v27 }
0x1197   : > { %v3038_v56 = vsel %vm906_vm2, %v3037_v55, 0.0  ;;  %v6229_v55 = vld [vmem:[%s7464_s15 + $0x8] sm:$0xff]  }
0x1198   : > { %3039 = vadd.xlane.f32.xlu0 %v3038_v56 }
0x1221   : > { %v3040_v45 = vpop.xlane.xlu0 %3039 }
0x1222   : > { %v3041_v58 = vmul.f32 0.03125, %v3040_v45  ;;  %v833_v45 = vld [vmem:[%s7463_s14] sm:$0x3f] }
0x1224   : > { %v3042_v59 = vadd.f32 1e-05, %v3041_v58  ;;  %v3256_v58 = vrot.slane %v833_v45, %v6577_v26 }
0x1226   : > { %6291 = vrsqrt.f32 %v3042_v59 }
0x1233   : > { %v6292_v61 = vpop.eup %6291 }
0x1234   : > { %v3044_v62 = vmul.f32 %v6292_v61, %v3036_v27  ;;  %v3261_v61 = vrot.slane %v833_v45, %v6585_v28 }
0x1236   : > { %v3049_v0 = vmul.f32 %v3048_v60, %v3044_v62 }
0x1238   : > { %v3054_v2 = vadd.f32 %v3053_v63, %v3049_v0 }
0x123a   : > { %v3055_v3 = vpack.c.bf16 %v3054_v2, %v3054_v2  ;;  %v3271_v2 = vrot.slane %v833_v45, %v6609_v38 }
0x123c   : > { %5925 = vmatmul.mubr.msk.bf16.vlgmr.msra.gmra.mxu0 %vm952_vm3, %v3055_v3 }
0x123d   : > { %5952 = vmatprep.mubr.msk.bf16.mxu0 %vm6380_vm0, %v6379_v1  ;;  %5949 = vmatpush3.bf16.msra.mxu0 %v6229_v55  ;;  %v6232_v55 = vld [vmem:[%s7467_s18 + $0x8] sm:$0xff]  }
0x123e   : > { %5950 = vmatprep.subr.bf16.mxu0 %v6379_v1  ;;  %5983 = vmatprep.subr.bf16.mxu1 %v6232_v55 }
0x12fc   : > { %v3114_v14 = vpop.f32.mrf.mxu0 }
0x12fd   : > { %v3115_v15 = vadd.f32 %v3114_v14, %v3064_v13 }
0x12fe   : > { %v5926_v16 = vpop.f32.mrf.mxu0 }
0x12ff   : > { %v3121_v18 = vmul.f32 0.044715, %v3115_v15  ;;  %v3120_v33 = vmul.f32 0.5, %v3115_v15 }
0x1300   : > { %v3117_v20 = vpop.f32.mrf.mxu0 }
0x1301   : > { %v3122_v21 = vmul.f32 %v3121_v18, %v3115_v15 }
0x1302   : > { %v5927_v23 = vpop.f32.mrf.mxu0 }
0x1303   : > { %v3123_v29 = vmul.f32 %v3122_v21, %v3115_v15  ;;  %v3332_v23 = vld [vmem:[%s816_s4 + $0x10] sm:$0x1] }
0x1305   : > { %v3124_v30 = vadd.f32 %v3123_v29, %v3115_v15  ;;  %v3331_v15 = vld [vmem:[%s816_s4 + $0x8] sm:$0xff]  ;;  %s7512_s4 = smov 112  }
0x1307   : > { %v3125_v31 = vmul.f32 0.7978846, %v3124_v30 }
0x1309   : > { %6293 = vtanh.f32 %v3125_v31 }
0x1316   : > { %v6294_v32 = vpop.eup %6293 }
0x1317   : > { %v3127_v34 = vadd.f32 1.0, %v6294_v32 }
0x1319   : > { %v3128_v22 = vmul.f32 %v3127_v34, %v3120_v33 }
0x131b   : > { %v3129_v35 = vpack.c.bf16 %v3128_v22, %v3128_v22 }
0x131d   : > { %5945 = vmatmul.mubr.bf16.vlgmr.msra.gmra.mxu1 %v3129_v35 }
0x131e   : > { %5984 = vmatpush3.bf16.msra.mxu1 %v6232_v55 }
0x13dd   : > { %v3233_v7 = vpop.f32.mrf.mxu1 }
0x13de   : > { %v3234_v40 = vadd.f32 %v3233_v7, %v3150_v36 }
0x13df   : > { %v5946_v41 = vpop.f32.mrf.mxu1 }
0x13e0   : > { %v3239_v44 = vadd.f32 %v3234_v40, %v6913_v49  ;;  %v6230_v49 = vld [vmem:[%s7464_s15] sm:$0xff]  }
0x13e1   : > { %v3236_v47 = vpop.f32.mrf.mxu1  ;;  %5951 = vmatpush3.bf16.msra.mxu0 %v6230_v49  ;;  %v6233_v49 = vld [vmem:[%s7465_s16] sm:$0xff]  }
0x13e2   : > { %v3240_v48 = vsel %vm906_vm2, %v3239_v44, 0.0  ;;  %5956 = vmatprep.subr.mxu0 %v6379_v1 }
0x13e3   : > { %3241 = vadd.xlane.f32.xlu0 %v3240_v48  ;;  %v5947_v50 = vpop.f32.mrf.mxu1 }
0x146c   : > { %v3242_v51 = vpop.xlane.xlu0 %3241 }
0x146d   : > { %v3243_v52 = vmul.f32 0.03125, %v3242_v51 }
0x146f   : > { %v3244_v53 = vsub.f32 %v3239_v44, %v3243_v52 }
0x1471   : > { %v3245_v54 = vmul.f32 %v3244_v53, %v3244_v53 }
0x1473   : > { %v3246_v27 = vsel %vm906_vm2, %v3245_v54, 0.0 }
0x1474   : > { %3247 = vadd.xlane.f32.xlu1 %v3246_v27  ;;  %v6231_v27 = vld [vmem:[%s7465_s16 + $0x8] sm:$0xff]  }
0x14fd   : > { %v3248_v56 = vpop.xlane.xlu1 %3247 }
0x14fe   : > { %v3249_v57 = vmul.f32 0.03125, %v3248_v56  ;;  %v6234_v56 = vld [vmem:[%s7467_s18] sm:$0xff]  }
0x14ff   : > { %5985 = vmatprep.subr.bf16.mxu1 %v6234_v56 }
0x1500   : > { %v3250_v19 = vadd.f32 1e-05, %v3249_v57  ;;  %5986 = vmatpush3.bf16.msra.mxu1 %v6234_v56  ;;  %v6235_v57 = vld [vmem:[%s7466_s17 + $0x8] sm:$0xff]  }
0x1501   : > { %6006 = vmatprep.subr.mxu1 %v6379_v1 }
0x1502   : > { %6295 = vrsqrt.f32 %v3250_v19 }
0x150f   : > { %v6296_v59 = vpop.eup %6295 }
0x1510   : > { %v3252_v60 = vmul.f32 %v6296_v59, %v3244_v53 }
0x1512   : > { %v3257_v62 = vmul.f32 %v3256_v58, %v3252_v60 }
0x1514   : > { %v3262_v63 = vadd.f32 %v3261_v61, %v3257_v62 }
0x1516   : > { %v3263_v0 = vpack.c.bf16 %v3262_v63, %v3262_v63 }
0x1518   : > { %5953 = vmatmul.mubr.msk.bf16.vlgmr.msra.gmra.mxu0 %vm952_vm3, %v3263_v0 }
0x1519   : > { %5958 = vmatprep.mubr.msk.f32.mxu0 %vm6380_vm0, %v6379_v1 }
0x15d8   : > { %v3321_v3 = vpop.f32.mrf.mxu0 }
0x15d9   : > { %v3322_v5 = vadd.f32 %v3321_v3, %v3271_v2  ;;  %v7046_v2 = vld [vmem:[%s7471_s22] sm:$0xff] }
0x15da   : > { %v5954_v37 = vpop.f32.mrf.mxu0 }
0x15db   : > { %5957 = vmatpush3.msk.msra.mxu0 %vm1210_vm4, %v3322_v5 }
0x15dc   : > { %v3324_v8 = vpop.f32.mrf.mxu0  ;;  %5959 = vmatmul.mubr.msk.f32.vlgmr.msra.gmra.mxu0 %vm1206_vm7, %v3327_v6  ;;  %5967 = vmatprep.subr.bf16.mxu0 %v6231_v27  ;;  %v3470_v6 = vrot.slane %v7046_v2, %v6577_v26 }
0x15dd   : > { %5961 = vmatprep.mubr.msk.f32.mxu0 %vm6380_vm0, %v6379_v1  ;;  %5968 = vmatpush3.bf16.msra.mxu0 %v6231_v27 }
0x15de   : > { %v5955_v10 = vpop.f32.mrf.mxu0  ;;  %5969 = vmatprep.subr.bf16.mxu0 %v6233_v49 }
0x15df   : > { %v3477_v10 = vrot.slane %v7046_v2, %v6585_v28 }
0x15e0   : > { %5962 = vmatmul.mubr.msk.f32.gmra.mxu0 %vm1206_vm7, %v3328_v9 }
0x15e1   : > { %5964 = vmatprep.mubr.msk.f32.mxu0 %vm6380_vm0, %v6379_v1  ;;  %5970 = vmatpush3.bf16.msra.mxu0 %v6233_v49  ;;  %v3490_v49 = vrot.slane %v7046_v2, %v6609_v38 }
0x15e2   : > { %5975 = vmatprep.subr.bf16.mxu0 %v6235_v57 }
0x15e4   : > { %5965 = vmatmul.mubr.msk.f32.gmra.mxu0 %vm1206_vm7, %v3329_v4 }
0x169c   : > { %v3411_v12 = vpop.f32.mrf.mxu0 }
0x169d   : > { %v7009_v13 = vadd.f32 %v3411_v12, %v3330_v11 }
0x169e   : > { %v5960_v14 = vpop.f32.mrf.mxu0 }
0x169f   : > { %v3427_v16 = vsel %vm952_vm3, %v7009_v13, 0.0 }
0x16a0   : > { %3428 = vadd.xlane.f32.xlu0 %v3427_v16  ;;  %v3416_v18 = vpop.f32.mrf.mxu0 }
0x16a1   : > { %v7013_v20 = vadd.f32 %v3416_v18, %v3331_v15 }
0x16a2   : > { %v5963_v21 = vpop.f32.mrf.mxu0 }
0x16a3   : > { %v3430_v29 = vsel %vm952_vm3, %v7013_v20, 0.0 }
0x16a4   : > { %3431 = vadd.xlane.f32.xlu1 %v3430_v29  ;;  %v3421_v30 = vpop.f32.mrf.mxu0  ;;  %v6236_v29 = vld [vmem:[%s7466_s17] sm:$0xff]  }
0x16a5   : > { %v7017_v31 = vadd.f32 %v3421_v30, %v3332_v23  ;;  %v3632_v30 = vrot.slane %v7046_v2, %v6612_v39 }
0x16a6   : > { %v5966_v32 = vpop.f32.mrf.mxu0 }
0x16a7   : > { %v3434_v33 = vsel %vm3433_vm10, %v7017_v31, 0.0 }
0x16a8   : > { %3435 = vadd.xlane.f32.xlu0 %v3434_v33 }
0x1729   : > { %v3429_v34 = vpop.xlane.xlu0 %3428 }
0x172a   : > { %v3437_v22 = vmul.f32 0.03125, %v3429_v34 }
0x172c   : > { %v3440_v35 = vsub.f32 %v7009_v13, %v3437_v22 }
0x172d   : > { %v3432_v36 = vpop.xlane.xlu1 %3431 }
0x172e   : > { %v3438_v7 = vmul.f32 0.03125, %v3432_v36  ;;  %v3443_v40 = vmul.f32 %v3440_v35, %v3440_v35 }
0x1730   : > { %v3441_v41 = vsub.f32 %v7013_v20, %v3438_v7  ;;  %v3446_v44 = vsel %vm952_vm3, %v3443_v40, 0.0  ;;  %v3564_v40 = vrot.slane %v7046_v2, %v6621_v46 }
0x1731   : > { %3447 = vadd.xlane.f32.xlu1 %v3446_v44  ;;  %v3436_v47 = vpop.xlane.xlu0 %3435 }
0x1732   : > { %v3439_v48 = vmul.f32 0.03125, %v3436_v47  ;;  %v3444_v50 = vmul.f32 %v3441_v41, %v3441_v41 }
0x1734   : > { %v3442_v51 = vsub.f32 %v7017_v31, %v3439_v48  ;;  %v3449_v52 = vsel %vm952_vm3, %v3444_v50, 0.0 }
0x1735   : > { %3450 = vadd.xlane.f32.xlu0 %v3449_v52 }
0x1736   : > { %v3445_v53 = vmul.f32 %v3442_v51, %v3442_v51 }
0x1738   : > { %v3452_v54 = vsel %vm3433_vm10, %v3445_v53, 0.0 }
0x1739   : > { %3453 = vadd.xlane.f32.xlu1 %v3452_v54 }
0x17ba   : > { %v3448_v19 = vpop.xlane.xlu1 %3447 }
0x17bb   : > { %v3455_v45 = vmul.f32 0.03125, %v3448_v19 }
0x17bd   : > { %v3458_v58 = vadd.f32 1e-05, %v3455_v45 }
0x17be   : > { %v3451_v59 = vpop.xlane.xlu0 %3450 }
0x17bf   : > { %6297 = vrsqrt.f32 %v3458_v58  ;;  %v3456_v60 = vmul.f32 0.03125, %v3451_v59 }
0x17c1   : > { %v3459_v61 = vadd.f32 1e-05, %v3456_v60 }
0x17c2   : > { %v3454_v62 = vpop.xlane.xlu1 %3453 }
0x17c3   : > { %6299 = vrsqrt.f32 %v3459_v61  ;;  %v3457_v63 = vmul.f32 0.03125, %v3454_v62 }
0x17c5   : > { %v3460_v0 = vadd.f32 1e-05, %v3457_v63 }
0x17c7   : > { %6301 = vrsqrt.f32 %v3460_v0 }
0x17cc   : > { %v6298_v3 = vpop.eup %6297 }
0x17cd   : > { %v3464_v5 = vmul.f32 %v6298_v3, %v3440_v35 }
0x17cf   : > { %v3471_v9 = vmul.f32 %v3470_v6, %v3464_v5 }
0x17d0   : > { %v6300_v37 = vpop.eup %6299 }
0x17d1   : > { %v3465_v8 = vmul.f32 %v6300_v37, %v3441_v41  ;;  %v3478_v14 = vadd.f32 %v3477_v10, %v3471_v9 }
0x17d3   : > { %v3472_v4 = vmul.f32 %v3470_v6, %v3465_v8 }
0x17d4   : > { %v6302_v11 = vpop.eup %6301 }
0x17d5   : > { %v3466_v12 = vmul.f32 %v6302_v11, %v3442_v51  ;;  %v3479_v15 = vadd.f32 %v3477_v10, %v3472_v4 }
0x17d7   : > { %v3481_v16 = vpack.c.bf16 %v3479_v15, %v3478_v14  ;;  %v3473_v18 = vmul.f32 %v3470_v6, %v3466_v12 }
0x17d9   : > { %5971 = vmatprep.mubr.msk.bf16.mxu0 %vm952_vm3, %v3481_v16  ;;  %5987 = vmatprep.mubr.msk.bf16.mxu1 %vm952_vm3, %v3481_v16  ;;  %v3480_v21 = vadd.f32 %v3477_v10, %v3473_v18 }
0x17db   : > { %v3482_v23 = vpack.c.bf16 %v3480_v21, %v3480_v21 }
0x17dd   : > { %5972 = vmatmul.mubr.msk.bf16.vlgmr.msra.gmra.mxu0 %vm952_vm3, %v3482_v23  ;;  %5988 = vmatmul.mubr.msk.bf16.vlgmr.msra.gmra.mxu1 %vm952_vm3, %v3482_v23 }
0x17de   : > { %5976 = vmatpush3.bf16.msra.mxu0 %v6235_v57  ;;  %5979 = vmatprep.mubr.msk.bf16.mxu0 %vm952_vm3, %v3481_v16 }
0x17df   : > { %5977 = vmatprep.subr.bf16.mxu0 %v6236_v29  ;;  %6012 = vmatprep.mubr.msk.f32.mxu1 %vm6380_vm0, %v6379_v1 }
0x17e2   : > { %5978 = vmatpush3.bf16.msra.mxu0 %v6236_v29 }
0x17e3   : > { %5991 = vmatprep.subr.mxu0 %v6379_v1 }
0x17e5   : > { %5980 = vmatmul.mubr.msk.bf16.vlgmr.msra.gmra.mxu0 %vm952_vm3, %v3482_v23 }
0x17e6   : > { %5997 = vmatprep.mubr.msk.f32.mxu0 %vm6380_vm0, %v6379_v1 }
0x189d   : > { %v5973_v32 = vpop.f32.mrf.mxu0  ;;  %v5989_v33 = vpop.f32.mrf.mxu1 }
0x189e   : > { %v7068_v34 = vadd.f32 %v5989_v33, %v3632_v30  ;;  %v3552_v19 = vadd.f32 %v5973_v32, %v3490_v49 }
0x189f   : > { %v3543_v22 = vpop.f32.mrf.mxu0  ;;  %v3679_v35 = vpop.f32.mrf.mxu1 }
0x18a0   : > { %6007 = vmatpush3.msk.msra.mxu1 %vm3838_vm11, %v7068_v34  ;;  %v7077_v50 = vadd.f32 %v3679_v35, %v3632_v30  ;;  %v3544_v56 = vadd.f32 %v3543_v22, %v3490_v49 }
0x18a1   : > { %v5974_v36 = vpop.f32.mrf.mxu0  ;;  %v5990_v7 = vpop.f32.mrf.mxu1  ;;  %6008 = vmatprep.subr.mxu1 %v6379_v1 }
0x18a3   : > { %v3546_v41 = vpop.f32.mrf.mxu0  ;;  %v3682_v44 = vpop.f32.mrf.mxu1 }
0x18a4   : > { %v7075_v47 = vadd.f32 %v3682_v44, %v3632_v30  ;;  %v3547_v57 = vadd.f32 %v3546_v41, %v3490_v49 }
0x18a5   : > { %v5981_v48 = vpop.f32.mrf.mxu0 }
0x18a6   : > { %v7079_v51 = vadd.f32 %v5981_v48, %v3564_v40  ;;  %6009 = vmatpush3.msra.mxu1 %v7075_v47 }
0x18a7   : > { %v3611_v52 = vpop.f32.mrf.mxu0  ;;  %6010 = vmatprep.subr.mxu1 %v6379_v1 }
0x18a8   : > { %5992 = vmatpush3.xpose.msk.msra.mxu0 %vm1116_vm5, %v7079_v51  ;;  %6011 = vmatpush3.msra.mxu1 %v7077_v50  ;;  %v7093_v55 = vadd.f32 %v3611_v52, %v3564_v40 }
0x18a9   : > { %v5982_v53 = vpop.f32.mrf.mxu0  ;;  %5993 = vmatprep.subr.mxu0 %v6379_v1  ;;  %6021 = vmatprep.subr.mxu1 %v6379_v1 }
0x18ab   : > { %v3614_v54 = vpop.f32.mrf.mxu0 }
0x18ac   : > { %v7088_v27 = vadd.f32 %v3614_v54, %v3564_v40 }
0x18ae   : > { %5994 = vmatpush3.xpose.msk.msra.mxu0 %vm1116_vm5, %v7088_v27 }
0x18af   : > { %5995 = vmatprep.subr.mxu0 %v6379_v1 }
0x18b2   : > { %5996 = vmatpush3.xpose.msk.msra.mxu0 %vm1116_vm5, %v7093_v55 }
0x18b3   : > { %6036 = vmatprep.subr.mxu0 %v6379_v1 }
0x18b5   : > { %5998 = vmatmul.mubr.msk.f32.vlgmr.msra.gmra.mxu0 %vm1116_vm5, %v3544_v56 }
0x18b6   : > { %6000 = vmatprep.mubr.msk.f32.mxu0 %vm6380_vm0, %v6379_v1 }
0x18b9   : > { %6001 = vmatmul.mubr.msk.f32.gmra.mxu0 %vm1116_vm5, %v3547_v57 }
0x18ba   : > { %6003 = vmatprep.mubr.msk.f32.mxu0 %vm6380_vm0, %v6379_v1 }
0x18bd   : > { %6004 = vmatmul.mubr.msk.f32.gmra.mxu0 %vm1116_vm5, %v3552_v19 }
0x18be   : > { %6042 = vmatprep.mubr.msk.f32.mxu0 %vm6380_vm0, %v6379_v1 }
0x1975   : > { %v3777_v38 = vpop.f32.mrf.mxu0 }
0x1976   : > { %v3791_v45 = vmul.f32 0.35355338, %v3777_v38 }
0x1977   : > { %v5999_v58 = vpop.f32.mrf.mxu0 }
0x1978   : > { %v3795_v59 = vsel %vm3794_vm12, %v3791_v45, -inf }
0x1979   : > { %3796 = vmax.xlane.f32.xlu0 %v3795_v59  ;;  %v3782_v60 = vpop.f32.mrf.mxu0 }
0x197a   : > { %v3792_v61 = vmul.f32 0.35355338, %v3782_v60 }
0x197b   : > { %v6002_v62 = vpop.f32.mrf.mxu0 }
0x197c   : > { %v3798_v63 = vsel %vm3794_vm12, %v3792_v61, -inf }
0x197d   : > { %3799 = vmax.xlane.f32.xlu1 %v3798_v63  ;;  %v3787_v0 = vpop.f32.mrf.mxu0 }
0x197e   : > { %v3793_v3 = vmul.f32 0.35355338, %v3787_v0 }
0x197f   : > { %v6005_v5 = vpop.f32.mrf.mxu0 }
0x1980   : > { %v3802_v6 = vsel %vm3801_vm13, %v3793_v3, -inf }
0x1981   : > { %3803 = vmax.xlane.f32.xlu0 %v3802_v6 }
0x1a02   : > { %v3797_v37 = vpop.xlane.xlu0 %3796 }
0x1a03   : > { %v3805_v8 = vsub.f32 %v3791_v45, %v3797_v37 }
0x1a05   : > { %v3808_v9 = vmul.f32 1.442695, %v3805_v8 }
0x1a06   : > { %v3800_v10 = vpop.xlane.xlu1 %3799 }
0x1a07   : > { %6303 = vpow2.f32 %v3808_v9  ;;  %v3806_v4 = vsub.f32 %v3792_v61, %v3800_v10 }
0x1a09   : > { %v3810_v11 = vmul.f32 1.442695, %v3806_v4 }
0x1a0a   : > { %v3804_v18 = vpop.xlane.xlu0 %3803 }
0x1a0b   : > { %6305 = vpow2.f32 %v3810_v11  ;;  %v3807_v21 = vsub.f32 %v3793_v3, %v3804_v18 }
0x1a0d   : > { %v3812_v23 = vmul.f32 1.442695, %v3807_v21 }
0x1a0f   : > { %6307 = vpow2.f32 %v3812_v23 }
0x1a14   : > { %v6304_v12 = vpop.eup %6303 }
0x1a15   : > { %v3814_v14 = vsel %vm3794_vm12, %v6304_v12, 0.0 }
0x1a16   : > { %3815 = vadd.xlane.f32.xlu1 %v3814_v14 }
0x1a18   : > { %v6306_v15 = vpop.eup %6305 }
0x1a19   : > { %v3817_v16 = vsel %vm3794_vm12, %v6306_v15, 0.0 }
0x1a1a   : > { %3818 = vadd.xlane.f32.xlu0 %v3817_v16 }
0x1a1c   : > { %v6308_v29 = vpop.eup %6307 }
0x1a1d   : > { %v3820_v30 = vsel %vm3801_vm13, %v6308_v29, 0.0 }
0x1a27   : > { %3930 = vrot.lane.b32.xlu1 %v7088_v27, %s7511_s7 }
0x1a2b   : > { %3928 = vrot.lane.b32.xlu1 %v7093_v55, %s7511_s7 }
0x1a30   : > { %3932 = vrot.lane.b32.xlu0 %v7079_v51, %s7511_s7 }
0x1a34   : > { %3922 = vrot.lane.b32.xlu0 %v3544_v56, %s7511_s7 }
0x1a38   : > { %3924 = vrot.lane.b32.xlu0 %v3547_v57, %s7511_s7 }
0x1a3c   : > { %3926 = vrot.lane.b32.xlu0 %v3552_v19, %s7511_s7 }
0x1a40   : > { %4163 = vrot.lane.b32.xlu0 %v3544_v56, %s7512_s4 }
0x1a44   : > { %4165 = vrot.lane.b32.xlu0 %v3547_v57, %s7512_s4 }
0x1a48   : > { %4167 = vrot.lane.b32.xlu0 %v3552_v19, %s7512_s4 }
0x1a4c   : > { %4402 = vrot.lane.b32.xlu0 %v3544_v56, %s7505_s27 }
0x1a4f   : > { %3821 = vadd.xlane.f32.xlu1 %v3820_v30 }
0x1a50   : > { %4406 = vrot.lane.b32.xlu0 %v3552_v19, %s7505_s27 }
0x1a60   : > { %4173 = vrot.lane.b32.xlu1 %v7079_v51, %s7512_s4 }
0x1a64   : > { %4171 = vrot.lane.b32.xlu1 %v7088_v27, %s7512_s4 }
0x1a68   : > { %4169 = vrot.lane.b32.xlu1 %v7093_v55, %s7512_s4 }
0x1a6c   : > { %4412 = vrot.lane.b32.xlu1 %v7079_v51, %s7505_s27 }
0x1a70   : > { %4410 = vrot.lane.b32.xlu1 %v7088_v27, %s7505_s27 }
0x1a74   : > { %4408 = vrot.lane.b32.xlu1 %v7093_v55, %s7505_s27 }
0x1a78   : > { %4404 = vrot.lane.b32.xlu1 %v3547_v57, %s7505_s27 }
0x1a9f   : > { %v3816_v32 = vpop.xlane.xlu1 %3815 }
0x1aa0   : > { %6309 = vrcp.f32 %v3816_v32 }
0x1aa3   : > { %v3819_v33 = vpop.xlane.xlu0 %3818  ;;  %v3931_v40 = vpop.permute.xlu1 %3930 }
0x1aa4   : > { %6311 = vrcp.f32 %v3819_v33 }
0x1aa7   : > { %v3933_v36 = vpop.permute.xlu0 %3932  ;;  %v3929_v44 = vpop.permute.xlu1 %3928 }
0x1aab   : > { %v3923_v51 = vpop.permute.xlu0 %3922 }
0x1aad   : > { %v6310_v22 = vpop.eup %6309 }
0x1aae   : > { %v3826_v35 = vmul.f32 %v6310_v22, %v6304_v12 }
0x1aaf   : > { %v3925_v54 = vpop.permute.xlu0 %3924 }
0x1ab0   : > { %6013 = vmatmul.mubr.msk.f32.vlgmr.msra.gmra.mxu1 %vm3794_vm12, %v3826_v35 }
0x1ab1   : > { %v6312_v7 = vpop.eup %6311  ;;  %6022 = vmatpush3.xpose.msk.msra.mxu1 %vm1116_vm5, %v3933_v36  ;;  %6015 = vmatprep.mubr.msk.f32.mxu1 %vm6380_vm0, %v6379_v1 }
0x1ab2   : > { %6023 = vmatprep.subr.mxu1 %v6379_v1  ;;  %v3827_v41 = vmul.f32 %v6312_v7, %v6306_v15 }
0x1ab3   : > { %v3927_v49 = vpop.permute.xlu0 %3926 }
0x1ab4   : > { %6016 = vmatmul.mubr.msk.f32.gmra.mxu1 %vm3794_vm12, %v3827_v41 }
0x1ab5   : > { %6024 = vmatpush3.xpose.msk.msra.mxu1 %vm1116_vm5, %v3931_v40  ;;  %6018 = vmatprep.mubr.msk.f32.mxu1 %vm6380_vm0, %v6379_v1 }
0x1ab6   : > { %6025 = vmatprep.subr.mxu1 %v6379_v1 }
0x1ab7   : > { %v4164_v57 = vpop.permute.xlu0 %4163 }
0x1ab9   : > { %6026 = vmatpush3.xpose.msk.msra.mxu1 %vm1116_vm5, %v3929_v44 }
0x1aba   : > { %6051 = vmatprep.subr.mxu1 %v6379_v1 }
0x1abb   : > { %v4166_v38 = vpop.permute.xlu0 %4165 }
0x1abf   : > { %v4168_v58 = vpop.permute.xlu0 %4167 }
0x1ac3   : > { %v4403_v60 = vpop.permute.xlu0 %4402 }
0x1ac7   : > { %v4407_v62 = vpop.permute.xlu0 %4406 }
0x1ad8   : > { %v3822_v48 = vpop.xlane.xlu1 %3821 }
0x1ad9   : > { %6313 = vrcp.f32 %v3822_v48 }
0x1adc   : > { %v4174_v52 = vpop.permute.xlu1 %4173 }
0x1ae0   : > { %v4172_v55 = vpop.permute.xlu1 %4171 }
0x1ae4   : > { %v4170_v56 = vpop.permute.xlu1 %4169 }
0x1ae6   : > { %v6314_v53 = vpop.eup %6313 }
0x1ae7   : > { %v3828_v27 = vmul.f32 %v6314_v53, %v6308_v29 }
0x1ae8   : > { %v4413_v19 = vpop.permute.xlu1 %4412 }
0x1ae9   : > { %6019 = vmatmul.mubr.msk.f32.gmra.mxu1 %vm3794_vm12, %v3828_v27 }
0x1aea   : > { %6027 = vmatprep.mubr.msk.f32.mxu1 %vm6380_vm0, %v6379_v1 }
0x1aec   : > { %v4411_v45 = vpop.permute.xlu1 %4410 }
0x1aed   : > { %6028 = vmatmul.mubr.msk.f32.vlgmr.msra.gmra.mxu1 %vm1116_vm5, %v3923_v51 }
0x1aee   : > { %6052 = vmatpush3.xpose.msk.msra.mxu1 %vm1116_vm5, %v4174_v52  ;;  %6030 = vmatprep.mubr.msk.f32.mxu1 %vm6380_vm0, %v6379_v1 }
0x1aef   : > { %6053 = vmatprep.subr.mxu1 %v6379_v1 }
0x1af0   : > { %v4409_v59 = vpop.permute.xlu1 %4408 }
0x1af1   : > { %6031 = vmatmul.mubr.msk.f32.gmra.mxu1 %vm1116_vm5, %v3925_v54 }
0x1af2   : > { %6054 = vmatpush3.xpose.msk.msra.mxu1 %vm1116_vm5, %v4172_v55  ;;  %6033 = vmatprep.mubr.msk.f32.mxu1 %vm6380_vm0, %v6379_v1 }
0x1af3   : > { %6055 = vmatprep.subr.mxu1 %v6379_v1 }
0x1af4   : > { %v4405_v61 = vpop.permute.xlu1 %4404 }
0x1af5   : > { %6034 = vmatmul.mubr.msk.f32.gmra.mxu1 %vm1116_vm5, %v3927_v49 }
0x1af6   : > { %6056 = vmatpush3.xpose.msk.msra.mxu1 %vm1116_vm5, %v4170_v56  ;;  %6057 = vmatprep.mubr.msk.f32.mxu1 %vm6380_vm0, %v6379_v1 }
0x1af7   : > { %6081 = vmatprep.subr.mxu1 %v6379_v1 }
0x1af9   : > { %6058 = vmatmul.mubr.msk.f32.vlgmr.msra.gmra.mxu1 %vm1116_vm5, %v4164_v57 }
0x1afa   : > { %6082 = vmatpush3.xpose.msk.msra.mxu1 %vm1116_vm5, %v4413_v19  ;;  %6060 = vmatprep.mubr.msk.f32.mxu1 %vm6380_vm0, %v6379_v1 }
0x1afb   : > { %6083 = vmatprep.subr.mxu1 %v6379_v1 }
0x1afd   : > { %6061 = vmatmul.mubr.msk.f32.gmra.mxu1 %vm1116_vm5, %v4166_v38 }
0x1afe   : > { %6084 = vmatpush3.xpose.msk.msra.mxu1 %vm1116_vm5, %v4411_v45  ;;  %6063 = vmatprep.mubr.msk.f32.mxu1 %vm6380_vm0, %v6379_v1 }
0x1aff   : > { %6085 = vmatprep.subr.mxu1 %v6379_v1 }
0x1b01   : > { %6064 = vmatmul.mubr.msk.f32.gmra.mxu1 %vm1116_vm5, %v4168_v58 }
0x1b02   : > { %6086 = vmatpush3.xpose.msk.msra.mxu1 %vm1116_vm5, %v4409_v59  ;;  %6087 = vmatprep.mubr.msk.f32.mxu1 %vm6380_vm0, %v6379_v1 }
0x1b05   : > { %6088 = vmatmul.mubr.msk.f32.vlgmr.msra.gmra.mxu1 %vm1116_vm5, %v4403_v60 }
0x1b06   : > { %6090 = vmatprep.mubr.msk.f32.mxu1 %vm6380_vm0, %v6379_v1 }
0x1b09   : > { %6091 = vmatmul.mubr.msk.f32.gmra.mxu1 %vm1116_vm5, %v4405_v61 }
0x1b0a   : > { %6093 = vmatprep.mubr.msk.f32.mxu1 %vm6380_vm0, %v6379_v1 }
0x1b0d   : > { %6094 = vmatmul.mubr.msk.f32.gmra.mxu1 %vm1116_vm5, %v4407_v62 }
0x1b70   : > { %v7193_v63 = vpop.f32.mrf.mxu1 }
0x1b72   : > { %v6014_v0 = vpop.f32.mrf.mxu1 }
0x1b74   : > { %v7195_v3 = vpop.f32.mrf.mxu1 }
0x1b76   : > { %v6017_v5 = vpop.f32.mrf.mxu1 }
0x1ba9   : > { %v7197_v6 = vpop.f32.mrf.mxu1 }
0x1bab   : > { %v6020_v37 = vpop.f32.mrf.mxu1 }
0x1bad   : > { %v4012_v8 = vpop.f32.mrf.mxu1 }
0x1bae   : > { %v4026_v9 = vmul.f32 0.35355338, %v4012_v8 }
0x1baf   : > { %v6029_v10 = vpop.f32.mrf.mxu1 }
0x1bb0   : > { %v4029_v4 = vsel %vm3794_vm12, %v4026_v9, -inf }
0x1bb1   : > { %4030 = vmax.xlane.f32.xlu1 %v4029_v4  ;;  %v4017_v11 = vpop.f32.mrf.mxu1 }
0x1bb2   : > { %v4027_v12 = vmul.f32 0.35355338, %v4017_v11 }
0x1bb3   : > { %v6032_v14 = vpop.f32.mrf.mxu1 }
0x1bb4   : > { %v4032_v15 = vsel %vm3794_vm12, %v4027_v12, -inf }
0x1bb5   : > { %4033 = vmax.xlane.f32.xlu0 %v4032_v15  ;;  %v4022_v16 = vpop.f32.mrf.mxu1 }
0x1bb6   : > { %v7201_v18 = vmul.f32 0.35355338, %v4022_v16 }
0x1bb7   : > { %v6035_v21 = vpop.f32.mrf.mxu1 }
0x1bb8   : > { %v4035_v23 = vsel %vm3801_vm13, %v7201_v18, -inf }
0x1bb9   : > { %4036 = vmax.xlane.f32.xlu0 %v4035_v23  ;;  %v4253_v29 = vpop.f32.mrf.mxu1 }
0x1bba   : > { %v4267_v30 = vmul.f32 0.35355338, %v4253_v29 }
0x1bbb   : > { %v6059_v32 = vpop.f32.mrf.mxu1 }
0x1bbc   : > { %v4270_v33 = vsel %vm3794_vm12, %v4267_v30, -inf }
0x1bbd   : > { %4271 = vmax.xlane.f32.xlu1 %v4270_v33  ;;  %v4258_v22 = vpop.f32.mrf.mxu1 }
0x1bbe   : > { %v7206_v35 = vmul.f32 0.35355338, %v4258_v22 }
0x1bbf   : > { %v6062_v36 = vpop.f32.mrf.mxu1 }
0x1bc0   : > { %v4273_v7 = vsel %vm3794_vm12, %v7206_v35, -inf }
0x1bc1   : > { %4274 = vmax.xlane.f32.xlu0 %v4273_v7  ;;  %v4263_v40 = vpop.f32.mrf.mxu1 }
0x1bc2   : > { %v4269_v41 = vmul.f32 0.35355338, %v4263_v40 }
0x1bc3   : > { %v6065_v44 = vpop.f32.mrf.mxu1 }
0x1bc4   : > { %v4276_v48 = vsel %vm3801_vm13, %v4269_v41, -inf }
0x1bc5   : > { %4277 = vmax.xlane.f32.xlu1 %v4276_v48  ;;  %v4492_v51 = vpop.f32.mrf.mxu1 }
0x1bc6   : > { %v4506_v52 = vmul.f32 0.35355338, %v4492_v51 }
0x1bc7   : > { %v6089_v53 = vpop.f32.mrf.mxu1 }
0x1bc8   : > { %v4509_v54 = vsel %vm3794_vm12, %v4506_v52, -inf }
0x1bc9   : > { %4510 = vmax.xlane.f32.xlu0 %v4509_v54  ;;  %v4497_v27 = vpop.f32.mrf.mxu1 }
0x1bca   : > { %v7212_v55 = vmul.f32 0.35355338, %v4497_v27 }
0x1bcb   : > { %v6092_v49 = vpop.f32.mrf.mxu1 }
0x1bcc   : > { %v4512_v56 = vsel %vm3794_vm12, %v7212_v55, -inf }
0x1bcd   : > { %4513 = vmax.xlane.f32.xlu1 %v4512_v56  ;;  %v4502_v57 = vpop.f32.mrf.mxu1 }
0x1bce   : > { %v4508_v19 = vmul.f32 0.35355338, %v4502_v57 }
0x1bcf   : > { %v6095_v38 = vpop.f32.mrf.mxu1 }
0x1bd0   : > { %v4515_v45 = vsel %vm3801_vm13, %v4508_v19, -inf }
0x1bd1   : > { %4516 = vmax.xlane.f32.xlu0 %v4515_v45 }
0x1bde   : > { %4068 = vrot.lane.b32.xlu1 %v7068_v34, %s7511_s7 }
0x1be2   : > { %4064 = vrot.lane.b32.xlu1 %v7077_v50, %s7511_s7 }
0x1be6   : > { %4307 = vrot.lane.b32.xlu1 %v7068_v34, %s7512_s4 }
0x1be7   : > { %4066 = vrot.lane.b32.xlu0 %v7075_v47, %s7511_s7  ;;  %s7513_s7 = sld [smem:[#allocation7_spill]] }
0x1bea   : > { %4303 = vrot.lane.b32.xlu1 %v7077_v50, %s7512_s4 }
0x1beb   : > { %4305 = vrot.lane.b32.xlu0 %v7075_v47, %s7512_s4 }
0x1bed   : > { %s826_s4 = scalar_lea.vmem %s7513_s7, %s6990_s28 }
0x1c3a   : > { %v4031_v58 = vpop.xlane.xlu1 %4030 }
0x1c3b   : > { %v4038_v59 = vsub.f32 %v4026_v9, %v4031_v58 }
0x1c3d   : > { %v4041_v60 = vmul.f32 1.442695, %v4038_v59 }
0x1c3e   : > { %v4034_v61 = vpop.xlane.xlu0 %4033 }
0x1c3f   : > { %6315 = vpow2.f32 %v4041_v60  ;;  %v4039_v62 = vsub.f32 %v4027_v12, %v4034_v61 }
0x1c41   : > { %v4043_v0 = vmul.f32 1.442695, %v4039_v62 }
0x1c42   : > { %v4037_v10 = vpop.xlane.xlu0 %4036 }
0x1c43   : > { %6317 = vpow2.f32 %v4043_v0 }
0x1c46   : > { %v4272_v5 = vpop.xlane.xlu1 %4271 }
0x1c47   : > { %v4279_v37 = vsub.f32 %v4267_v30, %v4272_v5 }
0x1c49   : > { %v4282_v8 = vmul.f32 1.442695, %v4279_v37 }
0x1c4a   : > { %v4275_v14 = vpop.xlane.xlu0 %4274 }
0x1c4b   : > { %6319 = vpow2.f32 %v4282_v8  ;;  %v4280_v57 = vsub.f32 %v7206_v35, %v4275_v14 }
0x1c4c   : > { %v7229_v4 = vpop.eup %6315 }
0x1c4d   : > { %v4047_v11 = vsel %vm3794_vm12, %v7229_v4, 0.0 }
0x1c4e   : > { %v4278_v15 = vpop.xlane.xlu1 %4277  ;;  %4048 = vadd.xlane.f32.xlu1 %v4047_v11 }
0x1c4f   : > { %v4281_v9 = vsub.f32 %v4269_v41, %v4278_v15 }
0x1c50   : > { %v7233_v16 = vpop.eup %6317 }
0x1c51   : > { %v4286_v21 = vmul.f32 1.442695, %v4281_v9  ;;  %v4050_v12 = vsel %vm3794_vm12, %v7233_v16, 0.0 }
0x1c52   : > { %4051 = vadd.xlane.f32.xlu0 %v4050_v12  ;;  %v4511_v23 = vpop.xlane.xlu0 %4510 }
0x1c53   : > { %6321 = vpow2.f32 %v4286_v21  ;;  %v4518_v29 = vsub.f32 %v4506_v52, %v4511_v23 }
0x1c55   : > { %v4521_v30 = vmul.f32 1.442695, %v4518_v29 }
0x1c56   : > { %v4514_v32 = vpop.xlane.xlu1 %4513 }
0x1c57   : > { %6323 = vpow2.f32 %v4521_v30  ;;  %v4519_v38 = vsub.f32 %v7212_v55, %v4514_v32 }
0x1c58   : > { %v7237_v33 = vpop.eup %6319 }
0x1c59   : > { %v4288_v22 = vsel %vm3794_vm12, %v7237_v33, 0.0  ;;  %v4523_v45 = vmul.f32 1.442695, %v4519_v38 }
0x1c5a   : > { %v4069_v36 = vpop.permute.xlu1 %4068  ;;  %4289 = vadd.xlane.f32.xlu0 %v4288_v22  ;;  %v4517_v7 = vpop.xlane.xlu0 %4516 }
0x1c5b   : > { %v4520_v40 = vsub.f32 %v4508_v19, %v4517_v7  ;;  %6037 = vmatpush3.msk.msra.mxu0 %vm3838_vm11, %v4069_v36  ;;  %v4284_v19 = vmul.f32 1.442695, %v4280_v57 }
0x1c5c   : > { %6038 = vmatprep.subr.mxu0 %v6379_v1 }
0x1c5d   : > { %v4525_v41 = vmul.f32 1.442695, %v4520_v40 }
0x1c5e   : > { %v4067_v44 = vpop.permute.xlu0 %4066  ;;  %v4065_v51 = vpop.permute.xlu1 %4064 }
0x1c5f   : > { %6325 = vpow2.f32 %v4525_v41  ;;  %4546 = vrot.lane.b32.xlu1 %v7068_v34, %s7505_s27  ;;  %6039 = vmatpush3.msra.mxu0 %v4067_v44  ;;  %v4040_v34 = vsub.f32 %v7201_v18, %v4037_v10 }
0x1c60   : > { %v7245_v48 = vpop.eup %6321  ;;  %6040 = vmatprep.subr.mxu0 %v6379_v1 }
0x1c61   : > { %6041 = vmatpush3.msra.mxu0 %v4065_v51  ;;  %v4294_v52 = vsel %vm3801_vm13, %v7245_v48, 0.0  ;;  %v4045_v56 = vmul.f32 1.442695, %v4040_v34 }
0x1c62   : > { %4295 = vadd.xlane.f32.xlu0 %v4294_v52  ;;  %6066 = vmatprep.subr.mxu0 %v6379_v1  ;;  %v4308_v55 = vpop.permute.xlu1 %4307  ;;  %v4306_v0 = vpop.permute.xlu0 %4305 }
0x1c63   : > { %6327 = vpow2.f32 %v4045_v56 }
0x1c64   : > { %v7251_v53 = vpop.eup %6323  ;;  %6329 = vpow2.f32 %v4284_v19 }
0x1c65   : > { %v4527_v54 = vsel %vm3794_vm12, %v7251_v53, 0.0  ;;  %6331 = vpow2.f32 %v4523_v45  ;;  %v6237_v45 = vld [vmem:[%s7468_s19 + $0x8] sm:$0xff]  }
0x1c66   : > { %4528 = vadd.xlane.f32.xlu0 %v4527_v54  ;;  %v4304_v62 = vpop.permute.xlu1 %4303 }
0x1c6c   : > { %v7256_v27 = vpop.eup %6325 }
0x1c6d   : > { %v4533_v49 = vsel %vm3801_vm13, %v7256_v27, 0.0 }
0x1c6e   : > { %4534 = vadd.xlane.f32.xlu0 %v4533_v49 }
0x1c70   : > { %v6328_v58 = vpop.eup %6327 }
0x1c71   : > { %v4053_v59 = vsel %vm3801_vm13, %v6328_v58, 0.0  ;;  %v6330_v18 = vpop.eup %6329 }
0x1c72   : > { %v4291_v60 = vsel %vm3794_vm12, %v6330_v18, 0.0  ;;  %v7266_v61 = vpop.eup %6331 }
0x1c73   : > { %v4530_v35 = vsel %vm3794_vm12, %v7266_v61, 0.0 }
0x1c83   : > { %4054 = vadd.xlane.f32.xlu1 %v4053_v59 }
0x1c84   : > { %4544 = vrot.lane.b32.xlu0 %v7075_v47, %s7505_s27 }
0x1c87   : > { %4292 = vadd.xlane.f32.xlu1 %v4291_v60 }
0x1c8b   : > { %4531 = vadd.xlane.f32.xlu1 %v4530_v35 }
0x1c9c   : > { %4542 = vrot.lane.b32.xlu1 %v7077_v50, %s7505_s27 }
0x1cd7   : > { %v4049_v5 = vpop.xlane.xlu1 %4048 }
0x1cd8   : > { %6333 = vrcp.f32 %v4049_v5 }
0x1cdb   : > { %v4052_v37 = vpop.xlane.xlu0 %4051 }
0x1cdc   : > { %6335 = vrcp.f32 %v4052_v37 }
0x1ce3   : > { %v4290_v11 = vpop.xlane.xlu0 %4289 }
0x1ce5   : > { %v6334_v47 = vpop.eup %6333 }
0x1ce6   : > { %v4059_v8 = vmul.f32 %v6334_v47, %v7229_v4  ;;  %v4547_v4 = vpop.permute.xlu1 %4546 }
0x1ce8   : > { %6043 = vmatmul.mubr.msk.f32.vlgmr.msra.gmra.mxu0 %vm3794_vm12, %v4059_v8 }
0x1ce9   : > { %v6336_v10 = vpop.eup %6335  ;;  %6067 = vmatpush3.msk.msra.mxu0 %vm3838_vm11, %v4308_v55  ;;  %6045 = vmatprep.mubr.msk.f32.mxu0 %vm6380_vm0, %v6379_v1 }
0x1cea   : > { %6068 = vmatprep.subr.mxu0 %v6379_v1  ;;  %v4060_v50 = vmul.f32 %v6336_v10, %v7233_v16 }
0x1ceb   : > { %6069 = vmatpush3.msra.mxu0 %v4306_v0  ;;  %v4296_v9 = vpop.xlane.xlu0 %4295 }
0x1cec   : > { %6070 = vmatprep.subr.mxu0 %v6379_v1  ;;  %6046 = vmatmul.mubr.msk.f32.gmra.mxu0 %vm3794_vm12, %v4060_v50 }
0x1ced   : > { %6071 = vmatpush3.msra.mxu0 %v4304_v62  ;;  %6048 = vmatprep.mubr.msk.f32.mxu0 %vm6380_vm0, %v6379_v1 }
0x1cee   : > { %6096 = vmatprep.subr.mxu0 %v6379_v1 }
0x1cef   : > { %v4529_v16 = vpop.xlane.xlu0 %4528 }
0x1cf7   : > { %v4535_v30 = vpop.xlane.xlu0 %4534 }
0x1cfb   : > { %v4545_v36 = vpop.permute.xlu0 %4544 }
0x1d0c   : > { %v4055_v14 = vpop.xlane.xlu1 %4054 }
0x1d0d   : > { %6337 = vrcp.f32 %v4055_v14 }
0x1d0e   : > { %6339 = vrcp.f32 %v4290_v11 }
0x1d10   : > { %v4293_v15 = vpop.xlane.xlu1 %4292 }
0x1d11   : > { %6341 = vrcp.f32 %v4293_v15 }
0x1d12   : > { %6343 = vrcp.f32 %v4296_v9 }
0x1d13   : > { %6345 = vrcp.f32 %v4529_v16 }
0x1d14   : > { %v4532_v29 = vpop.xlane.xlu1 %4531 }
0x1d15   : > { %6347 = vrcp.f32 %v4532_v29 }
0x1d16   : > { %6349 = vrcp.f32 %v4535_v30 }
0x1d18   : > { %v4543_v41 = vpop.permute.xlu1 %4542 }
0x1d1a   : > { %v6338_v21 = vpop.eup %6337 }
0x1d1b   : > { %v4061_v12 = vmul.f32 %v6338_v21, %v6328_v58  ;;  %v6340_v23 = vpop.eup %6339 }
0x1d1c   : > { %v4300_v32 = vmul.f32 %v6340_v23, %v7237_v33 }
0x1d1d   : > { %6049 = vmatmul.mubr.msk.f32.gmra.mxu0 %vm3794_vm12, %v4061_v12 }
0x1d1e   : > { %6072 = vmatprep.mubr.msk.f32.mxu0 %vm6380_vm0, %v6379_v1  ;;  %v6342_v22 = vpop.eup %6341 }
0x1d1f   : > { %v4301_v7 = vmul.f32 %v6342_v22, %v6330_v18  ;;  %v6344_v40 = vpop.eup %6343 }
0x1d20   : > { %v4302_v33 = vmul.f32 %v6344_v40, %v7245_v48  ;;  %v6346_v44 = vpop.eup %6345 }
0x1d21   : > { %6073 = vmatmul.mubr.msk.f32.vlgmr.msra.gmra.mxu0 %vm3794_vm12, %v4300_v32  ;;  %v4539_v51 = vmul.f32 %v6346_v44, %v7251_v53 }
0x1d22   : > { %6097 = vmatpush3.msk.msra.mxu0 %vm3838_vm11, %v4547_v4  ;;  %6075 = vmatprep.mubr.msk.f32.mxu0 %vm6380_vm0, %v6379_v1  ;;  %v6348_v52 = vpop.eup %6347 }
0x1d23   : > { %6098 = vmatprep.subr.mxu0 %v6379_v1  ;;  %v4540_v54 = vmul.f32 %v6348_v52, %v7266_v61  ;;  %v6350_v34 = vpop.eup %6349  ;;  %v6238_v61 = vld [vmem:[%s7468_s19] sm:$0xff]  }
0x1d24   : > { %6099 = vmatpush3.msra.mxu0 %v4545_v36  ;;  %v4541_v48 = vmul.f32 %v6350_v34, %v7256_v27 }
0x1d25   : > { %6100 = vmatprep.subr.mxu0 %v6379_v1  ;;  %6076 = vmatmul.mubr.msk.f32.gmra.mxu0 %vm3794_vm12, %v4301_v7 }
0x1d26   : > { %6101 = vmatpush3.msra.mxu0 %v4543_v41  ;;  %6078 = vmatprep.mubr.msk.f32.mxu0 %vm6380_vm0, %v6379_v1 }
0x1d27   : > { %6111 = vmatprep.subr.bf16.mxu0 %v6237_v45 }
0x1d29   : > { %6079 = vmatmul.mubr.msk.f32.gmra.mxu0 %vm3794_vm12, %v4302_v33 }
0x1d2a   : > { %6102 = vmatprep.mubr.msk.f32.mxu0 %vm6380_vm0, %v6379_v1 }
0x1d2d   : > { %6103 = vmatmul.mubr.msk.f32.vlgmr.msra.gmra.mxu0 %vm3794_vm12, %v4539_v51 }
0x1d2e   : > { %6105 = vmatprep.mubr.msk.f32.mxu0 %vm6380_vm0, %v6379_v1  ;;  %6112 = vmatpush3.bf16.msra.mxu0 %v6237_v45 }
0x1d2f   : > { %6113 = vmatprep.subr.bf16.mxu0 %v6238_v61 }
0x1d31   : > { %6106 = vmatmul.mubr.msk.f32.gmra.mxu0 %vm3794_vm12, %v4540_v54 }
0x1d32   : > { %6108 = vmatprep.mubr.msk.f32.mxu0 %vm6380_vm0, %v6379_v1  ;;  %6114 = vmatpush3.bf16.msra.mxu0 %v6238_v61 }
0x1d35   : > { %6109 = vmatmul.mubr.msk.f32.gmra.mxu0 %vm3794_vm12, %v4541_v48 }
0x1da8   : > { %v4149_v49 = vpop.f32.mrf.mxu0 }
0x1daa   : > { %v6044_v53 = vpop.f32.mrf.mxu0 }
0x1dac   : > { %v4154_v56 = vpop.f32.mrf.mxu0 }
0x1dad   : > { %v6173_v57 = vpack.i.bf16 %v4154_v56, %v4149_v49 }
0x1dae   : > { %v6047_v19 = vpop.f32.mrf.mxu0 }
0x1daf   : > { %6174 = vrot.lane.b32.xlu0 %v6173_v57, %s7506_s3 }
0x1ddd   : > { %v4159_v38 = vpop.f32.mrf.mxu0 }
0x1dde   : > { %4648 = vrot.lane.b32.xlu1 %v4159_v38, %s7506_s3  ;;  %s7514_s3 = sld [smem:[#allocation6_spill]] }
0x1ddf   : > { %v6050_v58 = vpop.f32.mrf.mxu0 }
0x1de1   : > { %v4388_v1 = vpop.f32.mrf.mxu0 }
0x1de3   : > { %v6074_v27 = vpop.f32.mrf.mxu0 }
0x1de5   : > { %v4393_v59 = vpop.f32.mrf.mxu0 }
0x1de6   : > { %v6178_v18 = vpack.i.bf16 %v4393_v59, %v4388_v1 }
0x1de7   : > { %v6077_v60 = vpop.f32.mrf.mxu0 }
0x1de8   : > { %6179 = vrot.lane.b32.xlu0 %v6178_v18, %s7507_s29 }
0x1de9   : > { %v4398_v35 = vpop.f32.mrf.mxu0 }
0x1dea   : > { %4660 = vrot.lane.b32.xlu1 %v4398_v35, %s7507_s29  ;;  %s821_s29 = scalar_lea.vmem %s7514_s3, %s6990_s28 }
0x1deb   : > { %v6080_v55 = vpop.f32.mrf.mxu0 }
0x1ded   : > { %v4627_v62 = vpop.f32.mrf.mxu0 }
0x1def   : > { %v6104_v0 = vpop.f32.mrf.mxu0 }
0x1df1   : > { %v4632_v5 = vpop.f32.mrf.mxu0 }
0x1df2   : > { %v6183_v37 = vpack.i.bf16 %v4632_v5, %v4627_v62 }
0x1df3   : > { %v6107_v47 = vpop.f32.mrf.mxu0 }
0x1df4   : > { %6184 = vrot.lane.b32.xlu0 %v6183_v37, %s7508_s25  ;;  %v6239_v47 = vld [vmem:[%s7469_s20 + $0x8] sm:$0xff]  }
0x1df5   : > { %v4637_v8 = vpop.f32.mrf.mxu0  ;;  %6119 = vmatprep.subr.bf16.mxu0 %v6239_v47 }
0x1df6   : > { %4672 = vrot.lane.b32.xlu1 %v4637_v8, %s7508_s25  ;;  %v6240_v8 = vld [vmem:[%s7469_s20] sm:$0xff]  }
0x1df7   : > { %v6110_v10 = vpop.f32.mrf.mxu0 }
0x1e21   : > { %v6175_v50 = vpop.permute.xlu0 %6174 }
0x1e22   : > { %v6177_v14 = vunpack.i.h.bf16 %v6175_v50  ;;  %v6176_v15 = vunpack.i.l.bf16 %v6175_v50 }
0x1e24   : > { %v4678_v12 = vsel %vm1116_vm5, %v7195_v3, %v6177_v14  ;;  %v4677_v29 = vsel %vm1116_vm5, %v7193_v63, %v6176_v15 }
0x1e50   : > { %v4649_v4 = vpop.permute.xlu1 %4648 }
0x1e51   : > { %v4679_v30 = vsel %vm1116_vm5, %v7197_v6, %v4649_v4  ;;  %v4695_v6 = vrot.slane %v7046_v2, %v6704_v17 }
0x1e5a   : > { %v6180_v11 = vpop.permute.xlu0 %6179 }
0x1e5b   : > { %v6182_v9 = vunpack.i.h.bf16 %v6180_v11  ;;  %v6181_v16 = vunpack.i.l.bf16 %v6180_v11 }
0x1e5c   : > { %v4661_v21 = vpop.permute.xlu1 %4660 }
0x1e5d   : > { %v4681_v36 = vsel %vm1798_vm8, %v4678_v12, %v6182_v9  ;;  %v4680_v7 = vsel %vm1798_vm8, %v4677_v29, %v6181_v16  ;;  %v4682_v40 = vsel %vm1798_vm8, %v4679_v30, %v4661_v21  ;;  %v6369_v29 = vld [vmem:[%s7471_s22] sm:$0xff] }
0x1e5e   : > { %v4807_v30 = vrot.slane %v6369_v29, %v6724_v42  ;;  %v6241_v42 = vld [vmem:[%s7470_s21 + $0x38] sm:$0xff]  }
0x1e5f   : > { %6127 = vmatprep.subr.bf16.mxu1 %v6241_v42 }
0x1e60   : > { %6128 = vmatpush3.bf16.msra.mxu1 %v6241_v42 }
0x1e66   : > { %v6185_v23 = vpop.permute.xlu0 %6184 }
0x1e67   : > { %v6187_v32 = vunpack.i.h.bf16 %v6185_v23  ;;  %v6186_v22 = vunpack.i.l.bf16 %v6185_v23 }
0x1e68   : > { %v4673_v41 = vpop.permute.xlu1 %4672 }
0x1e69   : > { %v4684_v33 = vsel %vm1800_vm9, %v4681_v36, %v6187_v32  ;;  %v4683_v3 = vsel %vm1800_vm9, %v4680_v7, %v6186_v22  ;;  %v4685_v44 = vsel %vm1800_vm9, %v4682_v40, %v4673_v41  ;;  %v4814_v40 = vrot.slane %v6369_v29, %v6727_v43  ;;  %v6242_v43 = vld [vmem:[%s7470_s21 + $0x30] sm:$0xff]  }
0x1e6a   : > { %v4686_v51 = vpack.c.bf16 %v4684_v33, %v4683_v3  ;;  %v4687_v63 = vpack.c.bf16 %v4685_v44, %v4685_v44  ;;  %6129 = vmatprep.subr.bf16.mxu1 %v6242_v43 }
0x1e6b   : > { %6130 = vmatpush3.bf16.msra.mxu1 %v6242_v43 }
0x1e6c   : > { %6115 = vmatprep.mubr.msk.bf16.mxu0 %vm952_vm3, %v4686_v51 }
0x1e6d   : > { %6116 = vmatmul.mubr.msk.bf16.vlgmr.msra.gmra.mxu0 %vm952_vm3, %v4687_v63 }
0x1e6e   : > { %6120 = vmatpush3.bf16.msra.mxu0 %v6239_v47 }
0x1e6f   : > { %6121 = vmatprep.subr.bf16.mxu0 %v6240_v8 }
0x1e72   : > { %6122 = vmatpush3.bf16.msra.mxu0 %v6240_v8 }
0x1f2d   : > { %v6117_v52 = vpop.f32.mrf.mxu0 }
0x1f2e   : > { %v4757_v34 = vadd.f32 %v6117_v52, %v4695_v6 }
0x1f2f   : > { %v4748_v54 = vpop.f32.mrf.mxu0 }
0x1f30   : > { %v4749_v48 = vadd.f32 %v4748_v54, %v4695_v6  ;;  %v7343_v57 = vadd.f32 %v4757_v34, %v7017_v31  ;;  %v6243_v54 = vld [vmem:[%s7470_s21 + $0x28] sm:$0xff]   ;;  %v6244_v34 = vld [vmem:[%s7470_s21 + $0x20] sm:$0xff]  }
0x1f31   : > { %v6118_v49 = vpop.f32.mrf.mxu0  ;;  %6131 = vmatprep.subr.bf16.mxu1 %v6243_v54 }
0x1f32   : > { %v7340_v53 = vadd.f32 %v4749_v48, %v7009_v13  ;;  %v4771_v58 = vsel %vm3433_vm10, %v7343_v57, 0.0  ;;  %6132 = vmatpush3.bf16.msra.mxu1 %v6243_v54  ;;  %v6245_v48 = vld [vmem:[%s7470_s21 + $0x18] sm:$0xff]   ;;  %v6246_v49 = vld [vmem:[%s7470_s21 + $0x10] sm:$0xff]  }
0x1f33   : > { %v4751_v56 = vpop.f32.mrf.mxu0  ;;  %6133 = vmatprep.subr.bf16.mxu1 %v6244_v34 }
0x1f34   : > { %v4752_v19 = vadd.f32 %v4751_v56, %v4695_v6  ;;  %v4765_v38 = vsel %vm952_vm3, %v7340_v53, 0.0  ;;  %v6247_v56 = vld [vmem:[%s7470_s21 + $0x8] sm:$0xff]  }
0x1f35   : > { %4766 = vadd.xlane.f32.xlu0 %v4765_v38  ;;  %v3426_v38 = vld [vmem:[%s7471_s22 + $0x8] sm:$0x3] }
0x1f36   : > { %v7348_v45 = vadd.f32 %v4752_v19, %v7013_v20  ;;  %6134 = vmatpush3.bf16.msra.mxu1 %v6244_v34  ;;  %v6248_v19 = vld [vmem:[%s7470_s21] sm:$0xff]  }
0x1f37   : > { %6135 = vmatprep.subr.bf16.mxu1 %v6245_v48 }
0x1f38   : > { %v4768_v2 = vsel %vm952_vm3, %v7348_v45, 0.0 }
0x1f39   : > { %4769 = vadd.xlane.f32.xlu1 %v4768_v2  ;;  %4772 = vadd.xlane.f32.xlu0 %v4771_v58  ;;  %v4827_v2 = vrot.slane %v3426_v38, %v6577_v26 }
0x1f3a   : > { %6136 = vmatpush3.bf16.msra.mxu1 %v6245_v48 }
0x1f3b   : > { %6137 = vmatprep.subr.bf16.mxu1 %v6246_v49 }
0x1f3e   : > { %6138 = vmatpush3.bf16.msra.mxu1 %v6246_v49 }
0x1f3f   : > { %6139 = vmatprep.subr.bf16.mxu1 %v6247_v56 }
0x1f42   : > { %6140 = vmatpush3.bf16.msra.mxu1 %v6247_v56 }
0x1f43   : > { %6141 = vmatprep.subr.bf16.mxu1 %v6248_v19 }
0x1f46   : > { %6142 = vmatpush3.bf16.msra.mxu1 %v6248_v19 }
0x1fbe   : > { %v4767_v13 = vpop.xlane.xlu0 %4766 }
0x1fbf   : > { %v4774_v1 = vmul.f32 0.03125, %v4767_v13 }
0x1fc1   : > { %v4777_v31 = vsub.f32 %v7340_v53, %v4774_v1 }
0x1fc2   : > { %v4770_v27 = vpop.xlane.xlu1 %4769  ;;  %v4773_v59 = vpop.xlane.xlu0 %4772 }
0x1fc3   : > { %v4775_v18 = vmul.f32 0.03125, %v4770_v27  ;;  %v4776_v60 = vmul.f32 0.03125, %v4773_v59  ;;  %v4780_v61 = vmul.f32 %v4777_v31, %v4777_v31 }
0x1fc5   : > { %v4778_v20 = vsub.f32 %v7348_v45, %v4775_v18  ;;  %v4779_v35 = vsub.f32 %v7343_v57, %v4776_v60  ;;  %v4783_v55 = vsel %vm952_vm3, %v4780_v61, 0.0 }
0x1fc6   : > { %4784 = vadd.xlane.f32.xlu0 %v4783_v55 }
0x1fc7   : > { %v4781_v62 = vmul.f32 %v4778_v20, %v4778_v20  ;;  %v4782_v0 = vmul.f32 %v4779_v35, %v4779_v35 }
0x1fc9   : > { %v4786_v5 = vsel %vm952_vm3, %v4781_v62, 0.0  ;;  %v4789_v37 = vsel %vm3433_vm10, %v4782_v0, 0.0 }
0x1fca   : > { %4787 = vadd.xlane.f32.xlu1 %v4786_v5  ;;  %4790 = vadd.xlane.f32.xlu0 %v4789_v37 }
0x204f   : > { %v4785_v10 = vpop.xlane.xlu0 %4784 }
0x2050   : > { %v4792_v50 = vmul.f32 0.03125, %v4785_v10 }
0x2052   : > { %v4795_v4 = vadd.f32 1e-05, %v4792_v50 }
0x2053   : > { %v4788_v11 = vpop.xlane.xlu1 %4787  ;;  %v4791_v14 = vpop.xlane.xlu0 %4790 }
0x2054   : > { %6351 = vrsqrt.f32 %v4795_v4  ;;  %v4793_v15 = vmul.f32 0.03125, %v4788_v11  ;;  %v4794_v9 = vmul.f32 0.03125, %v4791_v14 }
0x2056   : > { %v4796_v16 = vadd.f32 1e-05, %v4793_v15  ;;  %v4797_v21 = vadd.f32 1e-05, %v4794_v9 }
0x2058   : > { %6353 = vrsqrt.f32 %v4796_v16 }
0x2059   : > { %6355 = vrsqrt.f32 %v4797_v21 }
0x2061   : > { %v6352_v12 = vpop.eup %6351 }
0x2062   : > { %v4801_v23 = vmul.f32 %v6352_v12, %v4777_v31 }
0x2064   : > { %v4808_v7 = vmul.f32 %v4807_v30, %v4801_v23 }
0x2065   : > { %v6354_v32 = vpop.eup %6353 }
0x2066   : > { %v6356_v22 = vpop.eup %6355  ;;  %v4802_v36 = vmul.f32 %v6354_v32, %v4778_v20  ;;  %v4815_v44 = vadd.f32 %v4814_v40, %v4808_v7 }
0x2067   : > { %v4803_v41 = vmul.f32 %v6356_v22, %v4779_v35 }
0x2068   : > { %v4809_v33 = vmul.f32 %v4807_v30, %v4802_v36 }
0x2069   : > { %v4810_v3 = vmul.f32 %v4807_v30, %v4803_v41 }
0x206a   : > { %v4816_v51 = vadd.f32 %v4814_v40, %v4809_v33 }
0x206b   : > { %v4817_v63 = vadd.f32 %v4814_v40, %v4810_v3  ;;  %v4942_v40 = vrot.slane %v3426_v38, %v6585_v28 }
0x206c   : > { %v4818_v6 = vpack.c.bf16 %v4816_v51, %v4815_v44 }
0x206d   : > { %v4819_v52 = vpack.c.bf16 %v4817_v63, %v4817_v63 }
0x206e   : > { %6123 = vmatprep.mubr.msk.bf16.mxu0 %vm952_vm3, %v4818_v6 }
0x206f   : > { %6124 = vmatmul.mubr.msk.bf16.vlgmr.msra.gmra.mxu0 %vm952_vm3, %v4819_v52 }
0x212f   : > { %v6125_v58 = vpop.f32.mrf.mxu0 }
0x2130   : > { %v4889_v13 = vadd.f32 %v6125_v58, %v4827_v2 }
0x2131   : > { %v4880_v1 = vpop.f32.mrf.mxu0 }
0x2132   : > { %v4899_v31 = vmul.f32 0.044715, %v4889_v13  ;;  %v4881_v27 = vadd.f32 %v4880_v1, %v4827_v2  ;;  %v4896_v21 = vmul.f32 0.5, %v4889_v13 }
0x2133   : > { %v6126_v59 = vpop.f32.mrf.mxu0 }
0x2134   : > { %v4902_v18 = vmul.f32 %v4899_v31, %v4889_v13  ;;  %v4897_v60 = vmul.f32 0.044715, %v4881_v27  ;;  %v4894_v12 = vmul.f32 0.5, %v4881_v27 }
0x2135   : > { %v4883_v61 = vpop.f32.mrf.mxu0 }
0x2136   : > { %v4905_v20 = vmul.f32 %v4902_v18, %v4889_v13  ;;  %v4900_v35 = vmul.f32 %v4897_v60, %v4881_v27  ;;  %v4884_v55 = vadd.f32 %v4883_v61, %v4827_v2  ;;  %v6249_v18 = vld [vmem:[%s7472_s23 + $0x8] sm:$0xff]   ;;  %v6250_v60 = vld [vmem:[%s7472_s23] sm:$0xff]   ;;  %v6387_v61 = vmov 0  }
0x2137   : > { %6147 = vmatprep.subr.bf16.mxu0 %v6249_v18  ;;  %6188 = vset.pattern.permute.xlu1 %v6387_v61 }
0x2138   : > { %v4908_v62 = vadd.f32 %v4905_v20, %v4889_v13  ;;  %v4903_v0 = vmul.f32 %v4900_v35, %v4881_v27  ;;  %v4898_v5 = vmul.f32 0.044715, %v4884_v55  ;;  %v4895_v23 = vmul.f32 0.5, %v4884_v55  ;;  %6148 = vmatpush3.bf16.msra.mxu0 %v6249_v18  ;;  %v5180_v20 = vld [vmem:[%s826_s4] sm:$0xff]  ;;  %6189 = vset.pattern.permute.xlu0 %v6387_v61  ;;  %v5181_v35 = vld [vmem:[%s826_s4 + $0x8] sm:$0xff] }
0x2139   : > { %6149 = vmatprep.subr.bf16.mxu0 %v6250_v60  ;;  %v5222_v61 = vand.u32 127, %v921_v24 }
0x213a   : > { %v4911_v37 = vmul.f32 0.7978846, %v4908_v62  ;;  %v4901_v47 = vmul.f32 %v4898_v5, %v4884_v55  ;;  %v4906_v8 = vadd.f32 %v4903_v0, %v4881_v27 }
0x213b   : > { %vm5226_vm15 = vcmp.eq.s32.totalorder %v5222_v61, 48 }
0x213c   : > { %v4904_v10 = vmul.f32 %v4901_v47, %v4884_v55  ;;  %v4909_v26 = vmul.f32 0.7978846, %v4906_v8  ;;  %6357 = vtanh.f32 %v4911_v37  ;;  %6150 = vmatpush3.bf16.msra.mxu0 %v6250_v60  ;;  %vm5227_vm0 = vmand %vm5223_vm14, %vm5226_vm15 }
0x213e   : > { %v4907_v50 = vadd.f32 %v4904_v10, %v4884_v55  ;;  %6359 = vtanh.f32 %v4909_v26  ;;  %v5182_v55 = vld [vmem:[%s826_s4 + $0x10] sm:$0x1] }
0x2140   : > { %v4910_v4 = vmul.f32 0.7978846, %v4907_v50 }
0x2142   : > { %6361 = vtanh.f32 %v4910_v4 }
0x2149   : > { %v6358_v11 = vpop.eup %6357 }
0x214a   : > { %v4917_v15 = vadd.f32 1.0, %v6358_v11 }
0x214b   : > { %v6360_v14 = vpop.eup %6359 }
0x214c   : > { %v4915_v9 = vadd.f32 1.0, %v6360_v14  ;;  %v4920_v30 = vmul.f32 %v4917_v15, %v4896_v21  ;;  %v6370_v14 = vld [vmem:[%s7463_s14] sm:$0x3f] }
0x214d   : > { %v5084_v15 = vrot.slane %v6370_v14, %v6621_v46  ;;  %v5104_v46 = vrot.slane %v6370_v14, %v6704_v17  ;;  %v5172_v17 = vld [vmem:[%s821_s29 + $0x8] sm:$0xff] }
0x214e   : > { %v4918_v32 = vmul.f32 %v4915_v9, %v4894_v12  ;;  %v4922_v7 = vpack.c.bf16 %v4920_v30, %v4920_v30 }
0x214f   : > { %v6362_v16 = vpop.eup %6361 }
0x2150   : > { %v4916_v29 = vadd.f32 1.0, %v6362_v16 }
0x2152   : > { %v4919_v22 = vmul.f32 %v4916_v29, %v4895_v23  ;;  %v5091_v29 = vrot.slane %v6370_v14, %v6612_v39 }
0x2154   : > { %v4921_v36 = vpack.c.bf16 %v4919_v22, %v4918_v32 }
0x2156   : > { %6143 = vmatprep.mubr.bf16.mxu1 %v4921_v36 }
0x2157   : > { %6144 = vmatmul.mubr.bf16.vlgmr.msra.gmra.mxu1 %v4922_v7 }
0x2217   : > { %v6145_v41 = vpop.f32.mrf.mxu1 }
0x2218   : > { %v5034_v3 = vadd.f32 %v6145_v41, %v4942_v40 }
0x2219   : > { %v5025_v33 = vpop.f32.mrf.mxu1 }
0x221a   : > { %v5026_v44 = vadd.f32 %v5025_v33, %v4942_v40  ;;  %v5041_v52 = vadd.f32 %v5034_v3, %v7343_v57  ;;  %v5173_v33 = vld [vmem:[%s821_s29 + $0x10] sm:$0x1] }
0x221b   : > { %v6146_v51 = vpop.f32.mrf.mxu1 }
0x221c   : > { %v5039_v63 = vadd.f32 %v5026_v44, %v7340_v53  ;;  %v5048_v28 = vsel %vm3433_vm10, %v5041_v52, 0.0 }
0x221d   : > { %v5028_v6 = vpop.f32.mrf.mxu1 }
0x221e   : > { %v5029_v42 = vadd.f32 %v5028_v6, %v4942_v40  ;;  %v5042_v43 = vsel %vm952_vm3, %v5039_v63, 0.0 }
0x221f   : > { %5043 = vadd.xlane.f32.xlu1 %v5042_v43 }
0x2220   : > { %v5040_v54 = vadd.f32 %v5029_v42, %v7348_v45 }
0x2222   : > { %v5045_v34 = vsel %vm952_vm3, %v5040_v54, 0.0 }
0x2223   : > { %5046 = vadd.xlane.f32.xlu0 %v5045_v34  ;;  %5049 = vadd.xlane.f32.xlu1 %v5048_v28 }
0x22a8   : > { %v5044_v48 = vpop.xlane.xlu1 %5043 }
0x22a9   : > { %v5051_v49 = vmul.f32 0.03125, %v5044_v48 }
0x22ab   : > { %v5054_v56 = vsub.f32 %v5039_v63, %v5051_v49  ;;  %v5171_v63 = vld [vmem:[%s821_s29] sm:$0xff] }
0x22ac   : > { %v5047_v19 = vpop.xlane.xlu0 %5046  ;;  %v5050_v53 = vpop.xlane.xlu1 %5049 }
0x22ad   : > { %v5052_v38 = vmul.f32 0.03125, %v5047_v19  ;;  %v5053_v2 = vmul.f32 0.03125, %v5050_v53  ;;  %v5057_v57 = vmul.f32 %v5054_v56, %v5054_v56 }
0x22af   : > { %v5055_v58 = vsub.f32 %v5040_v54, %v5052_v38  ;;  %v5056_v13 = vsub.f32 %v5041_v52, %v5053_v2  ;;  %v5060_v1 = vsel %vm952_vm3, %v5057_v57, 0.0 }
0x22b0   : > { %5061 = vadd.xlane.f32.xlu0 %v5060_v1 }
0x22b1   : > { %v5058_v45 = vmul.f32 %v5055_v58, %v5055_v58  ;;  %v5059_v31 = vmul.f32 %v5056_v13, %v5056_v13 }
0x22b3   : > { %v5063_v27 = vsel %vm952_vm3, %v5058_v45, 0.0  ;;  %v5066_v59 = vsel %vm3433_vm10, %v5059_v31, 0.0 }
0x22b4   : > { %5064 = vadd.xlane.f32.xlu1 %v5063_v27  ;;  %5067 = vadd.xlane.f32.xlu0 %v5066_v59 }
0x22c5   : > { %5185 = vperm.xlu1 %6188, %v5180_v20  }
0x22c9   : > { %5195 = vperm.xlu1 %6188, %v5182_v55  }
0x22ca   : > { %5190 = vperm.xlu0 %6189, %v5181_v35  }
0x2339   : > { %v5062_v62 = vpop.xlane.xlu0 %5061 }
0x233a   : > { %v5069_v0 = vmul.f32 0.03125, %v5062_v62 }
0x233c   : > { %v5072_v5 = vadd.f32 1e-05, %v5069_v0 }
0x233d   : > { %v5068_v37 = vpop.xlane.xlu0 %5067  ;;  %v5065_v47 = vpop.xlane.xlu1 %5064 }
0x233e   : > { %6363 = vrsqrt.f32 %v5072_v5  ;;  %v5071_v8 = vmul.f32 0.03125, %v5068_v37  ;;  %v5070_v10 = vmul.f32 0.03125, %v5065_v47 }
0x2340   : > { %v5074_v26 = vadd.f32 1e-05, %v5071_v8  ;;  %v5073_v50 = vadd.f32 1e-05, %v5070_v10 }
0x2341   : > { %v5186_v44 = vpop.permute.xlu1 %5185 }
0x2342   : > { %6365 = vrsqrt.f32 %v5074_v26 }
0x2343   : > { %6367 = vrsqrt.f32 %v5073_v50 }
0x2345   : > { %v5196_v49 = vpop.permute.xlu1 %5195  ;;  %v5191_v38 = vpop.permute.xlu0 %5190 }
0x234b   : > { %v6364_v4 = vpop.eup %6363 }
0x234c   : > { %v5078_v11 = vmul.f32 %v6364_v4, %v5054_v56 }
0x234e   : > { %v5085_v23 = vmul.f32 %v5084_v15, %v5078_v11 }
0x234f   : > { %v6366_v9 = vpop.eup %6365 }
0x2350   : > { %v6368_v16 = vpop.eup %6367  ;;  %v5080_v21 = vmul.f32 %v6366_v9, %v5056_v13  ;;  %v5092_v36 = vadd.f32 %v5091_v29, %v5085_v23 }
0x2351   : > { %v5079_v12 = vmul.f32 %v6368_v16, %v5055_v58 }
0x2352   : > { %v5087_v30 = vmul.f32 %v5084_v15, %v5080_v21 }
0x2353   : > { %v5086_v32 = vmul.f32 %v5084_v15, %v5079_v12 }
0x2354   : > { %v5094_v22 = vadd.f32 %v5091_v29, %v5087_v30 }
0x2355   : > { %v5093_v7 = vadd.f32 %v5091_v29, %v5086_v32 }
0x2356   : > { %v5096_v40 = vpack.c.bf16 %v5094_v22, %v5094_v22 }
0x2357   : > { %v5095_v41 = vpack.c.bf16 %v5093_v7, %v5092_v36 }
0x2359   : > { %6151 = vmatprep.mubr.msk.bf16.mxu0 %vm952_vm3, %v5095_v41 }
0x235a   : > { %6152 = vmatmul.mubr.msk.bf16.vlgmr.msra.gmra.mxu0 %vm952_vm3, %v5096_v40 }
0x241a   : > { %v6153_v39 = vpop.f32.mrf.mxu0 }
0x241b   : > { %v5166_v3 = vadd.f32 %v6153_v39, %v5104_v46 }
0x241c   : > { %v5157_v51 = vpop.f32.mrf.mxu0 }
0x241d   : > { %v5176_v6 = vsub.f32 %v5166_v3, %v5173_v33  ;;  %5236 = vst [vmem:[%s7437_s26 + $0x10] sm:$0x1] %v5166_v3  ;;  %v5158_v52 = vadd.f32 %v5157_v51, %v5104_v46 }
0x241e   : > { %v6154_v42 = vpop.f32.mrf.mxu0 }
0x241f   : > { %v5174_v43 = vsub.f32 %v5158_v52, %v5171_v63  ;;  %v5179_v34 = vmul.f32 %v5176_v6, %v5176_v6 }
0x2420   : > { %v5160_v54 = vpop.f32.mrf.mxu0 }
0x2421   : > { %v5177_v28 = vmul.f32 %v5174_v43, %v5174_v43  ;;  %v5161_v48 = vadd.f32 %v5160_v54, %v5104_v46  ;;  %v5200_v53 = vmul.f32 %v5196_v49, %v5179_v34 }
0x2423   : > { %v5198_v56 = vmul.f32 %v5186_v44, %v5177_v28  ;;  %v5175_v19 = vsub.f32 %v5161_v48, %v5172_v17  ;;  %5235 = vst [vmem:[%s7437_s26 + $0x8] sm:$0xff] %v5161_v48  ;;  %v5205_v58 = vsel %vm3838_vm11, %v5200_v53, 0.0 }
0x2425   : > { %5201 = vadd.xlane.f32.xlu1 %v5198_v56  ;;  %v5178_v2 = vmul.f32 %v5175_v19, %v5175_v19 }
0x2427   : > { %v5199_v57 = vmul.f32 %v5191_v38, %v5178_v2 }
0x2429   : > { %5203 = vadd.xlane.f32.xlu0 %v5199_v57  ;;  %5206 = vadd.xlane.f32.xlu1 %v5205_v58 }
0x24ae   : > { %v5202_v13 = vpop.xlane.xlu1 %5201 }
0x24b2   : > { %v5204_v1 = vpop.xlane.xlu0 %5203  ;;  %v5207_v45 = vpop.xlane.xlu1 %5206 }
0x24b3   : > { %v5208_v31 = vadd.f32 %v5204_v1, %v5202_v13  ;;  %v5209_v27 = vsel %vm3838_vm11, %v5207_v45, 0.0 }
0x24b5   : > { %v5210_v59 = vadd.f32 %v5209_v27, %v5208_v31 }
0x24b7   : > { %v5211_v18 = vrot.slane %v5210_v59, 4 }
0x24b9   : > { %v5212_v60 = vadd.f32 %v5211_v18, %v5210_v59 }
0x24bb   : > { %v5213_v20 = vrot.slane %v5212_v60, 2 }
0x24bd   : > { %v5214_v35 = vadd.f32 %v5213_v20, %v5212_v60 }
0x24bf   : > { %v5215_v55 = vrot.slane %v5214_v35, 1 }
0x24c1   : > { %v5216_v62 = vadd.f32 %v5215_v55, %v5214_v35 }
0x24c3   : > { %v5230_v0 = vmul.f32 0.00086805556, %v5216_v62 }
0x24c5   : > { %v5231_v5 = vsel %vm5227_vm0, %v5230_v0, %v5158_v52 }
0x24c6   : > { %5234 = vst [vmem:[%s7437_s26] sm:$0xff] %v5231_v5 }
0x24c7 PF: > { %s34_s5 = sadd.s32 1, %s6377_s5  }
0x24c8   : > { %p31_p4 = scmp.ge.s32.totalorder %s34_s5, 4  }
0x24ca   :  { %33 = sbr.rel (!%p31_p4) target bundleno = 10 (0xa), region = 168 }

</bundles_post_ra>
